<compile_context>
chip_gen: v6e
topology: v6e:2x2x1
jax: 0.10.0
libtpu: 0.0.40
codegen_flags: <defaults>
</compile_context>

<pallas_src>
import functools

import jax
import jax.numpy as jnp
from jax.experimental import pallas as pl
from jax.experimental.pallas import tpu as pltpu


# ----------------------------------------------------------------------------
# Pallas kernels
# ----------------------------------------------------------------------------
def _mm_bias_act_kernel(x_ref, w_ref, b_ref, o_ref, *, act):
    """o = act(x @ w + b); bf16 MXU inputs, f32 accumulation/epilogue."""
    y = jnp.dot(x_ref[...], w_ref[...], preferred_element_type=jnp.float32)
    y = y + b_ref[...]
    if act == "relu":
        y = jnp.maximum(y, 0.0)
    o_ref[...] = y.astype(o_ref.dtype)


def _deconv2_out_kernel(x_ref, w_ref, b_ref, w2_ref, b2_ref, o_ref):
    """Fused: sub-pixel deconv2 matmul + bias + ReLU, then block-diag 1x1 output
    conv + bias + sigmoid. Only the tiny (M,4) sigmoid quadrants hit HBM."""
    y = jnp.dot(x_ref[...], w_ref[...], preferred_element_type=jnp.float32)
    y = jnp.maximum(y + b_ref[...], 0.0)
    y2 = jnp.dot(y.astype(jnp.bfloat16), w2_ref[...],
                 preferred_element_type=jnp.float32)
    y2 = y2 + b2_ref[...]
    # sigmoid: exp on EUP, approx reciprocal on EUP (keeps VALU slot free)
    o_ref[...] = pl.reciprocal(1.0 + jnp.exp(-y2), approx=True)


def _fc_stack_kernel(hf_ref, lb_ref,
                     w0x_ref, w0l_ref, b0_ref,
                     w12_ref, b12_ref,
                     w3z_ref, w3l_ref, b3_ref,
                     w4_ref, b4_ref,
                     ml_ref, dec_ref):
    """Whole FC stack in one kernel: fc -> [fc1|fc2] -> (z=mu) -> fc3 -> fc4.
    All intermediates stay in VMEM/vregs. Concats are avoided by splitting the
    weight matrices (x-part / label-part; z-part zero-padded over logvar rows)."""
    lbl = lb_ref[...]
    # fc: ReLU(x_flat @ Wx + label @ Wl + b)
    h = jnp.dot(hf_ref[...], w0x_ref[...], preferred_element_type=jnp.float32)
    h = h + jnp.dot(lbl, w0l_ref[...], preferred_element_type=jnp.float32) + b0_ref[...]
    h = jnp.maximum(h, 0.0)
    # fc1/fc2 merged: (B,8) = [mu | logvar]
    ml = jnp.dot(h.astype(jnp.bfloat16), w12_ref[...],
                 preferred_element_type=jnp.float32) + b12_ref[...]
    ml_ref[...] = ml
    # eval-mode reparametrize: z = mu. fc3's z-part weight has zero rows for the
    # logvar columns, so ml @ w3z == mu @ fc3_w[:4] with no in-kernel slicing.
    d = jnp.dot(ml.astype(jnp.bfloat16), w3z_ref[...], preferred_element_type=jnp.float32)
    d = d + jnp.dot(lbl, w3l_ref[...], preferred_element_type=jnp.float32) + b3_ref[...]
    d = jnp.maximum(d, 0.0)
    # fc4
    d = jnp.dot(d.astype(jnp.bfloat16), w4_ref[...],
                preferred_element_type=jnp.float32) + b4_ref[...]
    d = jnp.maximum(d, 0.0)
    dec_ref[...] = d.astype(dec_ref.dtype)


# ----------------------------------------------------------------------------
# pallas_call wrappers (M-tiled grids, double-buffered, parallel on megacore)
# ----------------------------------------------------------------------------
_MAX_TILE_M = 512


def _pick_tile_m(M):
    # Full-array block when it fits (no padding), else 512-row tiles.
    return M if M <= _MAX_TILE_M else _MAX_TILE_M


def matmul_bias_act(x, w, b, *, act="none", out_dtype=jnp.bfloat16):
    """x:(M,K) bf16-castable, w:(K,N) bf16, b:(1,N) f32 -> act(x@w+b):(M,N)."""
    M, K = x.shape
    Kw, N = w.shape
    assert K == Kw
    tm = _pick_tile_m(M)
    kernel = functools.partial(_mm_bias_act_kernel, act=act)
    return pl.pallas_call(
        kernel,
        out_shape=jax.ShapeDtypeStruct((M, N), out_dtype),
        grid=(pl.cdiv(M, tm),),
        in_specs=[
            pl.BlockSpec((tm, K), lambda i: (i, 0)),
            pl.BlockSpec((K, N), lambda i: (0, 0)),
            pl.BlockSpec((1, N), lambda i: (0, 0)),
        ],
        out_specs=pl.BlockSpec((tm, N), lambda i: (i, 0)),
        compiler_params=pltpu.CompilerParams(dimension_semantics=("parallel",)),
    )(x.astype(jnp.bfloat16), w, b)


def deconv2_output_head(col, w, b, w2, b2):
    """Fused deconv2(+ReLU) + 1x1 output conv + sigmoid. col:(M,4*Cin)."""
    M, K = col.shape
    N = w.shape[1]
    tm = _pick_tile_m(M)
    return pl.pallas_call(
        _deconv2_out_kernel,
        out_shape=jax.ShapeDtypeStruct((M, 4), jnp.float32),
        grid=(pl.cdiv(M, tm),),
        in_specs=[
            pl.BlockSpec((tm, K), lambda i: (i, 0)),
            pl.BlockSpec((K, N), lambda i: (0, 0)),
            pl.BlockSpec((1, N), lambda i: (0, 0)),
            pl.BlockSpec((N, 4), lambda i: (0, 0)),
            pl.BlockSpec((1, 4), lambda i: (0, 0)),
        ],
        out_specs=pl.BlockSpec((tm, 4), lambda i: (i, 0)),
        compiler_params=pltpu.CompilerParams(dimension_semantics=("parallel",)),
    )(col.astype(jnp.bfloat16), w, b, w2, b2)


def fc_stack(p, h_flat, label):
    """Single pallas_call for the whole FC stack. Returns ([mu|logvar], dec)."""
    B = h_flat.shape[0]

    def full(shape):
        return pl.BlockSpec(shape, lambda i: (0, 0))

    return pl.pallas_call(
        _fc_stack_kernel,
        out_shape=(jax.ShapeDtypeStruct((B, 8), jnp.float32),
                   jax.ShapeDtypeStruct((B, 3136), jnp.bfloat16)),
        grid=(1,),
        in_specs=[
            full((B, 3136)), full((B, 10)),
            full((3136, 128)), full((10, 128)), full((1, 128)),
            full((128, 8)), full((1, 8)),
            full((8, 128)), full((10, 128)), full((1, 128)),
            full((128, 3136)), full((1, 3136)),
        ],
        out_specs=(full((B, 8)), full((B, 3136))),
    )(h_flat.astype(jnp.bfloat16), label,
      p["fc_wx"], p["fc_wl"], p["fc_b"],
      p["fc12_w"], p["fc12_b"],
      p["fc3_wz"], p["fc3_wl"], p["fc3_b"],
      p["fc4_w"], p["fc4_b"])


# ----------------------------------------------------------------------------
# XLA-side glue: im2col patch extraction (cheap slicing), sub-pixel interleave,
# and weight-layout / BN folding at parameter-prep time.
# ----------------------------------------------------------------------------
def im2col(x, k, stride, pad):
    """NHWC -> ((B*Ho*Wo, k*k*C), Ho, Wo). Patch order (kh, kw, C)."""
    B, H, W, C = x.shape
    xp = jnp.pad(x, ((0, 0), (pad, pad), (pad, pad), (0, 0)))
    Ho = (H + 2 * pad - k) // stride + 1
    Wo = (W + 2 * pad - k) // stride + 1
    cols = []
    for i in range(k):
        for j in range(k):
            cols.append(xp[:, i:i + stride * Ho:stride, j:j + stride * Wo:stride, :])
    col = jnp.stack(cols, axis=3).reshape(B * Ho * Wo, k * k * C)
    return col, Ho, Wo


def im2col_2x2(x):
    """2x2-tap im2col (zero pad bottom/right) for the sub-pixel deconv.
    NHWC (B,H,W,C) -> (B*H*W, 4*C), tap order (dh, dw) in row-major."""
    B, H, W, C = x.shape
    xp = jnp.pad(x, ((0, 0), (0, 1), (0, 1), (0, 0)))
    taps = [xp[:, dh:dh + H, dw:dw + W, :] for dh in (0, 1) for dw in (0, 1)]
    return jnp.stack(taps, axis=3).reshape(B * H * W, 4 * C)


def interleave_quadrants(y, B, H, W, C):
    """(B*H*W, 4*C) quadrant columns (q = ph*2+pw) -> NHWC (B, 2H, 2W, C)."""
    y = y.reshape(B, H, W, 2, 2, C)              # (b, m, n, ph, pw, c)
    y = jnp.transpose(y, (0, 1, 3, 2, 4, 5))     # (b, m, ph, n, pw, c)
    return y.reshape(B, 2 * H, 2 * W, C)


def conv_w_to_mat(w):
    """PyTorch Conv2d weight (Cout,Cin,kh,kw) -> (kh*kw*Cin, Cout) matching im2col."""
    Cout, Cin, kh, kw = w.shape
    return jnp.transpose(w, (2, 3, 1, 0)).reshape(kh * kw * Cin, Cout)


def deconv_subpixel(wt, bias, bn_scale=None, bn_shift=None):
    """ConvTranspose2d(k=3, s=2, p=1, output_padding=1) weight (Cin,Cout,3,3) ->
    sub-pixel matrix (4*Cin, 4*Cout): rows grouped by 2x2 input tap (dh,dw),
    cols grouped by output-parity quadrant (ph,pw). Eval-BN folded in."""
    Cin, Cout, _, _ = wt.shape
    scale = jnp.ones((Cout,), jnp.float32) if bn_scale is None else bn_scale
    shift = jnp.zeros((Cout,), jnp.float32) if bn_shift is None else bn_shift
    W = jnp.zeros((2, 2, Cin, 2, 2, Cout), jnp.float32)  # (dh, dw, ci, ph, pw, co)
    for ph in (0, 1):
        for pw in (0, 1):
            for dh in (0, 1):
                for dw in (0, 1):
                    kh = ph + 1 - 2 * dh
                    kw = pw + 1 - 2 * dw
                    if 0 <= kh <= 2 and 0 <= kw <= 2:
                        W = W.at[dh, dw, :, ph, pw, :].set(wt[:, :, kh, kw] * scale[None, :])
    W = W.reshape(4 * Cin, 4 * Cout).astype(jnp.bfloat16)
    b = jnp.tile(bias * scale + shift, 4).reshape(1, 4 * Cout).astype(jnp.float32)
    return W, b


# ----------------------------------------------------------------------------
# Deterministic parameters (shapes from CVAE.__init__), BN/bias pre-folded.
# ----------------------------------------------------------------------------
def init_params(key):
    keys = jax.random.split(key, 48)
    ki = iter(keys)

    def nrm(shape, s=0.05):
        return (jax.random.normal(next(ki), shape) * s).astype(jnp.float32)

    def bn(c):
        gamma = 1.0 + nrm((c,), 0.1)
        beta = nrm((c,), 0.1)
        rmean = nrm((c,), 0.1)
        rvar = 1.0 + jnp.abs(nrm((c,), 0.1))
        scale = gamma / jnp.sqrt(rvar + 1e-5)   # eval-mode BN folded to affine
        shift = beta - rmean * scale
        return scale, shift

    p = {}
    # encoder conv1 + BN1 (folded)
    w1 = nrm((32, 1, 3, 3)); b1 = nrm((32,)); s1, t1 = bn(32)
    p["conv1_w"] = (conv_w_to_mat(w1) * s1[None, :]).astype(jnp.bfloat16)
    p["conv1_b"] = (b1 * s1 + t1).reshape(1, 32)
    # encoder conv2 + BN2 (folded)
    w2 = nrm((64, 32, 3, 3)); b2 = nrm((64,)); s2, t2 = bn(64)
    p["conv2_w"] = (conv_w_to_mat(w2) * s2[None, :]).astype(jnp.bfloat16)
    p["conv2_b"] = (b2 * s2 + t2).reshape(1, 64)
    # fc: Linear(3136+10 -> 128), stored transposed, split into x-part / label-part
    fc_w = nrm((3146, 128)); fc_b = nrm((128,))
    p["fc_wx"] = fc_w[:3136].astype(jnp.bfloat16)
    p["fc_wl"] = fc_w[3136:].astype(jnp.bfloat16)
    p["fc_b"] = fc_b.reshape(1, 128)
    # fc1 / fc2 merged: (128, 8) = [mu | logvar]
    fc1_w = nrm((128, 4)); fc1_b = nrm((4,))
    fc2_w = nrm((128, 4)); fc2_b = nrm((4,))
    p["fc12_w"] = jnp.concatenate([fc1_w, fc2_w], axis=1).astype(jnp.bfloat16)
    p["fc12_b"] = jnp.concatenate([fc1_b, fc2_b]).reshape(1, 8)
    # fc3: Linear(4+10 -> 128); z-part padded with zero rows over the logvar slots
    fc3_w = nrm((14, 128)); fc3_b = nrm((128,))
    p["fc3_wz"] = jnp.concatenate([fc3_w[:4], jnp.zeros((4, 128), jnp.float32)], 0).astype(jnp.bfloat16)
    p["fc3_wl"] = fc3_w[4:].astype(jnp.bfloat16)
    p["fc3_b"] = fc3_b.reshape(1, 128)
    # fc4: Linear(128 -> 3136)
    fc4_w = nrm((128, 3136)); fc4_b = nrm((3136,))
    p["fc4_w"] = fc4_w.astype(jnp.bfloat16)
    p["fc4_b"] = fc4_b.reshape(1, 3136)
    # decoder deconv1 (64->64) + BN3 (folded), sub-pixel form
    dw1 = nrm((64, 64, 3, 3)); db1 = nrm((64,)); s3, t3 = bn(64)
    p["deconv1_w"], p["deconv1_b"] = deconv_subpixel(dw1, db1, s3, t3)
    # decoder deconv2 (64->32), sub-pixel form (no BN)
    dw2 = nrm((64, 32, 3, 3)); db2 = nrm((32,))
    p["deconv2_w"], p["deconv2_b"] = deconv_subpixel(dw2, db2)
    # output 1x1 conv (32->1): block-diagonal over the 4 output-parity quadrants
    ow = nrm((1, 32, 1, 1)).reshape(32)
    ob = nrm((1,))
    W_out = jnp.zeros((128, 4), jnp.float32)
    for q in range(4):
        W_out = W_out.at[q * 32:(q + 1) * 32, q].set(ow)
    p["out_w"] = W_out.astype(jnp.bfloat16)
    p["out_b"] = jnp.tile(ob, 4).reshape(1, 4)
    return p


# ----------------------------------------------------------------------------
# Forward pass (matches CVAE.forward in eval mode).
# ----------------------------------------------------------------------------
def cvae_forward(p, x_nchw, class_num):
    B = x_nchw.shape[0]
    label = jax.nn.one_hot(class_num, 10, dtype=jnp.bfloat16)          # (B,10)
    x = jnp.transpose(x_nchw, (0, 2, 3, 1)).astype(jnp.bfloat16)       # NHWC (B,28,28,1)

    # ---- encode ----
    col, _, _ = im2col(x, 3, 2, 1)                                     # (B*196, 9)
    h = matmul_bias_act(col, p["conv1_w"], p["conv1_b"], act="relu")   # (B*196, 32)
    h = h.reshape(B, 14, 14, 32)
    col, _, _ = im2col(h, 3, 2, 1)                                     # (B*49, 288)
    h = matmul_bias_act(col, p["conv2_w"], p["conv2_b"], act="relu")   # (B*49, 64)
    h = h.reshape(B, 7, 7, 64)
    h_flat = jnp.transpose(h, (0, 3, 1, 2)).reshape(B, 3136)           # torch (C,H,W) flatten

    # ---- fused FC stack: fc -> fc1/fc2 -> (z = mu, eval mode) -> fc3 -> fc4 ----
    mulogvar, dec = fc_stack(p, h_flat, label)
    mu = mulogvar[:, :4]
    logvar = mulogvar[:, 4:]
    # TODO(synk): training-mode reparametrization (z = mu + eps*exp(0.5*logvar)) not implemented.

    # ---- decode ----
    d = jnp.transpose(dec.reshape(B, 64, 7, 7), (0, 2, 3, 1))          # NHWC (B,7,7,64)

    # deconv1: stride-2 ConvTranspose as single sub-pixel matmul (+BN3+ReLU folded)
    col = im2col_2x2(d)                                                # (B*49, 256)
    y = matmul_bias_act(col, p["deconv1_w"], p["deconv1_b"], act="relu")   # (B*49, 256)
    d = interleave_quadrants(y, B, 7, 7, 64)                           # (B,14,14,64)

    # deconv2 + ReLU + 1x1 output conv + sigmoid, one fused kernel
    col = im2col_2x2(d)                                                # (B*196, 256)
    o = deconv2_output_head(col, p["deconv2_w"], p["deconv2_b"],
                            p["out_w"], p["out_b"])                    # (B*196, 4)
    recon = interleave_quadrants(o, B, 14, 14, 1)                      # (B,28,28,1)
    recon = jnp.transpose(recon, (0, 3, 1, 2))                         # NCHW (B,1,28,28)
    return mu, logvar, recon


if __name__ == "__main__":
    key = jax.random.PRNGKey(0)
    kx, kp = jax.random.split(key)
    params = init_params(kp)

    # fc_dim = 3136 = 64*7*7 -> 28x28 single-channel input.
    x = jax.random.normal(kx, (2, 1, 28, 28), dtype=jnp.float32)
    class_num = jnp.array([3, 7], dtype=jnp.int32)

    mu, logvar, recon = jax.jit(cvae_forward)(params, x, class_num)
    jax.block_until_ready((mu, logvar, recon))

    assert mu.shape == (2, 4)
    assert logvar.shape == (2, 4)
    assert recon.shape == (2, 1, 28, 28)
    assert bool(jnp.all(jnp.isfinite(recon)))
    # sigmoid output (approx-reciprocal epilogue -> allow tiny tolerance)
    assert bool(jnp.all(recon >= -1e-2) & jnp.all(recon <= 1.0 + 1e-2))
    print("KERNEL_OK")
</pallas_src>

<mosaic_0001>
module attributes {stable_mosaic.version = 11 : i64} {
  func.func @_mm_bias_act_kernel(%arg0: i32, %arg1: memref<392x9xbf16, #tpu.memory_space<vmem>>, %arg2: memref<9x32xbf16, #tpu.memory_space<vmem>>, %arg3: memref<1x32xf32, #tpu.memory_space<vmem>>, %arg4: memref<392x32xbf16, #tpu.memory_space<vmem>>) attributes {dimension_semantics = [#tpu.dimension_semantics<parallel>], iteration_bounds = array<i64: 1>, scalar_prefetch = 0 : i64, scratch_operands = 0 : i64, tpu.core_type = #tpu.core_type<tc>, window_params = [{transform_indices = @transform_0, window_bounds = array<i64: 392, 9>}, {pipeline_mode = #tpu.pipeline_mode<synchronous>, transform_indices = @transform_1, window_bounds = array<i64: 9, 32>}, {pipeline_mode = #tpu.pipeline_mode<synchronous>, transform_indices = @transform_2, window_bounds = array<i64: 1, 32>}, {transform_indices = @transform_3, window_bounds = array<i64: 392, 32>}]} {
    %c0 = arith.constant 0 : index
    %c0_0 = arith.constant 0 : index
    %0 = vector.load %arg1[%c0, %c0_0] : memref<392x9xbf16, #tpu.memory_space<vmem>>, vector<392x9xbf16>
    %c0_1 = arith.constant 0 : index
    %c0_2 = arith.constant 0 : index
    %1 = vector.load %arg2[%c0_1, %c0_2] : memref<9x32xbf16, #tpu.memory_space<vmem>>, vector<9x32xbf16>
    %cst = arith.constant dense<0.000000e+00> : vector<392x32xf32>
    %2 = tpu.matmul %0, %1, %cst {dimension_numbers = #tpu.dot_dimension_numbers<[1], [0], [0], [1], [0, 0, 1, 1], [], []>} : vector<392x9xbf16>, vector<9x32xbf16>, vector<392x32xf32> -> vector<392x32xf32>
    %c0_3 = arith.constant 0 : index
    %c0_4 = arith.constant 0 : index
    %3 = vector.load %arg3[%c0_3, %c0_4] : memref<1x32xf32, #tpu.memory_space<vmem>>, vector<1x32xf32>
    %4 = vector.broadcast %3 : vector<1x32xf32> to vector<392x32xf32>
    %5 = arith.addf %2, %4 : vector<392x32xf32>
    %cst_5 = arith.constant 0.000000e+00 : f32
    %6 = vector.broadcast %cst_5 : f32 to vector<392x32xf32>
    %7 = arith.maximumf %5, %6 : vector<392x32xf32>
    %8 = arith.truncf %7 : vector<392x32xf32> to vector<392x32xbf16>
    %c0_6 = arith.constant 0 : index
    %c0_7 = arith.constant 0 : index
    %9 = vector.load %arg4[%c0_6, %c0_7] : memref<392x32xbf16, #tpu.memory_space<vmem>>, vector<392x32xbf16>
    tpu.vector_store %arg4[%c0_6, %c0_7], %8 {strides = array<i32>} : memref<392x32xbf16, #tpu.memory_space<vmem>>, vector<392x32xbf16>,
    return
  }
  func.func @transform_0(%arg0: i32) -> (i32, i32) {
    %c0_i32 = arith.constant 0 : i32
    %c0_i32_0 = arith.constant 0 : i32
    return %arg0, %c0_i32 : i32, i32
  }
  func.func @transform_1(%arg0: i32) -> (i32, i32) {
    %c0_i32 = arith.constant 0 : i32
    %c0_i32_0 = arith.constant 0 : i32
    %c0_i32_1 = arith.constant 0 : i32
    return %c0_i32, %c0_i32_0 : i32, i32
  }
  func.func @transform_2(%arg0: i32) -> (i32, i32) {
    %c0_i32 = arith.constant 0 : i32
    %c0_i32_0 = arith.constant 0 : i32
    %c0_i32_1 = arith.constant 0 : i32
    return %c0_i32, %c0_i32_0 : i32, i32
  }
  func.func @transform_3(%arg0: i32) -> (i32, i32) {
    %c0_i32 = arith.constant 0 : i32
    %c0_i32_0 = arith.constant 0 : i32
    return %arg0, %c0_i32 : i32, i32
  }
}

module attributes {stable_mosaic.version = 11 : i64} {
  func.func @_mm_bias_act_kernel(%arg0: i32, %arg1: memref<98x288xbf16, #tpu.memory_space<vmem>>, %arg2: memref<288x64xbf16, #tpu.memory_space<vmem>>, %arg3: memref<1x64xf32, #tpu.memory_space<vmem>>, %arg4: memref<98x64xbf16, #tpu.memory_space<vmem>>) attributes {dimension_semantics = [#tpu.dimension_semantics<parallel>], iteration_bounds = array<i64: 1>, scalar_prefetch = 0 : i64, scratch_operands = 0 : i64, tpu.core_type = #tpu.core_type<tc>, window_params = [{transform_indices = @transform_0, window_bounds = array<i64: 98, 288>}, {pipeline_mode = #tpu.pipeline_mode<synchronous>, transform_indices = @transform_1, window_bounds = array<i64: 288, 64>}, {pipeline_mode = #tpu.pipeline_mode<synchronous>, transform_indices = @transform_2, window_bounds = array<i64: 1, 64>}, {transform_indices = @transform_3, window_bounds = array<i64: 98, 64>}]} {
    %c0 = arith.constant 0 : index
    %c0_0 = arith.constant 0 : index
    %0 = vector.load %arg1[%c0, %c0_0] : memref<98x288xbf16, #tpu.memory_space<vmem>>, vector<98x288xbf16>
    %c0_1 = arith.constant 0 : index
    %c0_2 = arith.constant 0 : index
    %1 = vector.load %arg2[%c0_1, %c0_2] : memref<288x64xbf16, #tpu.memory_space<vmem>>, vector<288x64xbf16>
    %cst = arith.constant dense<0.000000e+00> : vector<98x64xf32>
    %2 = tpu.matmul %0, %1, %cst {dimension_numbers = #tpu.dot_dimension_numbers<[1], [0], [0], [1], [0, 0, 1, 1], [], []>} : vector<98x288xbf16>, vector<288x64xbf16>, vector<98x64xf32> -> vector<98x64xf32>
    %c0_3 = arith.constant 0 : index
    %c0_4 = arith.constant 0 : index
    %3 = vector.load %arg3[%c0_3, %c0_4] : memref<1x64xf32, #tpu.memory_space<vmem>>, vector<1x64xf32>
    %4 = vector.broadcast %3 : vector<1x64xf32> to vector<98x64xf32>
    %5 = arith.addf %2, %4 : vector<98x64xf32>
    %cst_5 = arith.constant 0.000000e+00 : f32
    %6 = vector.broadcast %cst_5 : f32 to vector<98x64xf32>
    %7 = arith.maximumf %5, %6 : vector<98x64xf32>
    %8 = arith.truncf %7 : vector<98x64xf32> to vector<98x64xbf16>
    %c0_6 = arith.constant 0 : index
    %c0_7 = arith.constant 0 : index
    %9 = vector.load %arg4[%c0_6, %c0_7] : memref<98x64xbf16, #tpu.memory_space<vmem>>, vector<98x64xbf16>
    tpu.vector_store %arg4[%c0_6, %c0_7], %8 {strides = array<i32>} : memref<98x64xbf16, #tpu.memory_space<vmem>>, vector<98x64xbf16>,
    return
  }
  func.func @transform_0(%arg0: i32) -> (i32, i32) {
    %c0_i32 = arith.constant 0 : i32
    %c0_i32_0 = arith.constant 0 : i32
    return %arg0, %c0_i32 : i32, i32
  }
  func.func @transform_1(%arg0: i32) -> (i32, i32) {
    %c0_i32 = arith.constant 0 : i32
    %c0_i32_0 = arith.constant 0 : i32
    %c0_i32_1 = arith.constant 0 : i32
    return %c0_i32, %c0_i32_0 : i32, i32
  }
  func.func @transform_2(%arg0: i32) -> (i32, i32) {
    %c0_i32 = arith.constant 0 : i32
    %c0_i32_0 = arith.constant 0 : i32
    %c0_i32_1 = arith.constant 0 : i32
    return %c0_i32, %c0_i32_0 : i32, i32
  }
  func.func @transform_3(%arg0: i32) -> (i32, i32) {
    %c0_i32 = arith.constant 0 : i32
    %c0_i32_0 = arith.constant 0 : i32
    return %arg0, %c0_i32 : i32, i32
  }
}

module attributes {stable_mosaic.version = 11 : i64} {
  func.func @_fc_stack_kernel(%arg0: i32, %arg1: memref<2x3136xbf16, #tpu.memory_space<vmem>>, %arg2: memref<2x10xbf16, #tpu.memory_space<vmem>>, %arg3: memref<3136x128xbf16, #tpu.memory_space<vmem>>, %arg4: memref<10x128xbf16, #tpu.memory_space<vmem>>, %arg5: memref<1x128xf32, #tpu.memory_space<vmem>>, %arg6: memref<128x8xbf16, #tpu.memory_space<vmem>>, %arg7: memref<1x8xf32, #tpu.memory_space<vmem>>, %arg8: memref<8x128xbf16, #tpu.memory_space<vmem>>, %arg9: memref<10x128xbf16, #tpu.memory_space<vmem>>, %arg10: memref<1x128xf32, #tpu.memory_space<vmem>>, %arg11: memref<128x3136xbf16, #tpu.memory_space<vmem>>, %arg12: memref<1x3136xf32, #tpu.memory_space<vmem>>, %arg13: memref<2x8xf32, #tpu.memory_space<vmem>>, %arg14: memref<2x3136xbf16, #tpu.memory_space<vmem>>) attributes {dimension_semantics = [#tpu.dimension_semantics<arbitrary>], iteration_bounds = array<i64: 1>, scalar_prefetch = 0 : i64, scratch_operands = 0 : i64, tpu.core_type = #tpu.core_type<tc>, window_params = [{pipeline_mode = #tpu.pipeline_mode<synchronous>, transform_indices = @transform_0, window_bounds = array<i64: 2, 3136>}, {pipeline_mode = #tpu.pipeline_mode<synchronous>, transform_indices = @transform_1, window_bounds = array<i64: 2, 10>}, {pipeline_mode = #tpu.pipeline_mode<synchronous>, transform_indices = @transform_2, window_bounds = array<i64: 3136, 128>}, {pipeline_mode = #tpu.pipeline_mode<synchronous>, transform_indices = @transform_3, window_bounds = array<i64: 10, 128>}, {pipeline_mode = #tpu.pipeline_mode<synchronous>, transform_indices = @transform_4, window_bounds = array<i64: 1, 128>}, {pipeline_mode = #tpu.pipeline_mode<synchronous>, transform_indices = @transform_5, window_bounds = array<i64: 128, 8>}, {pipeline_mode = #tpu.pipeline_mode<synchronous>, transform_indices = @transform_6, window_bounds = array<i64: 1, 8>}, {pipeline_mode = #tpu.pipeline_mode<synchronous>, transform_indices = @transform_7, window_bounds = array<i64: 8, 128>}, {pipeline_mode = #tpu.pipeline_mode<synchronous>, transform_indices = @transform_8, window_bounds = array<i64: 10, 128>}, {pipeline_mode = #tpu.pipeline_mode<synchronous>, transform_indices = @transform_9, window_bounds = array<i64: 1, 128>}, {pipeline_mode = #tpu.pipeline_mode<synchronous>, transform_indices = @transform_10, window_bounds = array<i64: 128, 3136>}, {pipeline_mode = #tpu.pipeline_mode<synchronous>, transform_indices = @transform_11, window_bounds = array<i64: 1, 3136>}, {pipeline_mode = #tpu.pipeline_mode<synchronous>, transform_indices = @transform_12, window_bounds = array<i64: 2, 8>}, {pipeline_mode = #tpu.pipeline_mode<synchronous>, transform_indices = @transform_13, window_bounds = array<i64: 2, 3136>}]} {
    %c0 = arith.constant 0 : index
    %c0_0 = arith.constant 0 : index
    %0 = vector.load %arg2[%c0, %c0_0] : memref<2x10xbf16, #tpu.memory_space<vmem>>, vector<2x10xbf16>
    %c0_1 = arith.constant 0 : index
    %c0_2 = arith.constant 0 : index
    %1 = vector.load %arg1[%c0_1, %c0_2] : memref<2x3136xbf16, #tpu.memory_space<vmem>>, vector<2x3136xbf16>
    %c0_3 = arith.constant 0 : index
    %c0_4 = arith.constant 0 : index
    %2 = vector.load %arg3[%c0_3, %c0_4] : memref<3136x128xbf16, #tpu.memory_space<vmem>>, vector<3136x128xbf16>
    %cst = arith.constant dense<0.000000e+00> : vector<2x128xf32>
    %3 = tpu.matmul %1, %2, %cst {dimension_numbers = #tpu.dot_dimension_numbers<[1], [0], [0], [1], [0, 0, 1, 1], [], []>} : vector<2x3136xbf16>, vector<3136x128xbf16>, vector<2x128xf32> -> vector<2x128xf32>
    %c0_5 = arith.constant 0 : index
    %c0_6 = arith.constant 0 : index
    %4 = vector.load %arg4[%c0_5, %c0_6] : memref<10x128xbf16, #tpu.memory_space<vmem>>, vector<10x128xbf16>
    %cst_7 = arith.constant dense<0.000000e+00> : vector<2x128xf32>
    %5 = tpu.matmul %0, %4, %cst_7 {dimension_numbers = #tpu.dot_dimension_numbers<[1], [0], [0], [1], [0, 0, 1, 1], [], []>} : vector<2x10xbf16>, vector<10x128xbf16>, vector<2x128xf32> -> vector<2x128xf32>
    %6 = arith.addf %3, %5 : vector<2x128xf32>
    %c0_8 = arith.constant 0 : index
    %c0_9 = arith.constant 0 : index
    %7 = vector.load %arg5[%c0_8, %c0_9] : memref<1x128xf32, #tpu.memory_space<vmem>>, vector<1x128xf32>
    %8 = vector.broadcast %7 : vector<1x128xf32> to vector<2x128xf32>
    %9 = arith.addf %6, %8 : vector<2x128xf32>
    %cst_10 = arith.constant 0.000000e+00 : f32
    %10 = vector.broadcast %cst_10 : f32 to vector<2x128xf32>
    %11 = arith.maximumf %9, %10 : vector<2x128xf32>
    %12 = arith.truncf %11 : vector<2x128xf32> to vector<2x128xbf16>
    %c0_11 = arith.constant 0 : index
    %c0_12 = arith.constant 0 : index
    %13 = vector.load %arg6[%c0_11, %c0_12] : memref<128x8xbf16, #tpu.memory_space<vmem>>, vector<128x8xbf16>
    %cst_13 = arith.constant dense<0.000000e+00> : vector<2x8xf32>
    %14 = tpu.matmul %12, %13, %cst_13 {dimension_numbers = #tpu.dot_dimension_numbers<[1], [0], [0], [1], [0, 0, 1, 1], [], []>} : vector<2x128xbf16>, vector<128x8xbf16>, vector<2x8xf32> -> vector<2x8xf32>
    %c0_14 = arith.constant 0 : index
    %c0_15 = arith.constant 0 : index
    %15 = vector.load %arg7[%c0_14, %c0_15] : memref<1x8xf32, #tpu.memory_space<vmem>>, vector<1x8xf32>
    %16 = vector.broadcast %15 : vector<1x8xf32> to vector<2x8xf32>
    %17 = arith.addf %14, %16 : vector<2x8xf32>
    %c0_16 = arith.constant 0 : index
    %c0_17 = arith.constant 0 : index
    %18 = vector.load %arg13[%c0_16, %c0_17] : memref<2x8xf32, #tpu.memory_space<vmem>>, vector<2x8xf32>
    tpu.vector_store %arg13[%c0_16, %c0_17], %17 {strides = array<i32>} : memref<2x8xf32, #tpu.memory_space<vmem>>, vector<2x8xf32>,
    %19 = arith.truncf %17 : vector<2x8xf32> to vector<2x8xbf16>
    %c0_18 = arith.constant 0 : index
    %c0_19 = arith.constant 0 : index
    %20 = vector.load %arg8[%c0_18, %c0_19] : memref<8x128xbf16, #tpu.memory_space<vmem>>, vector<8x128xbf16>
    %cst_20 = arith.constant dense<0.000000e+00> : vector<2x128xf32>
    %21 = tpu.matmul %19, %20, %cst_20 {dimension_numbers = #tpu.dot_dimension_numbers<[1], [0], [0], [1], [0, 0, 1, 1], [], []>} : vector<2x8xbf16>, vector<8x128xbf16>, vector<2x128xf32> -> vector<2x128xf32>
    %c0_21 = arith.constant 0 : index
    %c0_22 = arith.constant 0 : index
    %22 = vector.load %arg9[%c0_21, %c0_22] : memref<10x128xbf16, #tpu.memory_space<vmem>>, vector<10x128xbf16>
    %cst_23 = arith.constant dense<0.000000e+00> : vector<2x128xf32>
    %23 = tpu.matmul %0, %22, %cst_23 {dimension_numbers = #tpu.dot_dimension_numbers<[1], [0], [0], [1], [0, 0, 1, 1], [], []>} : vector<2x10xbf16>, vector<10x128xbf16>, vector<2x128xf32> -> vector<2x128xf32>
    %24 = arith.addf %21, %23 : vector<2x128xf32>
    %c0_24 = arith.constant 0 : index
    %c0_25 = arith.constant 0 : index
    %25 = vector.load %arg10[%c0_24, %c0_25] : memref<1x128xf32, #tpu.memory_space<vmem>>, vector<1x128xf32>
    %26 = vector.broadcast %25 : vector<1x128xf32> to vector<2x128xf32>
    %27 = arith.addf %24, %26 : vector<2x128xf32>
    %cst_26 = arith.constant 0.000000e+00 : f32
    %28 = vector.broadcast %cst_26 : f32 to vector<2x128xf32>
    %29 = arith.maximumf %27, %28 : vector<2x128xf32>
    %30 = arith.truncf %29 : vector<2x128xf32> to vector<2x128xbf16>
    %c0_27 = arith.constant 0 : index
    %c0_28 = arith.constant 0 : index
    %31 = vector.load %arg11[%c0_27, %c0_28] : memref<128x3136xbf16, #tpu.memory_space<vmem>>, vector<128x3136xbf16>
    %cst_29 = arith.constant dense<0.000000e+00> : vector<2x3136xf32>
    %32 = tpu.matmul %30, %31, %cst_29 {dimension_numbers = #tpu.dot_dimension_numbers<[1], [0], [0], [1], [0, 0, 1, 1], [], []>} : vector<2x128xbf16>, vector<128x3136xbf16>, vector<2x3136xf32> -> vector<2x3136xf32>
    %c0_30 = arith.constant 0 : index
    %c0_31 = arith.constant 0 : index
    %33 = vector.load %arg12[%c0_30, %c0_31] : memref<1x3136xf32, #tpu.memory_space<vmem>>, vector<1x3136xf32>
    %34 = vector.broadcast %33 : vector<1x3136xf32> to vector<2x3136xf32>
    %35 = arith.addf %32, %34 : vector<2x3136xf32>
    %cst_32 = arith.constant 0.000000e+00 : f32
    %36 = vector.broadcast %cst_32 : f32 to vector<2x3136xf32>
    %37 = arith.maximumf %35, %36 : vector<2x3136xf32>
    %38 = arith.truncf %37 : vector<2x3136xf32> to vector<2x3136xbf16>
    %c0_33 = arith.constant 0 : index
    %c0_34 = arith.constant 0 : index
    %39 = vector.load %arg14[%c0_33, %c0_34] : memref<2x3136xbf16, #tpu.memory_space<vmem>>, vector<2x3136xbf16>
    tpu.vector_store %arg14[%c0_33, %c0_34], %38 {strides = array<i32>} : memref<2x3136xbf16, #tpu.memory_space<vmem>>, vector<2x3136xbf16>,
    return
  }
  func.func @transform_0(%arg0: i32) -> (i32, i32) {
    %c0_i32 = arith.constant 0 : i32
    %c0_i32_0 = arith.constant 0 : i32
    %c0_i32_1 = arith.constant 0 : i32
    return %c0_i32, %c0_i32_0 : i32, i32
  }
  func.func @transform_1(%arg0: i32) -> (i32, i32) {
    %c0_i32 = arith.constant 0 : i32
    %c0_i32_0 = arith.constant 0 : i32
    %c0_i32_1 = arith.constant 0 : i32
    return %c0_i32, %c0_i32_0 : i32, i32
  }
  func.func @transform_2(%arg0: i32) -> (i32, i32) {
    %c0_i32 = arith.constant 0 : i32
    %c0_i32_0 = arith.constant 0 : i32
    %c0_i32_1 = arith.constant 0 : i32
    return %c0_i32, %c0_i32_0 : i32, i32
  }
  func.func @transform_3(%arg0: i32) -> (i32, i32) {
    %c0_i32 = arith.constant 0 : i32
    %c0_i32_0 = arith.constant 0 : i32
    %c0_i32_1 = arith.constant 0 : i32
    return %c0_i32, %c0_i32_0 : i32, i32
  }
  func.func @transform_4(%arg0: i32) -> (i32, i32) {
    %c0_i32 = arith.constant 0 : i32
    %c0_i32_0 = arith.constant 0 : i32
    %c0_i32_1 = arith.constant 0 : i32
    return %c0_i32, %c0_i32_0 : i32, i32
  }
  func.func @transform_5(%arg0: i32) -> (i32, i32) {
    %c0_i32 = arith.constant 0 : i32
    %c0_i32_0 = arith.constant 0 : i32
    %c0_i32_1 = arith.constant 0 : i32
    return %c0_i32, %c0_i32_0 : i32, i32
  }
  func.func @transform_6(%arg0: i32) -> (i32, i32) {
    %c0_i32 = arith.constant 0 : i32
    %c0_i32_0 = arith.constant 0 : i32
    %c0_i32_1 = arith.constant 0 : i32
    return %c0_i32, %c0_i32_0 : i32, i32
  }
  func.func @transform_7(%arg0: i32) -> (i32, i32) {
    %c0_i32 = arith.constant 0 : i32
    %c0_i32_0 = arith.constant 0 : i32
    %c0_i32_1 = arith.constant 0 : i32
    return %c0_i32, %c0_i32_0 : i32, i32
  }
  func.func @transform_8(%arg0: i32) -> (i32, i32) {
    %c0_i32 = arith.constant 0 : i32
    %c0_i32_0 = arith.constant 0 : i32
    %c0_i32_1 = arith.constant 0 : i32
    return %c0_i32, %c0_i32_0 : i32, i32
  }
  func.func @transform_9(%arg0: i32) -> (i32, i32) {
    %c0_i32 = arith.constant 0 : i32
    %c0_i32_0 = arith.constant 0 : i32
    %c0_i32_1 = arith.constant 0 : i32
    return %c0_i32, %c0_i32_0 : i32, i32
  }
  func.func @transform_10(%arg0: i32) -> (i32, i32) {
    %c0_i32 = arith.constant 0 : i32
    %c0_i32_0 = arith.constant 0 : i32
    %c0_i32_1 = arith.constant 0 : i32
    return %c0_i32, %c0_i32_0 : i32, i32
  }
  func.func @transform_11(%arg0: i32) -> (i32, i32) {
    %c0_i32 = arith.constant 0 : i32
    %c0_i32_0 = arith.constant 0 : i32
    %c0_i32_1 = arith.constant 0 : i32
    return %c0_i32, %c0_i32_0 : i32, i32
  }
  func.func @transform_12(%arg0: i32) -> (i32, i32) {
    %c0_i32 = arith.constant 0 : i32
    %c0_i32_0 = arith.constant 0 : i32
    %c0_i32_1 = arith.constant 0 : i32
    return %c0_i32, %c0_i32_0 : i32, i32
  }
  func.func @transform_13(%arg0: i32) -> (i32, i32) {
    %c0_i32 = arith.constant 0 : i32
    %c0_i32_0 = arith.constant 0 : i32
    %c0_i32_1 = arith.constant 0 : i32
    return %c0_i32, %c0_i32_0 : i32, i32
  }
}

module attributes {stable_mosaic.version = 11 : i64} {
  func.func @_mm_bias_act_kernel(%arg0: i32, %arg1: memref<98x256xbf16, #tpu.memory_space<vmem>>, %arg2: memref<256x256xbf16, #tpu.memory_space<vmem>>, %arg3: memref<1x256xf32, #tpu.memory_space<vmem>>, %arg4: memref<98x256xbf16, #tpu.memory_space<vmem>>) attributes {dimension_semantics = [#tpu.dimension_semantics<parallel>], iteration_bounds = array<i64: 1>, scalar_prefetch = 0 : i64, scratch_operands = 0 : i64, tpu.core_type = #tpu.core_type<tc>, window_params = [{transform_indices = @transform_0, window_bounds = array<i64: 98, 256>}, {pipeline_mode = #tpu.pipeline_mode<synchronous>, transform_indices = @transform_1, window_bounds = array<i64: 256, 256>}, {pipeline_mode = #tpu.pipeline_mode<synchronous>, transform_indices = @transform_2, window_bounds = array<i64: 1, 256>}, {transform_indices = @transform_3, window_bounds = array<i64: 98, 256>}]} {
    %c0 = arith.constant 0 : index
    %c0_0 = arith.constant 0 : index
    %0 = vector.load %arg1[%c0, %c0_0] : memref<98x256xbf16, #tpu.memory_space<vmem>>, vector<98x256xbf16>
    %c0_1 = arith.constant 0 : index
    %c0_2 = arith.constant 0 : index
    %1 = vector.load %arg2[%c0_1, %c0_2] : memref<256x256xbf16, #tpu.memory_space<vmem>>, vector<256x256xbf16>
    %cst = arith.constant dense<0.000000e+00> : vector<98x256xf32>
    %2 = tpu.matmul %0, %1, %cst {dimension_numbers = #tpu.dot_dimension_numbers<[1], [0], [0], [1], [0, 0, 1, 1], [], []>} : vector<98x256xbf16>, vector<256x256xbf16>, vector<98x256xf32> -> vector<98x256xf32>
    %c0_3 = arith.constant 0 : index
    %c0_4 = arith.constant 0 : index
    %3 = vector.load %arg3[%c0_3, %c0_4] : memref<1x256xf32, #tpu.memory_space<vmem>>, vector<1x256xf32>
    %4 = vector.broadcast %3 : vector<1x256xf32> to vector<98x256xf32>
    %5 = arith.addf %2, %4 : vector<98x256xf32>
    %cst_5 = arith.constant 0.000000e+00 : f32
    %6 = vector.broadcast %cst_5 : f32 to vector<98x256xf32>
    %7 = arith.maximumf %5, %6 : vector<98x256xf32>
    %8 = arith.truncf %7 : vector<98x256xf32> to vector<98x256xbf16>
    %c0_6 = arith.constant 0 : index
    %c0_7 = arith.constant 0 : index
    %9 = vector.load %arg4[%c0_6, %c0_7] : memref<98x256xbf16, #tpu.memory_space<vmem>>, vector<98x256xbf16>
    tpu.vector_store %arg4[%c0_6, %c0_7], %8 {strides = array<i32>} : memref<98x256xbf16, #tpu.memory_space<vmem>>, vector<98x256xbf16>,
    return
  }
  func.func @transform_0(%arg0: i32) -> (i32, i32) {
    %c0_i32 = arith.constant 0 : i32
    %c0_i32_0 = arith.constant 0 : i32
    return %arg0, %c0_i32 : i32, i32
  }
  func.func @transform_1(%arg0: i32) -> (i32, i32) {
    %c0_i32 = arith.constant 0 : i32
    %c0_i32_0 = arith.constant 0 : i32
    %c0_i32_1 = arith.constant 0 : i32
    return %c0_i32, %c0_i32_0 : i32, i32
  }
  func.func @transform_2(%arg0: i32) -> (i32, i32) {
    %c0_i32 = arith.constant 0 : i32
    %c0_i32_0 = arith.constant 0 : i32
    %c0_i32_1 = arith.constant 0 : i32
    return %c0_i32, %c0_i32_0 : i32, i32
  }
  func.func @transform_3(%arg0: i32) -> (i32, i32) {
    %c0_i32 = arith.constant 0 : i32
    %c0_i32_0 = arith.constant 0 : i32
    return %arg0, %c0_i32 : i32, i32
  }
}

module attributes {stable_mosaic.version = 11 : i64} {
  func.func @_deconv2_out_kernel(%arg0: i32, %arg1: memref<392x256xbf16, #tpu.memory_space<vmem>>, %arg2: memref<256x128xbf16, #tpu.memory_space<vmem>>, %arg3: memref<1x128xf32, #tpu.memory_space<vmem>>, %arg4: memref<128x4xbf16, #tpu.memory_space<vmem>>, %arg5: memref<1x4xf32, #tpu.memory_space<vmem>>, %arg6: memref<392x4xf32, #tpu.memory_space<vmem>>) attributes {dimension_semantics = [#tpu.dimension_semantics<parallel>], iteration_bounds = array<i64: 1>, scalar_prefetch = 0 : i64, scratch_operands = 0 : i64, tpu.core_type = #tpu.core_type<tc>, window_params = [{transform_indices = @transform_0, window_bounds = array<i64: 392, 256>}, {pipeline_mode = #tpu.pipeline_mode<synchronous>, transform_indices = @transform_1, window_bounds = array<i64: 256, 128>}, {pipeline_mode = #tpu.pipeline_mode<synchronous>, transform_indices = @transform_2, window_bounds = array<i64: 1, 128>}, {pipeline_mode = #tpu.pipeline_mode<synchronous>, transform_indices = @transform_3, window_bounds = array<i64: 128, 4>}, {pipeline_mode = #tpu.pipeline_mode<synchronous>, transform_indices = @transform_4, window_bounds = array<i64: 1, 4>}, {transform_indices = @transform_5, window_bounds = array<i64: 392, 4>}]} {
    %c0 = arith.constant 0 : index
    %c0_0 = arith.constant 0 : index
    %0 = vector.load %arg1[%c0, %c0_0] : memref<392x256xbf16, #tpu.memory_space<vmem>>, vector<392x256xbf16>
    %c0_1 = arith.constant 0 : index
    %c0_2 = arith.constant 0 : index
    %1 = vector.load %arg2[%c0_1, %c0_2] : memref<256x128xbf16, #tpu.memory_space<vmem>>, vector<256x128xbf16>
    %cst = arith.constant dense<0.000000e+00> : vector<392x128xf32>
    %2 = tpu.matmul %0, %1, %cst {dimension_numbers = #tpu.dot_dimension_numbers<[1], [0], [0], [1], [0, 0, 1, 1], [], []>} : vector<392x256xbf16>, vector<256x128xbf16>, vector<392x128xf32> -> vector<392x128xf32>
    %c0_3 = arith.constant 0 : index
    %c0_4 = arith.constant 0 : index
    %3 = vector.load %arg3[%c0_3, %c0_4] : memref<1x128xf32, #tpu.memory_space<vmem>>, vector<1x128xf32>
    %4 = vector.broadcast %3 : vector<1x128xf32> to vector<392x128xf32>
    %5 = arith.addf %2, %4 : vector<392x128xf32>
    %cst_5 = arith.constant 0.000000e+00 : f32
    %6 = vector.broadcast %cst_5 : f32 to vector<392x128xf32>
    %7 = arith.maximumf %5, %6 : vector<392x128xf32>
    %8 = arith.truncf %7 : vector<392x128xf32> to vector<392x128xbf16>
    %c0_6 = arith.constant 0 : index
    %c0_7 = arith.constant 0 : index
    %9 = vector.load %arg4[%c0_6, %c0_7] : memref<128x4xbf16, #tpu.memory_space<vmem>>, vector<128x4xbf16>
    %cst_8 = arith.constant dense<0.000000e+00> : vector<392x4xf32>
    %10 = tpu.matmul %8, %9, %cst_8 {dimension_numbers = #tpu.dot_dimension_numbers<[1], [0], [0], [1], [0, 0, 1, 1], [], []>} : vector<392x128xbf16>, vector<128x4xbf16>, vector<392x4xf32> -> vector<392x4xf32>
    %c0_9 = arith.constant 0 : index
    %c0_10 = arith.constant 0 : index
    %11 = vector.load %arg5[%c0_9, %c0_10] : memref<1x4xf32, #tpu.memory_space<vmem>>, vector<1x4xf32>
    %12 = vector.broadcast %11 : vector<1x4xf32> to vector<392x4xf32>
    %13 = arith.addf %10, %12 : vector<392x4xf32>
    %cst_11 = arith.constant 0.000000e+00 : f32
    %14 = vector.broadcast %cst_11 : f32 to vector<392x4xf32>
    %15 = arith.subf %14, %13 : vector<392x4xf32>
    %16 = math.exp %15 : vector<392x4xf32>
    %cst_12 = arith.constant 1.000000e+00 : f32
    %17 = vector.broadcast %cst_12 : f32 to vector<392x4xf32>
    %18 = arith.addf %17, %16 : vector<392x4xf32>
    %19 = tpu.reciprocal %18 {approx = true} : vector<392x4xf32> -> vector<392x4xf32>
    %c0_13 = arith.constant 0 : index
    %c0_14 = arith.constant 0 : index
    %20 = vector.load %arg6[%c0_13, %c0_14] : memref<392x4xf32, #tpu.memory_space<vmem>>, vector<392x4xf32>
    tpu.vector_store %arg6[%c0_13, %c0_14], %19 {strides = array<i32>} : memref<392x4xf32, #tpu.memory_space<vmem>>, vector<392x4xf32>,
    return
  }
  func.func @transform_0(%arg0: i32) -> (i32, i32) {
    %c0_i32 = arith.constant 0 : i32
    %c0_i32_0 = arith.constant 0 : i32
    return %arg0, %c0_i32 : i32, i32
  }
  func.func @transform_1(%arg0: i32) -> (i32, i32) {
    %c0_i32 = arith.constant 0 : i32
    %c0_i32_0 = arith.constant 0 : i32
    %c0_i32_1 = arith.constant 0 : i32
    return %c0_i32, %c0_i32_0 : i32, i32
  }
  func.func @transform_2(%arg0: i32) -> (i32, i32) {
    %c0_i32 = arith.constant 0 : i32
    %c0_i32_0 = arith.constant 0 : i32
    %c0_i32_1 = arith.constant 0 : i32
    return %c0_i32, %c0_i32_0 : i32, i32
  }
  func.func @transform_3(%arg0: i32) -> (i32, i32) {
    %c0_i32 = arith.constant 0 : i32
    %c0_i32_0 = arith.constant 0 : i32
    %c0_i32_1 = arith.constant 0 : i32
    return %c0_i32, %c0_i32_0 : i32, i32
  }
  func.func @transform_4(%arg0: i32) -> (i32, i32) {
    %c0_i32 = arith.constant 0 : i32
    %c0_i32_0 = arith.constant 0 : i32
    %c0_i32_1 = arith.constant 0 : i32
    return %c0_i32, %c0_i32_0 : i32, i32
  }
  func.func @transform_5(%arg0: i32) -> (i32, i32) {
    %c0_i32 = arith.constant 0 : i32
    %c0_i32_0 = arith.constant 0 : i32
    return %arg0, %c0_i32 : i32, i32
  }
}

</mosaic_0001>

<bundles_post_ra>
// kernel: cvae_forward.5
= control target key start
LH: loop header
LB: loop body
LE: loop exit
PB: predicated region body
PF: predicated region fallthrough
CT: control target
= control target key end

     0   :  { %vm277_vm0 = vcmask 1043456   ;;  %vm278_vm1 = vcmask 1044480   ;;  %v1125_v0 = vmov 0.0   ;;  %v1126_v2 = vmov 65535   ;;  %s1553_s1 = inlined_call_operand.vmem [shape: bf16[9,32], index: 1, kind: input, shape index: {}]   ;;  %s1554_s0 = inlined_call_operand.vmem [shape: bf16[392,9], index: 0, kind: input, shape index: {}]   ;;  %s1555_s2 = inlined_call_operand.vmem [shape: f32[1,32], index: 2, kind: input, shape index: {}]   ;;  %s1556_s3 = inlined_call_operand.vmem [shape: bf16[392,32], index: 3, kind: output, shape index: {}]  }
   0x1   :  { %992 = vmatprep.subr.bf16.mxu0 %v1125_v0  ;;  %v1099_v1 = vld [vmem:[%s1553_s1] sm:$0x1f]   ;;  %1094 = vmatprep.subr.bf16.mxu1 %v1125_v0  ;;  %v279_v3 = vsel %vm277_vm0, 4294967295, %v1126_v2  ;;  %vm1127_vm2 = vmmov 0   ;;  %v1101_v7 = vld [vmem:[%s1554_s0 + $0x68] sm:$0xff]   ;;  %vm201_vm3 = vcmask 72704  }
   0x2   :  { %v280_v4 = vsel %vm278_vm1, %v279_v3, 0  ;;  %994 = vmatprep.mubr.msk.bf16.mxu0 %vm1127_vm2, %v1125_v0  ;;  %v1100_v5 = vld [vmem:[%s1554_s0] sm:$0xff]   ;;  %1046 = vmatprep.mubr.msk.bf16.mxu1 %vm1127_vm2, %v1125_v0  ;;  %v1102_v8 = vld [vmem:[%s1554_s0 + $0x8] sm:$0xff]   ;;  %v1103_v9 = vld [vmem:[%s1554_s0 + $0x70] sm:$0xff]   ;;  %vm762_vm4 = vcmask 257024  }
   0x3   :  { %v282_v6 = vand.u32 %v1099_v1, %v280_v4  ;;  %v1104_v10 = vld [vmem:[%s1554_s0 + $0x10] sm:$0xff]   ;;  %v1105_v11 = vld [vmem:[%s1554_s0 + $0x78] sm:$0xff]   ;;  %v1107_v13 = vld [vmem:[%s1554_s0 + $0x80] sm:$0xff]  }
   0x4   :  { %v1106_v12 = vld [vmem:[%s1554_s0 + $0x18] sm:$0xff]   ;;  %v1108_v14 = vld [vmem:[%s1554_s0 + $0x20] sm:$0xff]   ;;  %v1109_v15 = vld [vmem:[%s1554_s0 + $0x88] sm:$0xff]  }
   0x5   :  { %993 = vmatpush3.bf16.msra.mxu0 %v282_v6  ;;  %1095 = vmatpush3.bf16.msra.mxu1 %v282_v6  ;;  %v1110_v16 = vld [vmem:[%s1554_s0 + $0x28] sm:$0xff]   ;;  %v1111_v17 = vld [vmem:[%s1554_s0 + $0x90] sm:$0xff]   ;;  %v1113_v19 = vld [vmem:[%s1554_s0 + $0x98] sm:$0xff]  }
   0x6   :  { %v1112_v18 = vld [vmem:[%s1554_s0 + $0x30] sm:$0xff]   ;;  %v1114_v20 = vld [vmem:[%s1554_s0 + $0x38] sm:$0xff]   ;;  %v1115_v21 = vld [vmem:[%s1554_s0 + $0xa0] sm:$0xff]  }
   0x7   :  { %v1116_v22 = vld [vmem:[%s1554_s0 + $0x40] sm:$0xff]   ;;  %v1117_v23 = vld [vmem:[%s1554_s0 + $0xa8] sm:$0xff]   ;;  %v1119_v25 = vld [vmem:[%s1554_s0 + $0xb0] sm:$0xff]  }
   0x8   :  { %995 = vmatmul.mubr.msk.bf16.vlgmr.msra.gmra.mxu0 %vm201_vm3, %v1100_v5  ;;  %1047 = vmatmul.mubr.msk.bf16.vlgmr.msra.gmra.mxu1 %vm201_vm3, %v1101_v7  ;;  %v1118_v24 = vld [vmem:[%s1554_s0 + $0x48] sm:$0xff]   ;;  %v1120_v26 = vld [vmem:[%s1554_s0 + $0x50] sm:$0xff]   ;;  %v1121_v27 = vld [vmem:[%s1554_s0 + $0xb8] sm:$0xff]  }
   0x9   :  { %998 = vmatprep.mubr.msk.bf16.mxu0 %vm1127_vm2, %v1125_v0  ;;  %1050 = vmatprep.mubr.msk.bf16.mxu1 %vm1127_vm2, %v1125_v0  ;;  %v1122_v28 = vld [vmem:[%s1554_s0 + $0x58] sm:$0xff]   ;;  %v1123_v29 = vld [vmem:[%s1554_s0 + $0xc0] ss:$0 sps:$4 sm:$0xff]  }
   0xa   :  { %v1124_v30 = vld [vmem:[%s1554_s0 + $0x60] sm:$0xff]  }
   0xb   :  { %v1306_v31 = vld [vmem:[%s1555_s2] ss:$0 sm:$0xff] }
  0x10   :  { %999 = vmatmul.mubr.msk.bf16.gmra.mxu0 %vm201_vm3, %v1102_v8  ;;  %1051 = vmatmul.mubr.msk.bf16.gmra.mxu1 %vm201_vm3, %v1103_v9 }
  0x11   :  { %1002 = vmatprep.mubr.msk.bf16.mxu0 %vm1127_vm2, %v1125_v0  ;;  %1054 = vmatprep.mubr.msk.bf16.mxu1 %vm1127_vm2, %v1125_v0 }
  0x18   :  { %1003 = vmatmul.mubr.msk.bf16.gmra.mxu0 %vm201_vm3, %v1104_v10  ;;  %1055 = vmatmul.mubr.msk.bf16.gmra.mxu1 %vm201_vm3, %v1105_v11 }
  0x19   :  { %1006 = vmatprep.mubr.msk.bf16.mxu0 %vm1127_vm2, %v1125_v0  ;;  %1058 = vmatprep.mubr.msk.bf16.mxu1 %vm1127_vm2, %v1125_v0 }
  0x20   :  { %1007 = vmatmul.mubr.msk.bf16.gmra.mxu0 %vm201_vm3, %v1106_v12  ;;  %1059 = vmatmul.mubr.msk.bf16.gmra.mxu1 %vm201_vm3, %v1107_v13 }
  0x21   :  { %1010 = vmatprep.mubr.msk.bf16.mxu0 %vm1127_vm2, %v1125_v0  ;;  %1062 = vmatprep.mubr.msk.bf16.mxu1 %vm1127_vm2, %v1125_v0 }
  0x28   :  { %1011 = vmatmul.mubr.msk.bf16.gmra.mxu0 %vm201_vm3, %v1108_v14  ;;  %1063 = vmatmul.mubr.msk.bf16.gmra.mxu1 %vm201_vm3, %v1109_v15 }
  0x29   :  { %1014 = vmatprep.mubr.msk.bf16.mxu0 %vm1127_vm2, %v1125_v0  ;;  %1066 = vmatprep.mubr.msk.bf16.mxu1 %vm1127_vm2, %v1125_v0 }
  0x30   :  { %1015 = vmatmul.mubr.msk.bf16.gmra.mxu0 %vm201_vm3, %v1110_v16  ;;  %1067 = vmatmul.mubr.msk.bf16.gmra.mxu1 %vm201_vm3, %v1111_v17 }
  0x31   :  { %1018 = vmatprep.mubr.msk.bf16.mxu0 %vm1127_vm2, %v1125_v0  ;;  %1070 = vmatprep.mubr.msk.bf16.mxu1 %vm1127_vm2, %v1125_v0 }
  0x38   :  { %1019 = vmatmul.mubr.msk.bf16.gmra.mxu0 %vm201_vm3, %v1112_v18  ;;  %1071 = vmatmul.mubr.msk.bf16.gmra.mxu1 %vm201_vm3, %v1113_v19 }
  0x39   :  { %1022 = vmatprep.mubr.msk.bf16.mxu0 %vm1127_vm2, %v1125_v0  ;;  %1074 = vmatprep.mubr.msk.bf16.mxu1 %vm1127_vm2, %v1125_v0 }
  0x40   :  { %1023 = vmatmul.mubr.msk.bf16.gmra.mxu0 %vm201_vm3, %v1114_v20  ;;  %1075 = vmatmul.mubr.msk.bf16.gmra.mxu1 %vm201_vm3, %v1115_v21 }
  0x41   :  { %1026 = vmatprep.mubr.msk.bf16.mxu0 %vm1127_vm2, %v1125_v0  ;;  %1078 = vmatprep.mubr.msk.bf16.mxu1 %vm1127_vm2, %v1125_v0 }
  0x48   :  { %1027 = vmatmul.mubr.msk.bf16.gmra.mxu0 %vm201_vm3, %v1116_v22  ;;  %1079 = vmatmul.mubr.msk.bf16.gmra.mxu1 %vm201_vm3, %v1117_v23 }
  0x49   :  { %1030 = vmatprep.mubr.msk.bf16.mxu0 %vm1127_vm2, %v1125_v0  ;;  %1082 = vmatprep.mubr.msk.bf16.mxu1 %vm1127_vm2, %v1125_v0 }
  0x50   :  { %1031 = vmatmul.mubr.msk.bf16.gmra.mxu0 %vm201_vm3, %v1118_v24  ;;  %1083 = vmatmul.mubr.msk.bf16.gmra.mxu1 %vm201_vm3, %v1119_v25 }
  0x51   :  { %1034 = vmatprep.mubr.msk.bf16.mxu0 %vm1127_vm2, %v1125_v0  ;;  %1086 = vmatprep.mubr.msk.bf16.mxu1 %vm1127_vm2, %v1125_v0 }
  0x58   :  { %1035 = vmatmul.mubr.msk.bf16.gmra.mxu0 %vm201_vm3, %v1120_v26  ;;  %1087 = vmatmul.mubr.msk.bf16.gmra.mxu1 %vm201_vm3, %v1121_v27 }
  0x59   :  { %1038 = vmatprep.mubr.msk.bf16.mxu0 %vm1127_vm2, %v1125_v0  ;;  %1090 = vmatprep.mubr.msk.bf16.mxu1 %vm1127_vm2, %v1125_v0 }
  0x60   :  { %1039 = vmatmul.mubr.msk.bf16.gmra.mxu0 %vm201_vm3, %v1122_v28  ;;  %1091 = vmatmul.mubr.msk.bf16.gmra.mxu1 %vm201_vm3, %v1123_v29 }
  0x61   :  { %1042 = vmatprep.mubr.msk.bf16.mxu0 %vm1127_vm2, %v1125_v0 }
  0x68   :  { %1043 = vmatmul.mubr.msk.bf16.gmra.mxu0 %vm201_vm3, %v1124_v30 }
  0xc8   :  { %v318_v32 = vpop.f32.mrf.mxu0  ;;  %v422_v33 = vpop.f32.mrf.mxu1 }
  0xc9   :  { %v319_v34 = vadd.f32 %v1306_v31, %v318_v32  ;;  %v423_v35 = vadd.f32 %v1306_v31, %v422_v33 }
  0xca   :  { %v996_v36 = vpop.f32.mrf.mxu0  ;;  %v1048_v37 = vpop.f32.mrf.mxu1 }
  0xcb   :  { %v516_v38 = vmax.f32 %v319_v34, 0.0  ;;  %v542_v39 = vmax.f32 %v423_v35, 0.0 }
  0xcc   :  { %v321_v40 = vpop.f32.mrf.mxu0  ;;  %v425_v41 = vpop.f32.mrf.mxu1 }
  0xcd   :  { %v917_v42 = vpack.c.bf16 %v516_v38, %v516_v38  ;;  %v322_v43 = vadd.f32 %v1306_v31, %v321_v40  ;;  %v943_v44 = vpack.c.bf16 %v542_v39, %v542_v39  ;;  %v426_v45 = vadd.f32 %v1306_v31, %v425_v41 }
  0xce   :  { %v997_v46 = vpop.f32.mrf.mxu0  ;;  %v1049_v47 = vpop.f32.mrf.mxu1 }
  0xcf   :  { %763 = vst.msk [vmem:[%s1556_s3] sm:$0xf] %vm762_vm4, %v917_v42  ;;  %v517_v48 = vmax.f32 %v322_v43, 0.0  ;;  %789 = vst.msk [vmem:[%s1556_s3 + $0x68] sm:$0xf] %vm762_vm4, %v943_v44  ;;  %v543_v49 = vmax.f32 %v426_v45, 0.0 }
  0xd0   :  { %v326_v50 = vpop.f32.mrf.mxu0  ;;  %v430_v51 = vpop.f32.mrf.mxu1 }
  0xd1   :  { %v918_v52 = vpack.c.bf16 %v517_v48, %v517_v48  ;;  %v327_v53 = vadd.f32 %v1306_v31, %v326_v50  ;;  %v944_v54 = vpack.c.bf16 %v543_v49, %v543_v49  ;;  %v431_v55 = vadd.f32 %v1306_v31, %v430_v51 }
  0xd2   :  { %v1000_v56 = vpop.f32.mrf.mxu0  ;;  %v1052_v57 = vpop.f32.mrf.mxu1 }
  0xd3   :  { %764 = vst.msk [vmem:[%s1556_s3 + $0x4] sm:$0xf] %vm762_vm4, %v918_v52  ;;  %v518_v58 = vmax.f32 %v327_v53, 0.0  ;;  %790 = vst.msk [vmem:[%s1556_s3 + $0x6c] sm:$0xf] %vm762_vm4, %v944_v54  ;;  %v544_v59 = vmax.f32 %v431_v55, 0.0 }
  0xd4   :  { %v329_v60 = vpop.f32.mrf.mxu0  ;;  %v433_v61 = vpop.f32.mrf.mxu1 }
  0xd5   :  { %v919_v62 = vpack.c.bf16 %v518_v58, %v518_v58  ;;  %v330_v63 = vadd.f32 %v1306_v31, %v329_v60  ;;  %v945_v0 = vpack.c.bf16 %v544_v59, %v544_v59  ;;  %v434_v1 = vadd.f32 %v1306_v31, %v433_v61 }
  0xd6   :  { %v1001_v2 = vpop.f32.mrf.mxu0  ;;  %v1053_v3 = vpop.f32.mrf.mxu1 }
  0xd7   :  { %765 = vst.msk [vmem:[%s1556_s3 + $0x8] sm:$0xf] %vm762_vm4, %v919_v62  ;;  %v519_v4 = vmax.f32 %v330_v63, 0.0  ;;  %791 = vst.msk [vmem:[%s1556_s3 + $0x70] sm:$0xf] %vm762_vm4, %v945_v0  ;;  %v545_v5 = vmax.f32 %v434_v1, 0.0 }
  0xd8   :  { %v334_v6 = vpop.f32.mrf.mxu0  ;;  %v438_v7 = vpop.f32.mrf.mxu1 }
  0xd9   :  { %v920_v8 = vpack.c.bf16 %v519_v4, %v519_v4  ;;  %v335_v9 = vadd.f32 %v1306_v31, %v334_v6  ;;  %v946_v10 = vpack.c.bf16 %v545_v5, %v545_v5  ;;  %v439_v11 = vadd.f32 %v1306_v31, %v438_v7 }
  0xda   :  { %v1004_v12 = vpop.f32.mrf.mxu0  ;;  %v1056_v13 = vpop.f32.mrf.mxu1 }
  0xdb   :  { %766 = vst.msk [vmem:[%s1556_s3 + $0xc] sm:$0xf] %vm762_vm4, %v920_v8  ;;  %v520_v14 = vmax.f32 %v335_v9, 0.0  ;;  %792 = vst.msk [vmem:[%s1556_s3 + $0x74] sm:$0xf] %vm762_vm4, %v946_v10  ;;  %v546_v15 = vmax.f32 %v439_v11, 0.0 }
  0xdc   :  { %v337_v16 = vpop.f32.mrf.mxu0  ;;  %v441_v17 = vpop.f32.mrf.mxu1 }
  0xdd   :  { %v921_v18 = vpack.c.bf16 %v520_v14, %v520_v14  ;;  %v338_v19 = vadd.f32 %v1306_v31, %v337_v16  ;;  %v947_v20 = vpack.c.bf16 %v546_v15, %v546_v15  ;;  %v442_v21 = vadd.f32 %v1306_v31, %v441_v17 }
  0xde   :  { %v1005_v22 = vpop.f32.mrf.mxu0  ;;  %v1057_v23 = vpop.f32.mrf.mxu1 }
  0xdf   :  { %767 = vst.msk [vmem:[%s1556_s3 + $0x10] sm:$0xf] %vm762_vm4, %v921_v18  ;;  %v521_v24 = vmax.f32 %v338_v19, 0.0  ;;  %793 = vst.msk [vmem:[%s1556_s3 + $0x78] sm:$0xf] %vm762_vm4, %v947_v20  ;;  %v547_v25 = vmax.f32 %v442_v21, 0.0 }
  0xe0   :  { %v342_v26 = vpop.f32.mrf.mxu0  ;;  %v446_v27 = vpop.f32.mrf.mxu1 }
  0xe1   :  { %v922_v28 = vpack.c.bf16 %v521_v24, %v521_v24  ;;  %v343_v29 = vadd.f32 %v1306_v31, %v342_v26  ;;  %v948_v30 = vpack.c.bf16 %v547_v25, %v547_v25  ;;  %v447_v32 = vadd.f32 %v1306_v31, %v446_v27 }
  0xe2   :  { %v1008_v33 = vpop.f32.mrf.mxu0  ;;  %v1060_v34 = vpop.f32.mrf.mxu1 }
  0xe3   :  { %768 = vst.msk [vmem:[%s1556_s3 + $0x14] sm:$0xf] %vm762_vm4, %v922_v28  ;;  %v522_v35 = vmax.f32 %v343_v29, 0.0  ;;  %794 = vst.msk [vmem:[%s1556_s3 + $0x7c] sm:$0xf] %vm762_vm4, %v948_v30  ;;  %v548_v36 = vmax.f32 %v447_v32, 0.0 }
  0xe4   :  { %v345_v37 = vpop.f32.mrf.mxu0  ;;  %v449_v38 = vpop.f32.mrf.mxu1 }
  0xe5   :  { %v923_v39 = vpack.c.bf16 %v522_v35, %v522_v35  ;;  %v346_v40 = vadd.f32 %v1306_v31, %v345_v37  ;;  %v949_v41 = vpack.c.bf16 %v548_v36, %v548_v36  ;;  %v450_v42 = vadd.f32 %v1306_v31, %v449_v38 }
  0xe6   :  { %v1009_v43 = vpop.f32.mrf.mxu0  ;;  %v1061_v44 = vpop.f32.mrf.mxu1 }
  0xe7   :  { %769 = vst.msk [vmem:[%s1556_s3 + $0x18] sm:$0xf] %vm762_vm4, %v923_v39  ;;  %v523_v45 = vmax.f32 %v346_v40, 0.0  ;;  %795 = vst.msk [vmem:[%s1556_s3 + $0x80] sm:$0xf] %vm762_vm4, %v949_v41  ;;  %v549_v46 = vmax.f32 %v450_v42, 0.0 }
  0xe8   :  { %v350_v47 = vpop.f32.mrf.mxu0  ;;  %v454_v48 = vpop.f32.mrf.mxu1 }
  0xe9   :  { %v924_v49 = vpack.c.bf16 %v523_v45, %v523_v45  ;;  %v351_v50 = vadd.f32 %v1306_v31, %v350_v47  ;;  %v950_v51 = vpack.c.bf16 %v549_v46, %v549_v46  ;;  %v455_v52 = vadd.f32 %v1306_v31, %v454_v48 }
  0xea   :  { %v1012_v53 = vpop.f32.mrf.mxu0  ;;  %v1064_v54 = vpop.f32.mrf.mxu1 }
  0xeb   :  { %770 = vst.msk [vmem:[%s1556_s3 + $0x1c] sm:$0xf] %vm762_vm4, %v924_v49  ;;  %v524_v55 = vmax.f32 %v351_v50, 0.0  ;;  %796 = vst.msk [vmem:[%s1556_s3 + $0x84] sm:$0xf] %vm762_vm4, %v950_v51  ;;  %v550_v56 = vmax.f32 %v455_v52, 0.0 }
  0xec   :  { %v353_v57 = vpop.f32.mrf.mxu0  ;;  %v457_v58 = vpop.f32.mrf.mxu1 }
  0xed   :  { %v925_v59 = vpack.c.bf16 %v524_v55, %v524_v55  ;;  %v354_v60 = vadd.f32 %v1306_v31, %v353_v57  ;;  %v951_v61 = vpack.c.bf16 %v550_v56, %v550_v56  ;;  %v458_v62 = vadd.f32 %v1306_v31, %v457_v58 }
  0xee   :  { %v1013_v63 = vpop.f32.mrf.mxu0  ;;  %v1065_v0 = vpop.f32.mrf.mxu1 }
  0xef   :  { %771 = vst.msk [vmem:[%s1556_s3 + $0x20] sm:$0xf] %vm762_vm4, %v925_v59  ;;  %v525_v1 = vmax.f32 %v354_v60, 0.0  ;;  %797 = vst.msk [vmem:[%s1556_s3 + $0x88] sm:$0xf] %vm762_vm4, %v951_v61  ;;  %v551_v2 = vmax.f32 %v458_v62, 0.0 }
  0xf0   :  { %v358_v3 = vpop.f32.mrf.mxu0  ;;  %v462_v4 = vpop.f32.mrf.mxu1 }
  0xf1   :  { %v926_v5 = vpack.c.bf16 %v525_v1, %v525_v1  ;;  %v359_v6 = vadd.f32 %v1306_v31, %v358_v3  ;;  %v952_v7 = vpack.c.bf16 %v551_v2, %v551_v2  ;;  %v463_v8 = vadd.f32 %v1306_v31, %v462_v4 }
  0xf2   :  { %v1016_v9 = vpop.f32.mrf.mxu0  ;;  %v1068_v10 = vpop.f32.mrf.mxu1 }
  0xf3   :  { %772 = vst.msk [vmem:[%s1556_s3 + $0x24] sm:$0xf] %vm762_vm4, %v926_v5  ;;  %v526_v11 = vmax.f32 %v359_v6, 0.0  ;;  %798 = vst.msk [vmem:[%s1556_s3 + $0x8c] sm:$0xf] %vm762_vm4, %v952_v7  ;;  %v552_v12 = vmax.f32 %v463_v8, 0.0 }
  0xf4   :  { %v361_v13 = vpop.f32.mrf.mxu0  ;;  %v465_v14 = vpop.f32.mrf.mxu1 }
  0xf5   :  { %v927_v15 = vpack.c.bf16 %v526_v11, %v526_v11  ;;  %v362_v16 = vadd.f32 %v1306_v31, %v361_v13  ;;  %v953_v17 = vpack.c.bf16 %v552_v12, %v552_v12  ;;  %v466_v18 = vadd.f32 %v1306_v31, %v465_v14 }
  0xf6   :  { %v1017_v19 = vpop.f32.mrf.mxu0  ;;  %v1069_v20 = vpop.f32.mrf.mxu1 }
  0xf7   :  { %773 = vst.msk [vmem:[%s1556_s3 + $0x28] sm:$0xf] %vm762_vm4, %v927_v15  ;;  %v527_v21 = vmax.f32 %v362_v16, 0.0  ;;  %799 = vst.msk [vmem:[%s1556_s3 + $0x90] sm:$0xf] %vm762_vm4, %v953_v17  ;;  %v553_v22 = vmax.f32 %v466_v18, 0.0 }
  0xf8   :  { %v366_v23 = vpop.f32.mrf.mxu0  ;;  %v470_v24 = vpop.f32.mrf.mxu1 }
  0xf9   :  { %v928_v25 = vpack.c.bf16 %v527_v21, %v527_v21  ;;  %v367_v26 = vadd.f32 %v1306_v31, %v366_v23  ;;  %v954_v27 = vpack.c.bf16 %v553_v22, %v553_v22  ;;  %v471_v28 = vadd.f32 %v1306_v31, %v470_v24 }
  0xfa   :  { %v1020_v29 = vpop.f32.mrf.mxu0  ;;  %v1072_v30 = vpop.f32.mrf.mxu1 }
  0xfb   :  { %774 = vst.msk [vmem:[%s1556_s3 + $0x2c] sm:$0xf] %vm762_vm4, %v928_v25  ;;  %v528_v32 = vmax.f32 %v367_v26, 0.0  ;;  %800 = vst.msk [vmem:[%s1556_s3 + $0x94] sm:$0xf] %vm762_vm4, %v954_v27  ;;  %v554_v33 = vmax.f32 %v471_v28, 0.0 }
  0xfc   :  { %v369_v34 = vpop.f32.mrf.mxu0  ;;  %v473_v35 = vpop.f32.mrf.mxu1 }
  0xfd   :  { %v929_v36 = vpack.c.bf16 %v528_v32, %v528_v32  ;;  %v370_v37 = vadd.f32 %v1306_v31, %v369_v34  ;;  %v955_v38 = vpack.c.bf16 %v554_v33, %v554_v33  ;;  %v474_v39 = vadd.f32 %v1306_v31, %v473_v35 }
  0xfe   :  { %v1021_v40 = vpop.f32.mrf.mxu0  ;;  %v1073_v41 = vpop.f32.mrf.mxu1 }
  0xff   :  { %775 = vst.msk [vmem:[%s1556_s3 + $0x30] sm:$0xf] %vm762_vm4, %v929_v36  ;;  %v529_v42 = vmax.f32 %v370_v37, 0.0  ;;  %801 = vst.msk [vmem:[%s1556_s3 + $0x98] sm:$0xf] %vm762_vm4, %v955_v38  ;;  %v555_v43 = vmax.f32 %v474_v39, 0.0 }
 0x100   :  { %v374_v44 = vpop.f32.mrf.mxu0  ;;  %v478_v45 = vpop.f32.mrf.mxu1 }
 0x101   :  { %v930_v46 = vpack.c.bf16 %v529_v42, %v529_v42  ;;  %v375_v47 = vadd.f32 %v1306_v31, %v374_v44  ;;  %v956_v48 = vpack.c.bf16 %v555_v43, %v555_v43  ;;  %v479_v49 = vadd.f32 %v1306_v31, %v478_v45 }
 0x102   :  { %v1024_v50 = vpop.f32.mrf.mxu0  ;;  %v1076_v51 = vpop.f32.mrf.mxu1 }
 0x103   :  { %776 = vst.msk [vmem:[%s1556_s3 + $0x34] sm:$0xf] %vm762_vm4, %v930_v46  ;;  %v530_v52 = vmax.f32 %v375_v47, 0.0  ;;  %802 = vst.msk [vmem:[%s1556_s3 + $0x9c] sm:$0xf] %vm762_vm4, %v956_v48  ;;  %v556_v53 = vmax.f32 %v479_v49, 0.0 }
 0x104   :  { %v377_v54 = vpop.f32.mrf.mxu0  ;;  %v481_v55 = vpop.f32.mrf.mxu1 }
 0x105   :  { %v931_v56 = vpack.c.bf16 %v530_v52, %v530_v52  ;;  %v378_v57 = vadd.f32 %v1306_v31, %v377_v54  ;;  %v957_v58 = vpack.c.bf16 %v556_v53, %v556_v53  ;;  %v482_v59 = vadd.f32 %v1306_v31, %v481_v55 }
 0x106   :  { %v1025_v60 = vpop.f32.mrf.mxu0  ;;  %v1077_v61 = vpop.f32.mrf.mxu1 }
 0x107   :  { %777 = vst.msk [vmem:[%s1556_s3 + $0x38] sm:$0xf] %vm762_vm4, %v931_v56  ;;  %v531_v62 = vmax.f32 %v378_v57, 0.0  ;;  %803 = vst.msk [vmem:[%s1556_s3 + $0xa0] sm:$0xf] %vm762_vm4, %v957_v58  ;;  %v557_v63 = vmax.f32 %v482_v59, 0.0 }
 0x108   :  { %v382_v0 = vpop.f32.mrf.mxu0  ;;  %v486_v1 = vpop.f32.mrf.mxu1 }
 0x109   :  { %v932_v2 = vpack.c.bf16 %v531_v62, %v531_v62  ;;  %v383_v3 = vadd.f32 %v1306_v31, %v382_v0  ;;  %v958_v4 = vpack.c.bf16 %v557_v63, %v557_v63  ;;  %v487_v5 = vadd.f32 %v1306_v31, %v486_v1 }
 0x10a   :  { %v1028_v6 = vpop.f32.mrf.mxu0  ;;  %v1080_v7 = vpop.f32.mrf.mxu1 }
 0x10b   :  { %778 = vst.msk [vmem:[%s1556_s3 + $0x3c] sm:$0xf] %vm762_vm4, %v932_v2  ;;  %v532_v8 = vmax.f32 %v383_v3, 0.0  ;;  %804 = vst.msk [vmem:[%s1556_s3 + $0xa4] sm:$0xf] %vm762_vm4, %v958_v4  ;;  %v558_v9 = vmax.f32 %v487_v5, 0.0 }
 0x10c   :  { %v385_v10 = vpop.f32.mrf.mxu0  ;;  %v489_v11 = vpop.f32.mrf.mxu1 }
 0x10d   :  { %v933_v12 = vpack.c.bf16 %v532_v8, %v532_v8  ;;  %v386_v13 = vadd.f32 %v1306_v31, %v385_v10  ;;  %v959_v14 = vpack.c.bf16 %v558_v9, %v558_v9  ;;  %v490_v15 = vadd.f32 %v1306_v31, %v489_v11 }
 0x10e   :  { %v1029_v16 = vpop.f32.mrf.mxu0  ;;  %v1081_v17 = vpop.f32.mrf.mxu1 }
 0x10f   :  { %779 = vst.msk [vmem:[%s1556_s3 + $0x40] sm:$0xf] %vm762_vm4, %v933_v12  ;;  %v533_v18 = vmax.f32 %v386_v13, 0.0  ;;  %805 = vst.msk [vmem:[%s1556_s3 + $0xa8] sm:$0xf] %vm762_vm4, %v959_v14  ;;  %v559_v19 = vmax.f32 %v490_v15, 0.0 }
 0x110   :  { %v390_v20 = vpop.f32.mrf.mxu0  ;;  %v494_v21 = vpop.f32.mrf.mxu1 }
 0x111   :  { %v934_v22 = vpack.c.bf16 %v533_v18, %v533_v18  ;;  %v391_v23 = vadd.f32 %v1306_v31, %v390_v20  ;;  %v960_v24 = vpack.c.bf16 %v559_v19, %v559_v19  ;;  %v495_v25 = vadd.f32 %v1306_v31, %v494_v21 }
 0x112   :  { %v1032_v26 = vpop.f32.mrf.mxu0  ;;  %v1084_v27 = vpop.f32.mrf.mxu1 }
 0x113   :  { %780 = vst.msk [vmem:[%s1556_s3 + $0x44] sm:$0xf] %vm762_vm4, %v934_v22  ;;  %v534_v28 = vmax.f32 %v391_v23, 0.0  ;;  %806 = vst.msk [vmem:[%s1556_s3 + $0xac] sm:$0xf] %vm762_vm4, %v960_v24  ;;  %v560_v29 = vmax.f32 %v495_v25, 0.0 }
 0x114   :  { %v393_v30 = vpop.f32.mrf.mxu0  ;;  %v497_v32 = vpop.f32.mrf.mxu1 }
 0x115   :  { %v935_v33 = vpack.c.bf16 %v534_v28, %v534_v28  ;;  %v394_v34 = vadd.f32 %v1306_v31, %v393_v30  ;;  %v961_v35 = vpack.c.bf16 %v560_v29, %v560_v29  ;;  %v498_v36 = vadd.f32 %v1306_v31, %v497_v32 }
 0x116   :  { %v1033_v37 = vpop.f32.mrf.mxu0  ;;  %v1085_v38 = vpop.f32.mrf.mxu1 }
 0x117   :  { %781 = vst.msk [vmem:[%s1556_s3 + $0x48] sm:$0xf] %vm762_vm4, %v935_v33  ;;  %v535_v39 = vmax.f32 %v394_v34, 0.0  ;;  %807 = vst.msk [vmem:[%s1556_s3 + $0xb0] sm:$0xf] %vm762_vm4, %v961_v35  ;;  %v561_v40 = vmax.f32 %v498_v36, 0.0 }
 0x118   :  { %v398_v41 = vpop.f32.mrf.mxu0  ;;  %v502_v42 = vpop.f32.mrf.mxu1 }
 0x119   :  { %v936_v43 = vpack.c.bf16 %v535_v39, %v535_v39  ;;  %v399_v44 = vadd.f32 %v1306_v31, %v398_v41  ;;  %v962_v45 = vpack.c.bf16 %v561_v40, %v561_v40  ;;  %v503_v46 = vadd.f32 %v1306_v31, %v502_v42 }
 0x11a   :  { %v1036_v47 = vpop.f32.mrf.mxu0  ;;  %v1088_v48 = vpop.f32.mrf.mxu1 }
 0x11b   :  { %782 = vst.msk [vmem:[%s1556_s3 + $0x4c] sm:$0xf] %vm762_vm4, %v936_v43  ;;  %v536_v49 = vmax.f32 %v399_v44, 0.0  ;;  %808 = vst.msk [vmem:[%s1556_s3 + $0xb4] sm:$0xf] %vm762_vm4, %v962_v45  ;;  %v562_v50 = vmax.f32 %v503_v46, 0.0 }
 0x11c   :  { %v401_v51 = vpop.f32.mrf.mxu0  ;;  %v505_v52 = vpop.f32.mrf.mxu1 }
 0x11d   :  { %v937_v53 = vpack.c.bf16 %v536_v49, %v536_v49  ;;  %v402_v54 = vadd.f32 %v1306_v31, %v401_v51  ;;  %v963_v55 = vpack.c.bf16 %v562_v50, %v562_v50  ;;  %v506_v56 = vadd.f32 %v1306_v31, %v505_v52 }
 0x11e   :  { %v1037_v57 = vpop.f32.mrf.mxu0  ;;  %v1089_v58 = vpop.f32.mrf.mxu1 }
 0x11f   :  { %783 = vst.msk [vmem:[%s1556_s3 + $0x50] sm:$0xf] %vm762_vm4, %v937_v53  ;;  %v537_v59 = vmax.f32 %v402_v54, 0.0  ;;  %809 = vst.msk [vmem:[%s1556_s3 + $0xb8] sm:$0xf] %vm762_vm4, %v963_v55  ;;  %v563_v60 = vmax.f32 %v506_v56, 0.0 }
 0x120   :  { %v406_v61 = vpop.f32.mrf.mxu0  ;;  %v510_v62 = vpop.f32.mrf.mxu1 }
 0x121   :  { %v938_v63 = vpack.c.bf16 %v537_v59, %v537_v59  ;;  %v407_v0 = vadd.f32 %v1306_v31, %v406_v61  ;;  %v964_v1 = vpack.c.bf16 %v563_v60, %v563_v60  ;;  %v511_v2 = vadd.f32 %v1306_v31, %v510_v62 }
 0x122   :  { %v1040_v3 = vpop.f32.mrf.mxu0  ;;  %v1092_v4 = vpop.f32.mrf.mxu1 }
 0x123   :  { %784 = vst.msk [vmem:[%s1556_s3 + $0x54] sm:$0xf] %vm762_vm4, %v938_v63  ;;  %v538_v5 = vmax.f32 %v407_v0, 0.0  ;;  %810 = vst.msk [vmem:[%s1556_s3 + $0xbc] sm:$0xf] %vm762_vm4, %v964_v1  ;;  %v564_v6 = vmax.f32 %v511_v2, 0.0 }
 0x124   :  { %v409_v7 = vpop.f32.mrf.mxu0  ;;  %v513_v8 = vpop.f32.mrf.mxu1 }
 0x125   :  { %v939_v9 = vpack.c.bf16 %v538_v5, %v538_v5  ;;  %v410_v10 = vadd.f32 %v1306_v31, %v409_v7  ;;  %v965_v11 = vpack.c.bf16 %v564_v6, %v564_v6 }
 0x126   :  { %v1041_v12 = vpop.f32.mrf.mxu0  ;;  %v1093_v13 = vpop.f32.mrf.mxu1 }
 0x127   :  { %785 = vst.msk [vmem:[%s1556_s3 + $0x58] sm:$0xf] %vm762_vm4, %v939_v9  ;;  %v539_v14 = vmax.f32 %v410_v10, 0.0  ;;  %811 = vst.msk [vmem:[%s1556_s3 + $0xc0] sm:$0xf] %vm762_vm4, %v965_v11 }
 0x128   :  { %v414_v15 = vpop.f32.mrf.mxu0 }
 0x129   :  { %v940_v16 = vpack.c.bf16 %v539_v14, %v539_v14  ;;  %v415_v17 = vadd.f32 %v1306_v31, %v414_v15 }
 0x12a   :  { %v1044_v18 = vpop.f32.mrf.mxu0 }
 0x12b   :  { %786 = vst.msk [vmem:[%s1556_s3 + $0x5c] sm:$0xf] %vm762_vm4, %v940_v16  ;;  %v540_v19 = vmax.f32 %v415_v17, 0.0 }
 0x12c   :  { %v417_v20 = vpop.f32.mrf.mxu0 }
 0x12d   :  { %v941_v21 = vpack.c.bf16 %v540_v19, %v540_v19  ;;  %v418_v22 = vadd.f32 %v1306_v31, %v417_v20 }
 0x12e   :  { %v1045_v23 = vpop.f32.mrf.mxu0 }
 0x12f   :  { %787 = vst.msk [vmem:[%s1556_s3 + $0x60] sm:$0xf] %vm762_vm4, %v941_v21  ;;  %v541_v24 = vmax.f32 %v418_v22, 0.0 }
 0x131   :  { %v942_v25 = vpack.c.bf16 %v541_v24, %v541_v24 }
 0x133   :  { %788 = vst.msk [vmem:[%s1556_s3 + $0x64] sm:$0xf] %vm762_vm4, %v942_v25 }

// kernel: cvae_forward.6
= control target key start
LH: loop header
LB: loop body
LE: loop exit
PB: predicated region body
PF: predicated region fallthrough
CT: control target
= control target key end

     0   :  { %v794_v1 = vmov 0.0   ;;  %vm795_vm0 = vmmov 0   ;;  %vm292_vm1 = vcmask 261120   ;;  %vm556_vm2 = vcmask 519168   ;;  %s1022_s1 = inlined_call_operand.vmem [shape: bf16[288,64], index: 1, kind: input, shape index: {}]   ;;  %s1023_s0 = inlined_call_operand.vmem [shape: bf16[98,288], index: 0, kind: input, shape index: {}]   ;;  %s1024_s2 = inlined_call_operand.vmem [shape: f32[1,64], index: 2, kind: input, shape index: {}]   ;;  %s1025_s3 = inlined_call_operand.vmem [shape: bf16[98,64], index: 3, kind: output, shape index: {}]  }
   0x1   :  { %v749_v0 = vld [vmem:[%s1022_s1 + $0x78] sm:$0xff]   ;;  %715 = vmatprep.subr.bf16.mxu1 %v794_v1  ;;  %719 = vmatprep.mubr.msk.bf16.mxu1 %vm795_vm0, %v794_v1  ;;  %v751_v3 = vld [vmem:[%s1022_s1 + $0x70] sm:$0xff]   ;;  %v753_v5 = vld [vmem:[%s1022_s1 + $0x68] sm:$0xff]   ;;  %vm569_vm3 = vcmask 516096  }
   0x2   :  { %v750_v2 = vld [vmem:[%s1022_s1 + $0x38] sm:$0xff]   ;;  %648 = vmatprep.subr.bf16.mxu0 %v749_v0  ;;  %v752_v4 = vld [vmem:[%s1022_s1 + $0x30] sm:$0xff]   ;;  %v754_v6 = vld [vmem:[%s1022_s1 + $0x28] sm:$0xff]  }
   0x3   :  { %649 = vmatpush3.bf16.msra.mxu0 %v750_v2  ;;  %v755_v7 = vld [vmem:[%s1022_s1 + $0x60] sm:$0xff]   ;;  %v757_v9 = vld [vmem:[%s1022_s1 + $0x58] sm:$0xff]   ;;  %v763_v10 = vld [vmem:[%s1022_s1 + $0x88] sm:$0xff]  }
   0x4   :  { %650 = vmatprep.subr.bf16.mxu0 %v751_v3  ;;  %v756_v8 = vld [vmem:[%s1022_s1 + $0x20] sm:$0xff]   ;;  %v758_v11 = vld [vmem:[%s1022_s1 + $0x18] sm:$0xff]   ;;  %v759_v12 = vld [vmem:[%s1022_s1 + $0x50] sm:$0xff]   ;;  %716 = vmatpush3.bf16.msra.mxu1 %v763_v10 }
   0x5   :  { %v760_v13 = vld [vmem:[%s1022_s1 + $0x10] sm:$0xff]   ;;  %717 = vmatprep.subr.bf16.mxu1 %v794_v1  ;;  %v766_v14 = vld [vmem:[%s1022_s1 + $0x80] sm:$0xff]   ;;  %v761_v15 = vld [vmem:[%s1022_s1 + $0x48] sm:$0xff]  }
   0x6   :  { %v769_v16 = vld [vmem:[%s1023_s0 + $0x4] ss:$12 sps:$4 sm:$0xff]   ;;  %v770_v17 = vld [vmem:[%s1023_s0 + $0x8] ss:$12 sps:$4 sm:$0xff]   ;;  %v774_v21 = vld [vmem:[%s1023_s0 + $0x20] ss:$12 sps:$4 sm:$0xff]  }
   0x7   :  { %651 = vmatpush3.bf16.msra.mxu0 %v752_v4  ;;  %346 = vmatprep.mubr.bf16.mxu0 %v769_v16  ;;  %v762_v18 = vld [vmem:[%s1022_s1 + $0x8] sm:$0xff]   ;;  %v764_v19 = vld [vmem:[%s1022_s1 + $0x40] sm:$0xff]   ;;  %v782_v27 = vld [vmem:[%s1023_s0 + $0x50] ss:$12 sps:$4 sm:$0xff]  }
   0x8   :  { %652 = vmatprep.subr.bf16.mxu0 %v753_v5  ;;  %718 = vmatpush3.bf16.msra.mxu1 %v766_v14  ;;  %v765_v20 = vld [vmem:[%s1022_s1] sm:$0xff]   ;;  %v771_v23 = vld [vmem:[%s1023_s0 + $0x1c] ss:$12 sps:$4 sm:$0xff]   ;;  %v779_v29 = vld [vmem:[%s1023_s0 + $0x4c] ss:$12 sps:$4 sm:$0xff]  }
   0x9   :  { %v767_v22 = vld [vmem:[%s1023_s0] ss:$12 sps:$4 sm:$0xff]   ;;  %v778_v24 = vld [vmem:[%s1023_s0 + $0x38] ss:$12 sps:$4 sm:$0xff]   ;;  %v777_v28 = vld [vmem:[%s1023_s0 + $0x30] ss:$12 sps:$4 sm:$0xff]  }
   0xa   :  { %v773_v25 = vld [vmem:[%s1023_s0 + $0x18] ss:$12 sps:$4 sm:$0xff]   ;;  %v775_v26 = vld [vmem:[%s1023_s0 + $0x34] ss:$12 sps:$4 sm:$0xff]   ;;  %v787_v35 = vld [vmem:[%s1023_s0 + $0x7c] ss:$12 sps:$4 sm:$0xff]  }
   0xb   :  { %653 = vmatpush3.bf16.msra.mxu0 %v754_v6  ;;  %720 = vmatmul.mubr.msk.bf16.vlgmr.msra.gmra.mxu1 %vm292_vm1, %v770_v17  ;;  %v786_v30 = vld [vmem:[%s1023_s0 + $0x68] ss:$12 sps:$4 sm:$0xff]   ;;  %v783_v32 = vld [vmem:[%s1023_s0 + $0x64] ss:$12 sps:$4 sm:$0xff]   ;;  %v790_v33 = vld [vmem:[%s1023_s0 + $0x80] ss:$12 sps:$4 sm:$0xff]  }
   0xc   :  { %654 = vmatprep.subr.bf16.mxu0 %v755_v7  ;;  %723 = vmatprep.mubr.msk.bf16.mxu1 %vm795_vm0, %v794_v1  ;;  %v781_v31 = vld [vmem:[%s1023_s0 + $0x48] ss:$12 sps:$4 sm:$0xff]   ;;  %v785_v34 = vld [vmem:[%s1023_s0 + $0x60] ss:$12 sps:$4 sm:$0xff]   ;;  %v789_v38 = vld [vmem:[%s1023_s0 + $0x78] ss:$12 sps:$4 sm:$0xff]  }
   0xd   :  { %v793_v36 = vld [vmem:[%s1023_s0 + $0x98] ss:$0 sps:$4 sm:$0x11]   ;;  %v39_v37 = vld [vmem:[%s1023_s0 + $0x90] sm:$0x11] }
   0xe   :  { %v595_v39 = vcombine.high %v39_v37, %v39_v37  ;;  %v594_v40 = vcombine.low %v39_v37, %v39_v37  ;;  %v956_v49 = vld [vmem:[%s1024_s2] ss:$0 sm:$0xff] }
   0xf   :  { %655 = vmatpush3.bf16.msra.mxu0 %v756_v8 }
  0x10   :  { %656 = vmatprep.subr.bf16.mxu0 %v757_v9 }
  0x13   :  { %657 = vmatpush3.bf16.msra.mxu0 %v758_v11  ;;  %724 = vmatmul.mubr.msk.bf16.gmra.mxu1 %vm292_vm1, %v774_v21 }
  0x14   :  { %658 = vmatprep.subr.bf16.mxu0 %v759_v12  ;;  %727 = vmatprep.mubr.msk.bf16.mxu1 %vm795_vm0, %v794_v1 }
  0x17   :  { %659 = vmatpush3.bf16.msra.mxu0 %v760_v13 }
  0x18   :  { %660 = vmatprep.subr.bf16.mxu0 %v761_v15 }
  0x1b   :  { %661 = vmatpush3.bf16.msra.mxu0 %v762_v18  ;;  %728 = vmatmul.mubr.msk.bf16.gmra.mxu1 %vm292_vm1, %v778_v24 }
  0x1c   :  { %662 = vmatprep.subr.bf16.mxu0 %v764_v19  ;;  %731 = vmatprep.mubr.msk.bf16.mxu1 %vm795_vm0, %v794_v1 }
  0x1f   :  { %663 = vmatpush3.bf16.msra.mxu0 %v765_v20 }
  0x22   :  { %347 = vmatmul.mubr.bf16.vlgmr.msra.gmra.mxu0 %v767_v22 }
  0x23   :  { %354 = vmatprep.mubr.bf16.mxu0 %v771_v23  ;;  %732 = vmatmul.mubr.msk.bf16.gmra.mxu1 %vm292_vm1, %v782_v27 }
  0x24   :  { %735 = vmatprep.mubr.msk.bf16.mxu1 %vm795_vm0, %v794_v1 }
  0x2a   :  { %355 = vmatmul.mubr.bf16.gmra.mxu0 %v773_v25 }
  0x2b   :  { %362 = vmatprep.mubr.bf16.mxu0 %v775_v26  ;;  %736 = vmatmul.mubr.msk.bf16.gmra.mxu1 %vm292_vm1, %v786_v30 }
  0x2c   :  { %739 = vmatprep.mubr.msk.bf16.mxu1 %vm795_vm0, %v794_v1 }
  0x32   :  { %363 = vmatmul.mubr.bf16.gmra.mxu0 %v777_v28 }
  0x33   :  { %370 = vmatprep.mubr.bf16.mxu0 %v779_v29  ;;  %740 = vmatmul.mubr.msk.bf16.gmra.mxu1 %vm292_vm1, %v790_v33 }
  0x34   :  { %743 = vmatprep.mubr.msk.bf16.mxu1 %vm795_vm0, %v794_v1 }
  0x3a   :  { %371 = vmatmul.mubr.bf16.gmra.mxu0 %v781_v31 }
  0x3b   :  { %378 = vmatprep.mubr.bf16.mxu0 %v783_v32  ;;  %744 = vmatmul.mubr.msk.bf16.gmra.mxu1 %vm292_vm1, %v793_v36 }
  0x42   :  { %379 = vmatmul.mubr.bf16.gmra.mxu0 %v785_v34 }
  0x43   :  { %386 = vmatprep.mubr.bf16.mxu0 %v787_v35 }
  0x4a   :  { %387 = vmatmul.mubr.bf16.gmra.mxu0 %v789_v38 }
  0x4b   :  { %394 = vmatprep.mubr.bf16.mxu0 %v595_v39 }
  0x52   :  { %395 = vmatmul.mubr.bf16.gmra.mxu0 %v594_v40 }
  0xcb   :  { %v436_v41 = vpop.f32.mrf.mxu1 }
  0xcd   :  { %v721_v42 = vpop.f32.mrf.mxu1 }
  0xcf   :  { %v439_v43 = vpop.f32.mrf.mxu1 }
  0xd1   :  { %v722_v44 = vpop.f32.mrf.mxu1 }
  0xd3   :  { %v444_v45 = vpop.f32.mrf.mxu1 }
  0xd5   :  { %v725_v46 = vpop.f32.mrf.mxu1 }
  0xd7   :  { %v447_v48 = vpop.f32.mrf.mxu1 }
  0xd9   :  { %v726_v52 = vpop.f32.mrf.mxu1 }
  0xdb   :  { %v452_v55 = vpop.f32.mrf.mxu1 }
  0xdd   :  { %v729_v59 = vpop.f32.mrf.mxu1 }
  0xdf   :  { %v455_v63 = vpop.f32.mrf.mxu1 }
  0xe1   :  { %v730_v4 = vpop.f32.mrf.mxu1 }
  0xe2   :  { %v664_v47 = vpop.f32.mrf.mxu0 }
  0xe3   :  { %v460_v8 = vpop.f32.mrf.mxu1 }
  0xe4   :  { %v665_v50 = vpop.f32.mrf.mxu0 }
  0xe5   :  { %v666_v51 = vadd.f32 %v665_v50, %v664_v47  ;;  %v733_v13 = vpop.f32.mrf.mxu1 }
  0xe6   :  { %v667_v53 = vpop.f32.mrf.mxu0 }
  0xe7   :  { %v349_v54 = vadd.f32 %v666_v51, %v956_v49  ;;  %v463_v17 = vpop.f32.mrf.mxu1 }
  0xe8   :  { %v668_v56 = vpop.f32.mrf.mxu0 }
  0xe9   :  { %v437_v57 = vadd.f32 %v436_v41, %v349_v54  ;;  %v669_v58 = vadd.f32 %v668_v56, %v667_v53  ;;  %v734_v22 = vpop.f32.mrf.mxu1 }
  0xea   :  { %v670_v60 = vpop.f32.mrf.mxu0 }
  0xeb   :  { %v490_v61 = vmax.f32 %v437_v57, 0.0  ;;  %v352_v62 = vadd.f32 %v669_v58, %v956_v49  ;;  %v468_v26 = vpop.f32.mrf.mxu1 }
  0xec   :  { %v671_v0 = vpop.f32.mrf.mxu0 }
  0xed   :  { %v635_v1 = vpack.c.bf16 %v490_v61, %v490_v61  ;;  %v440_v2 = vadd.f32 %v439_v43, %v352_v62  ;;  %v672_v3 = vadd.f32 %v671_v0, %v670_v60  ;;  %v737_v31 = vpop.f32.mrf.mxu1 }
  0xee   :  { %v673_v5 = vpop.f32.mrf.mxu0 }
  0xef   :  { %557 = vst.msk [vmem:[%s1025_s3] sm:$0xf] %vm556_vm2, %v635_v1  ;;  %v491_v6 = vmax.f32 %v440_v2, 0.0  ;;  %v357_v7 = vadd.f32 %v672_v3, %v956_v49  ;;  %v471_v35 = vpop.f32.mrf.mxu1 }
  0xf0   :  { %v674_v9 = vpop.f32.mrf.mxu0 }
  0xf1   :  { %v636_v10 = vpack.c.bf16 %v491_v6, %v491_v6  ;;  %v445_v11 = vadd.f32 %v444_v45, %v357_v7  ;;  %v675_v12 = vadd.f32 %v674_v9, %v673_v5  ;;  %v738_v40 = vpop.f32.mrf.mxu1 }
  0xf2   :  { %v676_v14 = vpop.f32.mrf.mxu0 }
  0xf3   :  { %558 = vst.msk [vmem:[%s1025_s3 + $0x4] sm:$0xf] %vm556_vm2, %v636_v10  ;;  %v492_v15 = vmax.f32 %v445_v11, 0.0  ;;  %v360_v16 = vadd.f32 %v675_v12, %v956_v49  ;;  %v476_v44 = vpop.f32.mrf.mxu1 }
  0xf4   :  { %v677_v18 = vpop.f32.mrf.mxu0 }
  0xf5   :  { %v637_v19 = vpack.c.bf16 %v492_v15, %v492_v15  ;;  %v448_v20 = vadd.f32 %v447_v48, %v360_v16  ;;  %v678_v21 = vadd.f32 %v677_v18, %v676_v14  ;;  %v741_v50 = vpop.f32.mrf.mxu1 }
  0xf6   :  { %v679_v23 = vpop.f32.mrf.mxu0 }
  0xf7   :  { %559 = vst.msk [vmem:[%s1025_s3 + $0x8] sm:$0xf] %vm556_vm2, %v637_v19  ;;  %v493_v24 = vmax.f32 %v448_v20, 0.0  ;;  %v365_v25 = vadd.f32 %v678_v21, %v956_v49  ;;  %v479_v54 = vpop.f32.mrf.mxu1 }
  0xf8   :  { %v680_v27 = vpop.f32.mrf.mxu0 }
  0xf9   :  { %v638_v28 = vpack.c.bf16 %v493_v24, %v493_v24  ;;  %v453_v29 = vadd.f32 %v452_v55, %v365_v25  ;;  %v681_v30 = vadd.f32 %v680_v27, %v679_v23  ;;  %v742_v59 = vpop.f32.mrf.mxu1 }
  0xfa   :  { %v682_v32 = vpop.f32.mrf.mxu0 }
  0xfb   :  { %560 = vst.msk [vmem:[%s1025_s3 + $0xc] sm:$0xf] %vm556_vm2, %v638_v28  ;;  %v494_v33 = vmax.f32 %v453_v29, 0.0  ;;  %v368_v34 = vadd.f32 %v681_v30, %v956_v49 }
  0xfc   :  { %v683_v36 = vpop.f32.mrf.mxu0 }
  0xfd   :  { %v639_v37 = vpack.c.bf16 %v494_v33, %v494_v33  ;;  %v456_v38 = vadd.f32 %v455_v63, %v368_v34  ;;  %v684_v39 = vadd.f32 %v683_v36, %v682_v32  ;;  %v484_v63 = vpop.f32.mrf.mxu1 }
  0xfe   :  { %v685_v41 = vpop.f32.mrf.mxu0 }
  0xff   :  { %561 = vst.msk [vmem:[%s1025_s3 + $0x10] sm:$0xf] %vm556_vm2, %v639_v37  ;;  %v495_v42 = vmax.f32 %v456_v38, 0.0  ;;  %v373_v43 = vadd.f32 %v684_v39, %v956_v49  ;;  %v745_v4 = vpop.f32.mrf.mxu1 }
 0x100   :  { %v686_v45 = vpop.f32.mrf.mxu0 }
 0x101   :  { %v640_v46 = vpack.c.bf16 %v495_v42, %v495_v42  ;;  %v461_v47 = vadd.f32 %v460_v8, %v373_v43  ;;  %v687_v48 = vadd.f32 %v686_v45, %v685_v41  ;;  %v487_v8 = vpop.f32.mrf.mxu1 }
 0x102   :  { %v688_v51 = vpop.f32.mrf.mxu0 }
 0x103   :  { %562 = vst.msk [vmem:[%s1025_s3 + $0x14] sm:$0xf] %vm556_vm2, %v640_v46  ;;  %v496_v52 = vmax.f32 %v461_v47, 0.0  ;;  %v376_v53 = vadd.f32 %v687_v48, %v956_v49  ;;  %v746_v13 = vpop.f32.mrf.mxu1 }
 0x104   :  { %v689_v55 = vpop.f32.mrf.mxu0 }
 0x105   :  { %v641_v56 = vpack.c.bf16 %v496_v52, %v496_v52  ;;  %v464_v57 = vadd.f32 %v463_v17, %v376_v53  ;;  %v690_v58 = vadd.f32 %v689_v55, %v688_v51 }
 0x106   :  { %v691_v60 = vpop.f32.mrf.mxu0 }
 0x107   :  { %563 = vst.msk [vmem:[%s1025_s3 + $0x18] sm:$0xf] %vm556_vm2, %v641_v56  ;;  %v497_v61 = vmax.f32 %v464_v57, 0.0  ;;  %v381_v62 = vadd.f32 %v690_v58, %v956_v49 }
 0x108   :  { %v692_v0 = vpop.f32.mrf.mxu0 }
 0x109   :  { %v642_v1 = vpack.c.bf16 %v497_v61, %v497_v61  ;;  %v469_v2 = vadd.f32 %v468_v26, %v381_v62  ;;  %v693_v3 = vadd.f32 %v692_v0, %v691_v60 }
 0x10a   :  { %v694_v5 = vpop.f32.mrf.mxu0 }
 0x10b   :  { %564 = vst.msk [vmem:[%s1025_s3 + $0x1c] sm:$0xf] %vm556_vm2, %v642_v1  ;;  %v498_v6 = vmax.f32 %v469_v2, 0.0  ;;  %v384_v7 = vadd.f32 %v693_v3, %v956_v49 }
 0x10c   :  { %v695_v9 = vpop.f32.mrf.mxu0 }
 0x10d   :  { %v643_v10 = vpack.c.bf16 %v498_v6, %v498_v6  ;;  %v472_v11 = vadd.f32 %v471_v35, %v384_v7  ;;  %v696_v12 = vadd.f32 %v695_v9, %v694_v5 }
 0x10e   :  { %v697_v14 = vpop.f32.mrf.mxu0 }
 0x10f   :  { %565 = vst.msk [vmem:[%s1025_s3 + $0x20] sm:$0xf] %vm556_vm2, %v643_v10  ;;  %v499_v15 = vmax.f32 %v472_v11, 0.0  ;;  %v389_v16 = vadd.f32 %v696_v12, %v956_v49 }
 0x110   :  { %v698_v17 = vpop.f32.mrf.mxu0 }
 0x111   :  { %v644_v18 = vpack.c.bf16 %v499_v15, %v499_v15  ;;  %v477_v19 = vadd.f32 %v476_v44, %v389_v16  ;;  %v699_v20 = vadd.f32 %v698_v17, %v697_v14 }
 0x112   :  { %v700_v21 = vpop.f32.mrf.mxu0 }
 0x113   :  { %566 = vst.msk [vmem:[%s1025_s3 + $0x24] sm:$0xf] %vm556_vm2, %v644_v18  ;;  %v500_v22 = vmax.f32 %v477_v19, 0.0  ;;  %v392_v23 = vadd.f32 %v699_v20, %v956_v49 }
 0x114   :  { %v701_v24 = vpop.f32.mrf.mxu0 }
 0x115   :  { %v645_v25 = vpack.c.bf16 %v500_v22, %v500_v22  ;;  %v480_v26 = vadd.f32 %v479_v54, %v392_v23  ;;  %v702_v27 = vadd.f32 %v701_v24, %v700_v21 }
 0x116   :  { %v703_v28 = vpop.f32.mrf.mxu0 }
 0x117   :  { %567 = vst.msk [vmem:[%s1025_s3 + $0x28] sm:$0xf] %vm556_vm2, %v645_v25  ;;  %v501_v29 = vmax.f32 %v480_v26, 0.0  ;;  %v397_v30 = vadd.f32 %v702_v27, %v956_v49 }
 0x118   :  { %v704_v31 = vpop.f32.mrf.mxu0 }
 0x119   :  { %v646_v32 = vpack.c.bf16 %v501_v29, %v501_v29  ;;  %v485_v33 = vadd.f32 %v484_v63, %v397_v30 }
 0x11b   :  { %568 = vst.msk [vmem:[%s1025_s3 + $0x2c] sm:$0xf] %vm556_vm2, %v646_v32  ;;  %v502_v34 = vmax.f32 %v485_v33, 0.0 }
 0x11d   :  { %v647_v35 = vpack.c.bf16 %v502_v34, %v502_v34 }
 0x11f   :  { %570 = vst.msk [vmem:[%s1025_s3 + $0x30] sm:$0x1] %vm569_vm3, %v647_v35 }

// kernel: cvae_forward.7
= control target key start
LH: loop header
LB: loop body
LE: loop exit
PB: predicated region body
PF: predicated region fallthrough
CT: control target
= control target key end

     0   :  { %vm452_vm0 = vcmask 1044480   ;;  %v6052_v0 = vmov 0.0   ;;  %vm6053_vm1 = vmmov 0   ;;  %vm448_vm2 = vcmask 80896   ;;  %s7578_s2 = inlined_call_operand.vmem [shape: bf16[3136,128], index: 2, kind: input, shape index: {}]   ;;  %s7579_s3 = inlined_call_operand.vmem [shape: bf16[10,128], index: 3, kind: input, shape index: {}]   ;;  %s7580_s8 = inlined_call_operand.vmem [shape: bf16[10,128], index: 8, kind: input, shape index: {}]   ;;  %s7581_s1 = inlined_call_operand.vmem [shape: bf16[2,10], index: 1, kind: input, shape index: {}]   ;;  %s7582_s0 = inlined_call_operand.vmem [shape: bf16[2,3136], index: 0, kind: input, shape index: {}]   ;;  %s7583_s5 = inlined_call_operand.vmem [shape: bf16[128,8], index: 5, kind: input, shape index: {}]   ;;  %s7584_s7 = inlined_call_operand.vmem [shape: bf16[8,128], index: 7, kind: input, shape index: {}]   ;;  %s7585_s4 = inlined_call_operand.vmem [shape: f32[1,128], index: 4, kind: input, shape index: {}]   ;;  %s7586_s10 = inlined_call_operand.vmem [shape: bf16[128,3136], index: 10, kind: input, shape index: {}]   ;;  %s7587_s6 = inlined_call_operand.vmem [shape: f32[1,8], index: 6, kind: input, shape index: {}]   ;;  %s7588_s12 = inlined_call_operand.vmem [shape: f32[2,8], index: 12, kind: output, shape index: {0}]   ;;  %s7589_s9 = inlined_call_operand.vmem [shape: f32[1,128], index: 9, kind: input, shape index: {}]   ;;  %s7590_s11 = inlined_call_operand.vmem [shape: f32[1,3136], index: 11, kind: input, shape index: {}]   ;;  %s7591_s13 = inlined_call_operand.vmem [shape: bf16[2,3136], index: 13, kind: output, shape index: {1}]  }
   0x1   :  { %5472 = vmatprep.subr.bf16.mxu0 %v6052_v0  ;;  %v5546_v1 = vld [vmem:[%s7578_s2 + $0x78] sm:$0xff]   ;;  %5474 = vmatprep.mubr.msk.bf16.mxu0 %vm6053_vm1, %v6052_v0  ;;  %v5547_v2 = vld [vmem:[%s7579_s3] sm:$0x1f]   ;;  %v5550_v8 = vld [vmem:[%s7578_s2 + $0x70] sm:$0xff]   ;;  %v504_v33 = vlaneseq  ;;  %v6054_v38 = vmov 1966171168  }
   0x2   :  { %5181 = vmatprep.subr.bf16.mxu1 %v5546_v1  ;;  %v5548_v3 = vld [vmem:[%s7580_s8] sm:$0x1f]   ;;  %v454_v4 = vsel %vm452_vm0, %v5547_v2, 0  ;;  %v5549_v5 = vld [vmem:[%s7578_s2 + $0x38] sm:$0xff]   ;;  %v5552_v10 = vld [vmem:[%s7578_s2 + $0x30] sm:$0xff]   ;;  %v502_v39 = vunpack.c.l.s4 %v6054_v38  ;;  %vm1861_vm3 = vcmask 523264  }
   0x3   :  { %5473 = vmatpush3.bf16.msra.mxu0 %v454_v4  ;;  %v6141_v6 = vsel %vm452_vm0, %v5548_v3, 0  ;;  %v44_v7 = vld [vmem:[%s7581_s1] sm:$0x1]  ;;  %5182 = vmatpush3.bf16.msra.mxu1 %v5549_v5  ;;  %v5551_v9 = vld [vmem:[%s7578_s2 + $0xf8] sm:$0xff]   ;;  %v5554_v12 = vld [vmem:[%s7578_s2 + $0x68] sm:$0xff]   ;;  %v6234_v40 = vshrl.u32 %v504_v33, 7 }
   0x4   :  { %5183 = vmatprep.subr.bf16.mxu1 %v5550_v8  ;;  %5203 = vmatprep.subr.bf16.mxu0 %v5551_v9  ;;  %v5553_v11 = vld [vmem:[%s7578_s2 + $0xb8] sm:$0xff]   ;;  %v5555_v13 = vld [vmem:[%s7578_s2 + $0xf0] sm:$0xff]   ;;  %v5556_v14 = vld [vmem:[%s7578_s2 + $0x28] sm:$0xff]   ;;  %v503_v44 = vunpack.c.0.s8 %v502_v39  ;;  %vm2564_vm4 = vcmask 1043456   ;;  %vm2506_vm5 = vcmask 58368   ;;  %vm2560_vm6 = vcmask 64512  }
   0x5   :  { %v5557_v15 = vld [vmem:[%s7578_s2 + $0xb0] sm:$0xff]   ;;  %v5558_v16 = vld [vmem:[%s7578_s2 + $0x60] sm:$0xff]   ;;  %v5559_v17 = vld [vmem:[%s7578_s2 + $0xe8] sm:$0xff]   ;;  %vm4742_vm7 = vcmask 516096  }
   0x6   :  { %5475 = vmatmul.mubr.msk.bf16.vlgmr.msra.gmra.mxu0 %vm448_vm2, %v44_v7  ;;  %v5560_v18 = vld [vmem:[%s7578_s2 + $0x20] sm:$0xff]   ;;  %v5561_v19 = vld [vmem:[%s7578_s2 + $0xa8] sm:$0xff]   ;;  %v5562_v20 = vld [vmem:[%s7578_s2 + $0x58] sm:$0xff]   ;;  %v6246_v46 = vsub.s32 %v503_v44, %v6234_v40 }
   0x7   :  { %5184 = vmatpush3.bf16.msra.mxu1 %v5552_v10  ;;  %5204 = vmatpush3.bf16.msra.mxu0 %v5553_v11  ;;  %v5563_v21 = vld [vmem:[%s7578_s2 + $0xe0] sm:$0xff]   ;;  %v5564_v22 = vld [vmem:[%s7578_s2 + $0x18] sm:$0xff]   ;;  %v5566_v24 = vld [vmem:[%s7578_s2 + $0x50] sm:$0xff]  }
   0x8   :  { %5185 = vmatprep.subr.bf16.mxu1 %v5554_v12  ;;  %5205 = vmatprep.subr.bf16.mxu0 %v5555_v13  ;;  %v5565_v23 = vld [vmem:[%s7578_s2 + $0xa0] sm:$0xff]   ;;  %v5567_v25 = vld [vmem:[%s7578_s2 + $0xd8] sm:$0xff]   ;;  %v5568_v26 = vld [vmem:[%s7578_s2 + $0x10] sm:$0xff]  }
   0x9   :  { %v5569_v27 = vld [vmem:[%s7578_s2 + $0x98] sm:$0xff]   ;;  %v5570_v28 = vld [vmem:[%s7578_s2 + $0x48] sm:$0xff]   ;;  %v5571_v29 = vld [vmem:[%s7578_s2 + $0xd0] sm:$0xff]  }
   0xa   :  { %v5572_v30 = vld [vmem:[%s7578_s2 + $0x8] sm:$0xff]   ;;  %v5573_v31 = vld [vmem:[%s7578_s2 + $0x90] sm:$0xff]   ;;  %v5574_v32 = vld [vmem:[%s7578_s2 + $0x40] sm:$0xff]  }
   0xb   :  { %5186 = vmatpush3.bf16.msra.mxu1 %v5556_v14  ;;  %5206 = vmatpush3.bf16.msra.mxu0 %v5557_v15  ;;  %v5575_v34 = vld [vmem:[%s7578_s2 + $0xc8] sm:$0xff]   ;;  %v5576_v35 = vld [vmem:[%s7578_s2] sm:$0xff]   ;;  %v5580_v42 = vld [vmem:[%s7578_s2 + $0x178] sm:$0xff]  }
   0xc   :  { %5187 = vmatprep.subr.bf16.mxu1 %v5558_v16  ;;  %5207 = vmatprep.subr.bf16.mxu0 %v5559_v17  ;;  %v5577_v36 = vld [vmem:[%s7578_s2 + $0x88] sm:$0xff]   ;;  %v45_v37 = vld [vmem:[%s7582_s0] sm:$0xff]  ;;  %v5584_v47 = vld [vmem:[%s7578_s2 + $0x1f8] sm:$0xff]  }
   0xd   :  { %v5579_v41 = vld [vmem:[%s7578_s2 + $0xc0] sm:$0xff]   ;;  %v500_v43 = vcombine.high %v45_v37, %v45_v37  ;;  %v507_v48 = vrot.slane %v45_v37, %v6246_v46  ;;  %v5582_v54 = vld [vmem:[%s7578_s2 + $0x138] sm:$0xff]   ;;  %v5583_v56 = vld [vmem:[%s7578_s2 + $0x170] sm:$0xff]  }
   0xe   :  { %v5581_v45 = vld [vmem:[%s7578_s2 + $0x80] sm:$0xff]   ;;  %v5586_v59 = vld [vmem:[%s7578_s2 + $0x1b8] sm:$0xff]   ;;  %v5588_v60 = vld [vmem:[%s7578_s2 + $0x1f0] sm:$0xff]  }
   0xf   :  { %5188 = vmatpush3.bf16.msra.mxu1 %v5560_v18  ;;  %5208 = vmatpush3.bf16.msra.mxu0 %v5561_v19  ;;  %v6253_v49 = vrot.slane %v500_v43, %v6246_v46  ;;  %v515_v50 = vcombine.high %v507_v48, %v507_v48  ;;  %v523_v52 = vrot.slane %v507_v48, %v6246_v46  ;;  %v5585_v62 = vld [vmem:[%s7578_s2 + $0x130] sm:$0xff]   ;;  %v5587_v63 = vld [vmem:[%s7578_s2 + $0x168] sm:$0xff]   ;;  %v5591_v4 = vld [vmem:[%s7578_s2 + $0x160] sm:$0xff]  }
  0x10   :  { %5189 = vmatprep.subr.bf16.mxu1 %v5562_v20  ;;  %5209 = vmatprep.subr.bf16.mxu0 %v5563_v21  ;;  %v5590_v1 = vld [vmem:[%s7578_s2 + $0x1b0] sm:$0xff]   ;;  %v5592_v2 = vld [vmem:[%s7578_s2 + $0x1e8] sm:$0xff]   ;;  %v5596_v7 = vld [vmem:[%s7578_s2 + $0x1e0] sm:$0xff]  }
  0x11   :  { %v516_v51 = vcombine.high %v6253_v49, %v6253_v49  ;;  %v537_v53 = vrot.slane %v515_v50, %v6246_v46  ;;  %v545_v55 = vcombine.high %v523_v52, %v523_v52  ;;  %v5589_v3 = vld [vmem:[%s7578_s2 + $0x128] sm:$0xff]   ;;  %v5593_v8 = vld [vmem:[%s7578_s2 + $0x120] sm:$0xff]   ;;  %v5595_v9 = vld [vmem:[%s7578_s2 + $0x158] sm:$0xff]  }
  0x12   :  { %v5594_v5 = vld [vmem:[%s7578_s2 + $0x1a8] sm:$0xff]   ;;  %v5598_v10 = vld [vmem:[%s7578_s2 + $0x1a0] sm:$0xff]   ;;  %v5600_v11 = vld [vmem:[%s7578_s2 + $0x1d8] sm:$0xff]  }
  0x13   :  { %5190 = vmatpush3.bf16.msra.mxu1 %v5564_v22  ;;  %5210 = vmatpush3.bf16.msra.mxu0 %v5565_v23  ;;  %v544_v57 = vrot.slane %v516_v51, %v6246_v46  ;;  %v547_v58 = vcombine.high %v537_v53, %v537_v53  ;;  %v5597_v12 = vld [vmem:[%s7578_s2 + $0x118] sm:$0xff]   ;;  %v5599_v13 = vld [vmem:[%s7578_s2 + $0x150] sm:$0xff]   ;;  %v5603_v17 = vld [vmem:[%s7578_s2 + $0x148] sm:$0xff]  }
  0x14   :  { %5191 = vmatprep.subr.bf16.mxu1 %v5566_v24  ;;  %5211 = vmatprep.subr.bf16.mxu0 %v5567_v25  ;;  %v5602_v14 = vld [vmem:[%s7578_s2 + $0x198] sm:$0xff]   ;;  %v5604_v15 = vld [vmem:[%s7578_s2 + $0x1d0] sm:$0xff]   ;;  %v5608_v19 = vld [vmem:[%s7578_s2 + $0x1c8] sm:$0xff]  }
  0x15   :  { %1897 = vmatprep.mubr.bf16.mxu1 %v537_v53  ;;  %v548_v61 = vcombine.high %v544_v57, %v544_v57  ;;  %1937 = vmatprep.mubr.bf16.mxu0 %v547_v58  ;;  %v5601_v16 = vld [vmem:[%s7578_s2 + $0x110] sm:$0xff]   ;;  %v5605_v20 = vld [vmem:[%s7578_s2 + $0x108] sm:$0xff]   ;;  %v5607_v21 = vld [vmem:[%s7578_s2 + $0x140] sm:$0xff]  }
  0x16   :  { %v5606_v18 = vld [vmem:[%s7578_s2 + $0x190] sm:$0xff]   ;;  %v5610_v22 = vld [vmem:[%s7578_s2 + $0x188] sm:$0xff]   ;;  %v5611_v23 = vld [vmem:[%s7578_s2 + $0x1c0] sm:$0xff]  }
  0x17   :  { %5192 = vmatpush3.bf16.msra.mxu1 %v5568_v26  ;;  %5212 = vmatpush3.bf16.msra.mxu0 %v5569_v27  ;;  %v5609_v24 = vld [vmem:[%s7578_s2 + $0x100] sm:$0xff]   ;;  %v5612_v25 = vld [vmem:[%s7578_s2 + $0x278] sm:$0xff]   ;;  %v530_v27 = vrot.slane %v6253_v49, %v6246_v46  ;;  %v5620_v33 = vld [vmem:[%s7578_s2 + $0x2f0] sm:$0xff]  }
  0x18   :  { %5193 = vmatprep.subr.bf16.mxu1 %v5570_v28  ;;  %5213 = vmatprep.subr.bf16.mxu0 %v5571_v29  ;;  %v5613_v26 = vld [vmem:[%s7578_s2 + $0x180] sm:$0xff]   ;;  %v5616_v28 = vld [vmem:[%s7578_s2 + $0x2f8] sm:$0xff]   ;;  %v5624_v37 = vld [vmem:[%s7578_s2 + $0x2e8] sm:$0xff]  }
  0x19   :  { %v5614_v29 = vld [vmem:[%s7578_s2 + $0x238] sm:$0xff]   ;;  %v5621_v38 = vld [vmem:[%s7578_s2 + $0x228] sm:$0xff]   ;;  %v5623_v39 = vld [vmem:[%s7578_s2 + $0x260] sm:$0xff]  }
  0x1a   :  { %v5625_v43 = vld [vmem:[%s7578_s2 + $0x220] sm:$0xff]   ;;  %v5627_v44 = vld [vmem:[%s7578_s2 + $0x258] sm:$0xff]   ;;  %v5631_v49 = vld [vmem:[%s7578_s2 + $0x250] sm:$0xff]  }
  0x1b   :  { %5194 = vmatpush3.bf16.msra.mxu1 %v5572_v30  ;;  %5214 = vmatpush3.bf16.msra.mxu0 %v5573_v31  ;;  %v546_v30 = vcombine.high %v530_v27, %v530_v27  ;;  %v5615_v31 = vld [vmem:[%s7578_s2 + $0x270] sm:$0xff]   ;;  %v5629_v48 = vld [vmem:[%s7578_s2 + $0x218] sm:$0xff]   ;;  %v5635_v53 = vld [vmem:[%s7578_s2 + $0x248] sm:$0xff]  }
  0x1c   :  { %5195 = vmatprep.subr.bf16.mxu1 %v5574_v32  ;;  %5215 = vmatprep.subr.bf16.mxu0 %v5575_v34  ;;  %v5618_v32 = vld [vmem:[%s7578_s2 + $0x2b8] sm:$0xff]   ;;  %v5617_v34 = vld [vmem:[%s7578_s2 + $0x230] sm:$0xff]   ;;  %v5640_v58 = vld [vmem:[%s7578_s2 + $0x2c8] sm:$0xff]  }
  0x1d   :  { %v5634_v50 = vld [vmem:[%s7578_s2 + $0x298] sm:$0xff]   ;;  %v5636_v51 = vld [vmem:[%s7578_s2 + $0x2d0] sm:$0xff]  }
  0x1f   :  { %5196 = vmatpush3.bf16.msra.mxu1 %v5576_v35  ;;  %5216 = vmatpush3.bf16.msra.mxu0 %v5577_v36  ;;  %v5619_v35 = vld [vmem:[%s7578_s2 + $0x268] sm:$0xff]   ;;  %v5622_v36 = vld [vmem:[%s7578_s2 + $0x2b0] sm:$0xff]  }
  0x20   :  { %5217 = vmatprep.subr.bf16.mxu0 %v5579_v41  ;;  %5225 = vmatprep.subr.bf16.mxu1 %v5580_v42  ;;  %v5626_v41 = vld [vmem:[%s7578_s2 + $0x2a8] sm:$0xff]   ;;  %v5628_v42 = vld [vmem:[%s7578_s2 + $0x2e0] sm:$0xff]  }
  0x22   :  { %1898 = vmatmul.mubr.bf16.vlgmr.msra.gmra.mxu1 %v523_v52  ;;  %v5633_v52 = vld [vmem:[%s7578_s2 + $0x210] sm:$0xff]  }
  0x23   :  { %5218 = vmatpush3.bf16.msra.mxu0 %v5581_v45  ;;  %5226 = vmatpush3.bf16.msra.mxu1 %v5582_v54  ;;  %v5630_v45 = vld [vmem:[%s7578_s2 + $0x2a0] sm:$0xff]   ;;  %v46_v54 = vld [vmem:[%s7582_s0 + $0x8] sm:$0xff] }
  0x24   :  { %5247 = vmatprep.subr.bf16.mxu0 %v5584_v47  ;;  %5227 = vmatprep.subr.bf16.mxu1 %v5583_v56  ;;  %v5632_v47 = vld [vmem:[%s7578_s2 + $0x2d8] sm:$0xff]   ;;  %v556_v56 = vrot.slane %v46_v54, %v6246_v46 }
  0x25   :  { %1977 = vmatprep.mubr.bf16.mxu1 %v544_v57  ;;  %v549_v57 = vcombine.high %v46_v54, %v46_v54  ;;  %v5682_v54 = vld [vmem:[%s7578_s2 + $0x430] sm:$0xff]  }
  0x26   :  { %1938 = vmatmul.mubr.bf16.vlgmr.msra.gmra.mxu0 %v545_v55  ;;  %v5638_v55 = vld [vmem:[%s7578_s2 + $0x290] sm:$0xff]  }
  0x27   :  { %5248 = vmatpush3.bf16.msra.mxu0 %v5586_v59  ;;  %2017 = vmatprep.mubr.bf16.mxu0 %v548_v61  ;;  %v5637_v59 = vld [vmem:[%s7578_s2 + $0x208] sm:$0xff]   ;;  %v6438_v61 = vrot.slane %v549_v57, %v6246_v46 }
  0x28   :  { %5249 = vmatprep.subr.bf16.mxu0 %v5588_v60  ;;  %5228 = vmatpush3.bf16.msra.mxu1 %v5585_v62  ;;  %v564_v60 = vcombine.high %v556_v56, %v556_v56  ;;  %v5639_v62 = vld [vmem:[%s7578_s2 + $0x240] sm:$0xff]   ;;  %v5689_v57 = vld [vmem:[%s7578_s2 + $0x4e8] sm:$0xff]  }
  0x29   :  { %5229 = vmatprep.subr.bf16.mxu1 %v5587_v63  ;;  %v5642_v63 = vld [vmem:[%s7578_s2 + $0x288] sm:$0xff]  }
  0x2b   :  { %5250 = vmatpush3.bf16.msra.mxu0 %v5590_v1  ;;  %v586_v1 = vrot.slane %v564_v60, %v6246_v46  ;;  %v5691_v60 = vld [vmem:[%s7578_s2 + $0x4a8] sm:$0xff]  }
  0x2c   :  { %5251 = vmatprep.subr.bf16.mxu0 %v5592_v2  ;;  %5230 = vmatpush3.bf16.msra.mxu1 %v5589_v3  ;;  %v5643_v2 = vld [vmem:[%s7578_s2 + $0x2c0] sm:$0xff]  }
  0x2d   :  { %5231 = vmatprep.subr.bf16.mxu1 %v5591_v4  ;;  %v5641_v3 = vld [vmem:[%s7578_s2 + $0x200] sm:$0xff]   ;;  %v596_v4 = vcombine.high %v586_v1, %v586_v1 }
  0x2f   :  { %5252 = vmatpush3.bf16.msra.mxu0 %v5594_v5  ;;  %v565_v5 = vcombine.high %v6438_v61, %v6438_v61 }
  0x30   :  { %5253 = vmatprep.subr.bf16.mxu0 %v5596_v7  ;;  %5232 = vmatpush3.bf16.msra.mxu1 %v5593_v8  ;;  %v5644_v7 = vld [vmem:[%s7578_s2 + $0x378] sm:$0xff]   ;;  %v5645_v8 = vld [vmem:[%s7578_s2 + $0x280] sm:$0xff]  }
  0x31   :  { %5233 = vmatprep.subr.bf16.mxu1 %v5595_v9  ;;  %v572_v9 = vrot.slane %v556_v56, %v6246_v46  ;;  %v5687_v56 = vld [vmem:[%s7578_s2 + $0x4b0] sm:$0xff]  }
  0x33   :  { %5254 = vmatpush3.bf16.msra.mxu0 %v5598_v10  ;;  %v5648_v10 = vld [vmem:[%s7578_s2 + $0x3f8] sm:$0xff]  }
  0x34   :  { %5255 = vmatprep.subr.bf16.mxu0 %v5600_v11  ;;  %5234 = vmatpush3.bf16.msra.mxu1 %v5597_v12  ;;  %v5646_v11 = vld [vmem:[%s7578_s2 + $0x338] sm:$0xff]   ;;  %v593_v12 = vrot.slane %v565_v5, %v6246_v46  ;;  %v5698_v5 = vld [vmem:[%s7578_s2 + $0x410] sm:$0xff]  }
  0x35   :  { %5235 = vmatprep.subr.bf16.mxu1 %v5599_v13  ;;  %v594_v13 = vcombine.high %v572_v9, %v572_v9 }
  0x37   :  { %5256 = vmatpush3.bf16.msra.mxu0 %v5602_v14  ;;  %v5647_v14 = vld [vmem:[%s7578_s2 + $0x370] sm:$0xff]  }
  0x38   :  { %5257 = vmatprep.subr.bf16.mxu0 %v5604_v15  ;;  %5236 = vmatpush3.bf16.msra.mxu1 %v5601_v16  ;;  %v5650_v15 = vld [vmem:[%s7578_s2 + $0x3b8] sm:$0xff]   ;;  %v597_v16 = vcombine.high %v593_v12, %v593_v12 }
  0x39   :  { %5237 = vmatprep.subr.bf16.mxu1 %v5603_v17  ;;  %v5652_v17 = vld [vmem:[%s7578_s2 + $0x3f0] sm:$0xff]  }
  0x3b   :  { %5258 = vmatpush3.bf16.msra.mxu0 %v5606_v18  ;;  %v5649_v18 = vld [vmem:[%s7578_s2 + $0x330] sm:$0xff]  }
  0x3c   :  { %5259 = vmatprep.subr.bf16.mxu0 %v5608_v19  ;;  %5238 = vmatpush3.bf16.msra.mxu1 %v5605_v20  ;;  %v5651_v19 = vld [vmem:[%s7578_s2 + $0x368] sm:$0xff]   ;;  %v5654_v20 = vld [vmem:[%s7578_s2 + $0x3b0] sm:$0xff]  }
  0x3d   :  { %5239 = vmatprep.subr.bf16.mxu1 %v5607_v21  ;;  %v5656_v21 = vld [vmem:[%s7578_s2 + $0x3e8] sm:$0xff]  }
  0x3f   :  { %5260 = vmatpush3.bf16.msra.mxu0 %v5610_v22  ;;  %v5653_v22 = vld [vmem:[%s7578_s2 + $0x328] sm:$0xff]  }
  0x40   :  { %5261 = vmatprep.subr.bf16.mxu0 %v5611_v23  ;;  %5240 = vmatpush3.bf16.msra.mxu1 %v5609_v24  ;;  %v5655_v23 = vld [vmem:[%s7578_s2 + $0x360] sm:$0xff]   ;;  %v5658_v24 = vld [vmem:[%s7578_s2 + $0x3a8] sm:$0xff]  }
  0x41   :  { %5269 = vmatprep.subr.bf16.mxu1 %v5612_v25  ;;  %v5660_v25 = vld [vmem:[%s7578_s2 + $0x3e0] sm:$0xff]  }
  0x43   :  { %5262 = vmatpush3.bf16.msra.mxu0 %v5613_v26  ;;  %1978 = vmatmul.mubr.bf16.vlgmr.msra.gmra.mxu1 %v530_v27  ;;  %v5657_v26 = vld [vmem:[%s7578_s2 + $0x320] sm:$0xff]   ;;  %v5659_v27 = vld [vmem:[%s7578_s2 + $0x358] sm:$0xff]  }
  0x44   :  { %5291 = vmatprep.subr.bf16.mxu0 %v5616_v28  ;;  %5270 = vmatpush3.bf16.msra.mxu1 %v5614_v29  ;;  %v5662_v28 = vld [vmem:[%s7578_s2 + $0x3a0] sm:$0xff]   ;;  %v5664_v29 = vld [vmem:[%s7578_s2 + $0x3d8] sm:$0xff]  }
  0x45   :  { %5271 = vmatprep.subr.bf16.mxu1 %v5615_v31  ;;  %2057 = vmatprep.mubr.bf16.mxu1 %v586_v1  ;;  %v5663_v31 = vld [vmem:[%s7578_s2 + $0x350] sm:$0xff]   ;;  %v5695_v1 = vld [vmem:[%s7578_s2 + $0x4a0] sm:$0xff]  }
  0x46   :  { %2018 = vmatmul.mubr.bf16.vlgmr.msra.gmra.mxu0 %v546_v30  ;;  %v5661_v30 = vld [vmem:[%s7578_s2 + $0x318] sm:$0xff]  }
  0x47   :  { %5292 = vmatpush3.bf16.msra.mxu0 %v5618_v32  ;;  %2097 = vmatprep.mubr.bf16.mxu0 %v596_v4  ;;  %v5666_v32 = vld [vmem:[%s7578_s2 + $0x398] sm:$0xff]   ;;  %v5696_v4 = vld [vmem:[%s7578_s2 + $0x450] sm:$0xff]  }
  0x48   :  { %5293 = vmatprep.subr.bf16.mxu0 %v5620_v33  ;;  %5272 = vmatpush3.bf16.msra.mxu1 %v5617_v34  ;;  %v5668_v33 = vld [vmem:[%s7578_s2 + $0x3d0] sm:$0xff]  }
  0x49   :  { %5273 = vmatprep.subr.bf16.mxu1 %v5619_v35  ;;  %v5665_v34 = vld [vmem:[%s7578_s2 + $0x310] sm:$0xff]   ;;  %v5667_v35 = vld [vmem:[%s7578_s2 + $0x348] sm:$0xff]  }
  0x4b   :  { %5294 = vmatpush3.bf16.msra.mxu0 %v5622_v36  ;;  %v5670_v36 = vld [vmem:[%s7578_s2 + $0x390] sm:$0xff]  }
  0x4c   :  { %5295 = vmatprep.subr.bf16.mxu0 %v5624_v37  ;;  %5274 = vmatpush3.bf16.msra.mxu1 %v5621_v38  ;;  %v5672_v37 = vld [vmem:[%s7578_s2 + $0x3c8] sm:$0xff]  }
  0x4d   :  { %5275 = vmatprep.subr.bf16.mxu1 %v5623_v39  ;;  %v5669_v38 = vld [vmem:[%s7578_s2 + $0x308] sm:$0xff]   ;;  %v5671_v39 = vld [vmem:[%s7578_s2 + $0x340] sm:$0xff]  }
  0x4f   :  { %5296 = vmatpush3.bf16.msra.mxu0 %v5626_v41  ;;  %v5674_v41 = vld [vmem:[%s7578_s2 + $0x388] sm:$0xff]  }
  0x50   :  { %5297 = vmatprep.subr.bf16.mxu0 %v5628_v42  ;;  %5276 = vmatpush3.bf16.msra.mxu1 %v5625_v43  ;;  %v5676_v42 = vld [vmem:[%s7578_s2 + $0x3c0] sm:$0xff]  }
  0x51   :  { %5277 = vmatprep.subr.bf16.mxu1 %v5627_v44  ;;  %v5673_v43 = vld [vmem:[%s7578_s2 + $0x300] sm:$0xff]   ;;  %v5677_v44 = vld [vmem:[%s7578_s2 + $0x478] sm:$0xff]  }
  0x53   :  { %5298 = vmatpush3.bf16.msra.mxu0 %v5630_v45  ;;  %v5678_v45 = vld [vmem:[%s7578_s2 + $0x380] sm:$0xff]  }
  0x54   :  { %5299 = vmatprep.subr.bf16.mxu0 %v5632_v47  ;;  %5278 = vmatpush3.bf16.msra.mxu1 %v5629_v48  ;;  %v579_v47 = vrot.slane %v6438_v61, %v6246_v46  ;;  %v5681_v48 = vld [vmem:[%s7578_s2 + $0x4f8] sm:$0xff]   ;;  %v5693_v61 = vld [vmem:[%s7578_s2 + $0x4e0] sm:$0xff]  }
  0x55   :  { %5279 = vmatprep.subr.bf16.mxu1 %v5631_v49  ;;  %v5679_v49 = vld [vmem:[%s7578_s2 + $0x438] sm:$0xff]  }
  0x57   :  { %5300 = vmatpush3.bf16.msra.mxu0 %v5634_v50  ;;  %v595_v50 = vcombine.high %v579_v47, %v579_v47 }
  0x58   :  { %5301 = vmatprep.subr.bf16.mxu0 %v5636_v51  ;;  %5280 = vmatpush3.bf16.msra.mxu1 %v5633_v52  ;;  %v5680_v51 = vld [vmem:[%s7578_s2 + $0x470] sm:$0xff]   ;;  %v5683_v52 = vld [vmem:[%s7578_s2 + $0x4b8] sm:$0xff]  }
  0x59   :  { %5281 = vmatprep.subr.bf16.mxu1 %v5635_v53  ;;  %v5685_v53 = vld [vmem:[%s7578_s2 + $0x4f0] sm:$0xff]  }
  0x5b   :  { %5302 = vmatpush3.bf16.msra.mxu0 %v5638_v55  ;;  %v5684_v55 = vld [vmem:[%s7578_s2 + $0x468] sm:$0xff]  }
  0x5c   :  { %5303 = vmatprep.subr.bf16.mxu0 %v5640_v58  ;;  %5282 = vmatpush3.bf16.msra.mxu1 %v5637_v59  ;;  %v5686_v58 = vld [vmem:[%s7578_s2 + $0x428] sm:$0xff]   ;;  %v5688_v59 = vld [vmem:[%s7578_s2 + $0x460] sm:$0xff]  }
  0x5d   :  { %5283 = vmatprep.subr.bf16.mxu1 %v5639_v62  ;;  %v5690_v62 = vld [vmem:[%s7578_s2 + $0x420] sm:$0xff]  }
  0x5f   :  { %5304 = vmatpush3.bf16.msra.mxu0 %v5642_v63  ;;  %v5692_v63 = vld [vmem:[%s7578_s2 + $0x458] sm:$0xff]  }
  0x60   :  { %5305 = vmatprep.subr.bf16.mxu0 %v5643_v2  ;;  %5284 = vmatpush3.bf16.msra.mxu1 %v5641_v3  ;;  %v5697_v2 = vld [vmem:[%s7578_s2 + $0x4d8] sm:$0xff]  }
  0x61   :  { %5313 = vmatprep.subr.bf16.mxu1 %v5644_v7  ;;  %v5694_v3 = vld [vmem:[%s7578_s2 + $0x418] sm:$0xff]  }
  0x62   :  { %v5699_v7 = vld [vmem:[%s7578_s2 + $0x498] sm:$0xff]  }
  0x63   :  { %5306 = vmatpush3.bf16.msra.mxu0 %v5645_v8  ;;  %2058 = vmatmul.mubr.bf16.vlgmr.msra.gmra.mxu1 %v572_v9  ;;  %v5701_v8 = vld [vmem:[%s7578_s2 + $0x4d0] sm:$0xff]   ;;  %v5700_v9 = vld [vmem:[%s7578_s2 + $0x448] sm:$0xff]  }
  0x64   :  { %5335 = vmatprep.subr.bf16.mxu0 %v5648_v10  ;;  %5314 = vmatpush3.bf16.msra.mxu1 %v5646_v11  ;;  %v5703_v10 = vld [vmem:[%s7578_s2 + $0x490] sm:$0xff]  }
  0x65   :  { %2137 = vmatprep.mubr.bf16.mxu1 %v593_v12  ;;  %5315 = vmatprep.subr.bf16.mxu1 %v5647_v14  ;;  %v47_v11 = vld [vmem:[%s7582_s0 + $0x10] sm:$0xff]  ;;  %v5705_v12 = vld [vmem:[%s7578_s2 + $0x4c8] sm:$0xff]  }
  0x66   :  { %2098 = vmatmul.mubr.bf16.vlgmr.msra.gmra.mxu0 %v594_v13  ;;  %v605_v13 = vrot.slane %v47_v11, %v6246_v46  ;;  %v598_v14 = vcombine.high %v47_v11, %v47_v11  ;;  %v5746_v11 = vld [vmem:[%s7578_s2 + $0x600] sm:$0xff]  }
  0x67   :  { %5336 = vmatpush3.bf16.msra.mxu0 %v5650_v15  ;;  %2177 = vmatprep.mubr.bf16.mxu0 %v597_v16  ;;  %v5702_v15 = vld [vmem:[%s7578_s2 + $0x408] sm:$0xff]   ;;  %v5704_v16 = vld [vmem:[%s7578_s2 + $0x440] sm:$0xff]  }
  0x68   :  { %5337 = vmatprep.subr.bf16.mxu0 %v5652_v17  ;;  %5316 = vmatpush3.bf16.msra.mxu1 %v5649_v18  ;;  %v613_v17 = vcombine.high %v605_v13, %v605_v13  ;;  %v6647_v18 = vrot.slane %v598_v14, %v6246_v46 }
  0x69   :  { %5317 = vmatprep.subr.bf16.mxu1 %v5651_v19  ;;  %v5707_v19 = vld [vmem:[%s7578_s2 + $0x488] sm:$0xff]  }
  0x6b   :  { %5338 = vmatpush3.bf16.msra.mxu0 %v5654_v20  ;;  %v635_v20 = vrot.slane %v613_v17, %v6246_v46 }
  0x6c   :  { %5339 = vmatprep.subr.bf16.mxu0 %v5656_v21  ;;  %5318 = vmatpush3.bf16.msra.mxu1 %v5653_v22  ;;  %v5708_v21 = vld [vmem:[%s7578_s2 + $0x4c0] sm:$0xff]  }
  0x6d   :  { %5319 = vmatprep.subr.bf16.mxu1 %v5655_v23  ;;  %v5706_v22 = vld [vmem:[%s7578_s2 + $0x400] sm:$0xff]   ;;  %v614_v23 = vcombine.high %v6647_v18, %v6647_v18 }
  0x6f   :  { %5340 = vmatpush3.bf16.msra.mxu0 %v5658_v24  ;;  %v5709_v24 = vld [vmem:[%s7578_s2 + $0x578] sm:$0xff]  }
  0x70   :  { %5341 = vmatprep.subr.bf16.mxu0 %v5660_v25  ;;  %5320 = vmatpush3.bf16.msra.mxu1 %v5657_v26  ;;  %v645_v25 = vcombine.high %v635_v20, %v635_v20  ;;  %v5710_v26 = vld [vmem:[%s7578_s2 + $0x480] sm:$0xff]  }
  0x71   :  { %5321 = vmatprep.subr.bf16.mxu1 %v5659_v27  ;;  %v621_v27 = vrot.slane %v605_v13, %v6246_v46 }
  0x73   :  { %5342 = vmatpush3.bf16.msra.mxu0 %v5662_v28  ;;  %v5713_v28 = vld [vmem:[%s7578_s2 + $0x5f8] sm:$0xff]  }
  0x74   :  { %5343 = vmatprep.subr.bf16.mxu0 %v5664_v29  ;;  %5322 = vmatpush3.bf16.msra.mxu1 %v5661_v30  ;;  %v5711_v29 = vld [vmem:[%s7578_s2 + $0x538] sm:$0xff]   ;;  %v642_v30 = vrot.slane %v614_v23, %v6246_v46 }
  0x75   :  { %5323 = vmatprep.subr.bf16.mxu1 %v5663_v31  ;;  %v643_v31 = vcombine.high %v621_v27, %v621_v27 }
  0x77   :  { %5344 = vmatpush3.bf16.msra.mxu0 %v5666_v32  ;;  %v5712_v32 = vld [vmem:[%s7578_s2 + $0x570] sm:$0xff]  }
  0x78   :  { %5345 = vmatprep.subr.bf16.mxu0 %v5668_v33  ;;  %5324 = vmatpush3.bf16.msra.mxu1 %v5665_v34  ;;  %v5715_v33 = vld [vmem:[%s7578_s2 + $0x5b8] sm:$0xff]   ;;  %v646_v34 = vcombine.high %v642_v30, %v642_v30 }
  0x79   :  { %5325 = vmatprep.subr.bf16.mxu1 %v5667_v35  ;;  %v5717_v35 = vld [vmem:[%s7578_s2 + $0x5f0] sm:$0xff]  }
  0x7b   :  { %5346 = vmatpush3.bf16.msra.mxu0 %v5670_v36  ;;  %v5714_v36 = vld [vmem:[%s7578_s2 + $0x530] sm:$0xff]  }
  0x7c   :  { %5347 = vmatprep.subr.bf16.mxu0 %v5672_v37  ;;  %5326 = vmatpush3.bf16.msra.mxu1 %v5669_v38  ;;  %v5716_v37 = vld [vmem:[%s7578_s2 + $0x568] sm:$0xff]   ;;  %v5719_v38 = vld [vmem:[%s7578_s2 + $0x5b0] sm:$0xff]  }
  0x7d   :  { %5327 = vmatprep.subr.bf16.mxu1 %v5671_v39  ;;  %v5721_v39 = vld [vmem:[%s7578_s2 + $0x5e8] sm:$0xff]  }
  0x7f   :  { %5348 = vmatpush3.bf16.msra.mxu0 %v5674_v41  ;;  %v5718_v41 = vld [vmem:[%s7578_s2 + $0x528] sm:$0xff]  }
  0x80   :  { %5349 = vmatprep.subr.bf16.mxu0 %v5676_v42  ;;  %5328 = vmatpush3.bf16.msra.mxu1 %v5673_v43  ;;  %v5720_v42 = vld [vmem:[%s7578_s2 + $0x560] sm:$0xff]   ;;  %v5723_v43 = vld [vmem:[%s7578_s2 + $0x5a8] sm:$0xff]  }
  0x81   :  { %5357 = vmatprep.subr.bf16.mxu1 %v5677_v44  ;;  %v5725_v44 = vld [vmem:[%s7578_s2 + $0x5e0] sm:$0xff]  }
  0x83   :  { %5350 = vmatpush3.bf16.msra.mxu0 %v5678_v45  ;;  %2138 = vmatmul.mubr.bf16.vlgmr.msra.gmra.mxu1 %v579_v47  ;;  %v5722_v45 = vld [vmem:[%s7578_s2 + $0x520] sm:$0xff]   ;;  %v5724_v47 = vld [vmem:[%s7578_s2 + $0x558] sm:$0xff]  }
  0x84   :  { %5379 = vmatprep.subr.bf16.mxu0 %v5681_v48  ;;  %5358 = vmatpush3.bf16.msra.mxu1 %v5679_v49  ;;  %v5727_v48 = vld [vmem:[%s7578_s2 + $0x5a0] sm:$0xff]   ;;  %v5729_v49 = vld [vmem:[%s7578_s2 + $0x5d8] sm:$0xff]  }
  0x85   :  { %5359 = vmatprep.subr.bf16.mxu1 %v5680_v51  ;;  %2217 = vmatprep.mubr.bf16.mxu1 %v635_v20  ;;  %v5728_v51 = vld [vmem:[%s7578_s2 + $0x550] sm:$0xff]  }
  0x86   :  { %2178 = vmatmul.mubr.bf16.vlgmr.msra.gmra.mxu0 %v595_v50  ;;  %v5726_v50 = vld [vmem:[%s7578_s2 + $0x518] sm:$0xff]  }
  0x87   :  { %5380 = vmatpush3.bf16.msra.mxu0 %v5683_v52  ;;  %2257 = vmatprep.mubr.bf16.mxu0 %v645_v25  ;;  %v5731_v52 = vld [vmem:[%s7578_s2 + $0x598] sm:$0xff]  }
  0x88   :  { %5381 = vmatprep.subr.bf16.mxu0 %v5685_v53  ;;  %5360 = vmatpush3.bf16.msra.mxu1 %v5682_v54  ;;  %v5733_v53 = vld [vmem:[%s7578_s2 + $0x5d0] sm:$0xff]  }
  0x89   :  { %5361 = vmatprep.subr.bf16.mxu1 %v5684_v55  ;;  %v5730_v54 = vld [vmem:[%s7578_s2 + $0x510] sm:$0xff]   ;;  %v5732_v55 = vld [vmem:[%s7578_s2 + $0x548] sm:$0xff]  }
  0x8b   :  { %5382 = vmatpush3.bf16.msra.mxu0 %v5687_v56  ;;  %v5735_v56 = vld [vmem:[%s7578_s2 + $0x590] sm:$0xff]  }
  0x8c   :  { %5383 = vmatprep.subr.bf16.mxu0 %v5689_v57  ;;  %5362 = vmatpush3.bf16.msra.mxu1 %v5686_v58  ;;  %v5737_v57 = vld [vmem:[%s7578_s2 + $0x5c8] sm:$0xff]  }
  0x8d   :  { %5363 = vmatprep.subr.bf16.mxu1 %v5688_v59  ;;  %v5734_v58 = vld [vmem:[%s7578_s2 + $0x508] sm:$0xff]   ;;  %v5736_v59 = vld [vmem:[%s7578_s2 + $0x540] sm:$0xff]  }
  0x8f   :  { %5384 = vmatpush3.bf16.msra.mxu0 %v5691_v60  ;;  %v5739_v60 = vld [vmem:[%s7578_s2 + $0x588] sm:$0xff]  }
  0x90   :  { %5385 = vmatprep.subr.bf16.mxu0 %v5693_v61  ;;  %5364 = vmatpush3.bf16.msra.mxu1 %v5690_v62  ;;  %v5741_v61 = vld [vmem:[%s7578_s2 + $0x5c0] sm:$0xff]  }
  0x91   :  { %5365 = vmatprep.subr.bf16.mxu1 %v5692_v63  ;;  %v5738_v62 = vld [vmem:[%s7578_s2 + $0x500] sm:$0xff]  }
  0x93   :  { %5386 = vmatpush3.bf16.msra.mxu0 %v5695_v1  ;;  %v5742_v1 = vld [vmem:[%s7578_s2 + $0x580] sm:$0xff]  }
  0x94   :  { %5387 = vmatprep.subr.bf16.mxu0 %v5697_v2  ;;  %5366 = vmatpush3.bf16.msra.mxu1 %v5694_v3  ;;  %v628_v3 = vrot.slane %v6647_v18, %v6246_v46 }
  0x95   :  { %5367 = vmatprep.subr.bf16.mxu1 %v5696_v4 }
  0x97   :  { %5388 = vmatpush3.bf16.msra.mxu0 %v5699_v7  ;;  %v5743_v7 = vld [vmem:[%s7578_s2 + $0x618] sm:$0xff]  }
  0x98   :  { %5389 = vmatprep.subr.bf16.mxu0 %v5701_v8  ;;  %5368 = vmatpush3.bf16.msra.mxu1 %v5698_v5  ;;  %v644_v5 = vcombine.high %v628_v3, %v628_v3 }
  0x99   :  { %5369 = vmatprep.subr.bf16.mxu1 %v5700_v9  ;;  %v5744_v9 = vld [vmem:[%s7578_s2 + $0x610] sm:$0xff]  }
  0x9b   :  { %5390 = vmatpush3.bf16.msra.mxu0 %v5703_v10  ;;  %v6051_v10 = vld [vmem:[%s7581_s1] sm:$0x1] }
  0x9c   :  { %5391 = vmatprep.subr.bf16.mxu0 %v5705_v12  ;;  %5370 = vmatpush3.bf16.msra.mxu1 %v5702_v15  ;;  %v4754_v12 = vld.sshfl [vmem:[%s7582_s0 + $0x18] sm:$0x1 pattern:$0x75316420] }
  0x9d   :  { %5371 = vmatprep.subr.bf16.mxu1 %v5704_v16  ;;  %v660_v13 = vrot.slane %v4754_v12, %v6246_v46 }
  0x9f   :  { %5392 = vmatpush3.bf16.msra.mxu0 %v5707_v19 }
  0xa0   :  { %5393 = vmatprep.subr.bf16.mxu0 %v5708_v21  ;;  %5372 = vmatpush3.bf16.msra.mxu1 %v5706_v22 }
  0xa1   :  { %5401 = vmatprep.subr.bf16.mxu1 %v5709_v24 }
  0xa3   :  { %5394 = vmatpush3.bf16.msra.mxu0 %v5710_v26  ;;  %2218 = vmatmul.mubr.bf16.vlgmr.msra.gmra.mxu1 %v621_v27  ;;  %v5747_v26 = vld [vmem:[%s7583_s5 + $0x38] sm:$0xff]  }
  0xa4   :  { %5423 = vmatprep.subr.bf16.mxu0 %v5713_v28  ;;  %5402 = vmatpush3.bf16.msra.mxu1 %v5711_v29  ;;  %v5748_v28 = vld [vmem:[%s7583_s5 + $0x30] sm:$0xff]  }
  0xa5   :  { %2297 = vmatprep.mubr.bf16.mxu1 %v642_v30  ;;  %5403 = vmatprep.subr.bf16.mxu1 %v5712_v32 }
  0xa6   :  { %2258 = vmatmul.mubr.bf16.vlgmr.msra.gmra.mxu0 %v643_v31 }
  0xa7   :  { %5424 = vmatpush3.bf16.msra.mxu0 %v5715_v33  ;;  %2337 = vmatprep.mubr.bf16.mxu0 %v646_v34  ;;  %v5749_v34 = vld [vmem:[%s7583_s5 + $0x28] sm:$0xff]  }
  0xa8   :  { %5425 = vmatprep.subr.bf16.mxu0 %v5717_v35  ;;  %5404 = vmatpush3.bf16.msra.mxu1 %v5714_v36 }
  0xa9   :  { %5405 = vmatprep.subr.bf16.mxu1 %v5716_v37 }
  0xab   :  { %5426 = vmatpush3.bf16.msra.mxu0 %v5719_v38 }
  0xac   :  { %5427 = vmatprep.subr.bf16.mxu0 %v5721_v39  ;;  %5406 = vmatpush3.bf16.msra.mxu1 %v5718_v41 }
  0xad   :  { %5407 = vmatprep.subr.bf16.mxu1 %v5720_v42  ;;  %v5750_v42 = vld [vmem:[%s7583_s5 + $0x20] sm:$0xff]  }
  0xaf   :  { %5428 = vmatpush3.bf16.msra.mxu0 %v5723_v43  ;;  %v5751_v43 = vld [vmem:[%s7583_s5 + $0x18] sm:$0xff]  }
  0xb0   :  { %5429 = vmatprep.subr.bf16.mxu0 %v5725_v44  ;;  %5408 = vmatpush3.bf16.msra.mxu1 %v5722_v45  ;;  %v5752_v44 = vld [vmem:[%s7583_s5 + $0x10] sm:$0xff]   ;;  %v5753_v45 = vld [vmem:[%s7583_s5 + $0x8] sm:$0xff]  }
  0xb1   :  { %5409 = vmatprep.subr.bf16.mxu1 %v5724_v47  ;;  %v5754_v47 = vld [vmem:[%s7583_s5] sm:$0xff]  }
  0xb3   :  { %5430 = vmatpush3.bf16.msra.mxu0 %v5727_v48  ;;  %v2509_v48 = vld [vmem:[%s7584_s7] sm:$0xf] }
  0xb4   :  { %5431 = vmatprep.subr.bf16.mxu0 %v5729_v49  ;;  %5410 = vmatpush3.bf16.msra.mxu1 %v5726_v50  ;;  %v2566_v49 = vsel %vm2564_vm4, %v2509_v48, 0  ;;  %v5760_v48 = vld [vmem:[%s7586_s10 + $0x584] ss:$100 sps:$4 sm:$0xff]  }
  0xb5   :  { %5411 = vmatprep.subr.bf16.mxu1 %v5728_v51 }
  0xb7   :  { %5432 = vmatpush3.bf16.msra.mxu0 %v5731_v52 }
  0xb8   :  { %5433 = vmatprep.subr.bf16.mxu0 %v5733_v53  ;;  %5412 = vmatpush3.bf16.msra.mxu1 %v5730_v54 }
  0xb9   :  { %5413 = vmatprep.subr.bf16.mxu1 %v5732_v55 }
  0xbb   :  { %5434 = vmatpush3.bf16.msra.mxu0 %v5735_v56 }
  0xbc   :  { %5435 = vmatprep.subr.bf16.mxu0 %v5737_v57  ;;  %5414 = vmatpush3.bf16.msra.mxu1 %v5734_v58 }
  0xbd   :  { %5415 = vmatprep.subr.bf16.mxu1 %v5736_v59 }
  0xbf   :  { %5436 = vmatpush3.bf16.msra.mxu0 %v5739_v60 }
  0xc0   :  { %5437 = vmatprep.subr.bf16.mxu0 %v5741_v61  ;;  %5416 = vmatpush3.bf16.msra.mxu1 %v5738_v62 }
  0xc1   :  { %5510 = vmatprep.subr.bf16.mxu1 %v6052_v0 }
  0xc3   :  { %5438 = vmatpush3.bf16.msra.mxu0 %v5742_v1  ;;  %2298 = vmatmul.mubr.bf16.vlgmr.msra.gmra.mxu1 %v628_v3 }
  0xc4   :  { %5478 = vmatprep.subr.bf16.mxu0 %v6052_v0  ;;  %5511 = vmatpush3.bf16.msra.mxu1 %v6141_v6  ;;  %v5745_v6 = vld [vmem:[%s7578_s2 + $0x608] sm:$0xff]  }
  0xc5   :  { %5512 = vmatprep.mubr.msk.bf16.mxu1 %vm6053_vm1, %v6052_v0  ;;  %5516 = vmatprep.subr.bf16.mxu1 %v6052_v0 }
  0xc6   :  { %v490_v63 = vpop.f32.mrf.mxu0  ;;  %2338 = vmatmul.mubr.bf16.vlgmr.msra.gmra.mxu0 %v644_v5 }
  0xc7   :  { %5479 = vmatpush3.bf16.msra.mxu0 %v5743_v7  ;;  %5486 = vmatprep.mubr.msk.bf16.mxu0 %vm6053_vm1, %v6052_v0 }
  0xc8   :  { %v5476_v2 = vpop.f32.mrf.mxu0  ;;  %5480 = vmatprep.subr.bf16.mxu0 %v6052_v0 }
  0xca   :  { %v493_v4 = vpop.f32.mrf.mxu0 }
  0xcb   :  { %5481 = vmatpush3.bf16.msra.mxu0 %v5744_v9  ;;  %5513 = vmatmul.mubr.msk.bf16.vlgmr.msra.gmra.mxu1 %vm448_vm2, %v6051_v10 }
  0xcc   :  { %v5477_v8 = vpop.f32.mrf.mxu0  ;;  %5482 = vmatprep.subr.bf16.mxu0 %v6052_v0  ;;  %5518 = vmatprep.mubr.msk.bf16.mxu1 %vm6053_vm1, %v6052_v0 }
  0xcd   :  { %5517 = vmatpush3.bf16.msra.mxu1 %v2566_v49  ;;  %v5764_v49 = vld [vmem:[%s7586_s10 + $0x4b8] ss:$100 sps:$4 sm:$0xff]  }
  0xcf   :  { %5483 = vmatpush3.bf16.msra.mxu0 %v5745_v6 }
  0xd0   :  { %5484 = vmatprep.subr.bf16.mxu0 %v6052_v0 }
  0xd3   :  { %5485 = vmatpush3.bf16.msra.mxu0 %v5746_v11 }
  0xd4   :  { %5490 = vmatprep.subr.bf16.mxu0 %v6052_v0 }
  0xd6   :  { %5487 = vmatmul.mubr.msk.bf16.vlgmr.msra.gmra.mxu0 %vm1861_vm3, %v660_v13 }
  0xd7   :  { %5506 = vmatprep.mubr.msk.bf16.mxu0 %vm6053_vm1, %v6052_v0  ;;  %5491 = vmatpush3.bf16.msra.mxu0 %v5747_v26 }
  0xd8   :  { %5492 = vmatprep.subr.bf16.mxu0 %v6052_v0 }
  0xdb   :  { %5493 = vmatpush3.bf16.msra.mxu0 %v5748_v28 }
  0xdc   :  { %5494 = vmatprep.subr.bf16.mxu0 %v6052_v0 }
  0xdf   :  { %5495 = vmatpush3.bf16.msra.mxu0 %v5749_v34 }
  0xe0   :  { %5496 = vmatprep.subr.bf16.mxu0 %v6052_v0 }
  0xe2   :  { %v5197_v14 = vpop.f32.mrf.mxu1 }
  0xe3   :  { %5497 = vmatpush3.bf16.msra.mxu0 %v5750_v42 }
  0xe4   :  { %v5198_v15 = vpop.f32.mrf.mxu1  ;;  %5498 = vmatprep.subr.bf16.mxu0 %v6052_v0 }
  0xe5   :  { %v5199_v17 = vadd.f32 %v5198_v15, %v5197_v14 }
  0xe6   :  { %v5219_v16 = vpop.f32.mrf.mxu0  ;;  %v5200_v19 = vpop.f32.mrf.mxu1 }
  0xe7   :  { %v1900_v20 = vadd.f32 %v5199_v17, %v490_v63  ;;  %5499 = vmatpush3.bf16.msra.mxu0 %v5751_v43 }
  0xe8   :  { %v5220_v18 = vpop.f32.mrf.mxu0  ;;  %v5201_v23 = vpop.f32.mrf.mxu1  ;;  %5500 = vmatprep.subr.bf16.mxu0 %v6052_v0 }
  0xe9   :  { %v5221_v21 = vadd.f32 %v5220_v18, %v5219_v16 }
  0xea   :  { %v5222_v22 = vpop.f32.mrf.mxu0 }
  0xeb   :  { %v1940_v24 = vadd.f32 %v5221_v21, %v1900_v20  ;;  %5501 = vmatpush3.bf16.msra.mxu0 %v5752_v44 }
  0xec   :  { %v5223_v25 = vpop.f32.mrf.mxu0  ;;  %5502 = vmatprep.subr.bf16.mxu0 %v6052_v0 }
  0xef   :  { %5503 = vmatpush3.bf16.msra.mxu0 %v5753_v45  ;;  %v5757_v45 = vld [vmem:[%s7586_s10 + $0x57c] ss:$100 sps:$4 sm:$0xff]  }
  0xf0   :  { %5504 = vmatprep.subr.bf16.mxu0 %v6052_v0  ;;  %3967 = vmatprep.subr.bf16.mxu1 %v5757_v45  ;;  %v5817_v45 = vld [vmem:[%s7586_s10 + $0x3fc] ss:$100 sps:$4 sm:$0xff]  }
  0xf3   :  { %5505 = vmatpush3.bf16.msra.mxu0 %v5754_v47  ;;  %v5758_v47 = vld [vmem:[%s7586_s10 + $0x580] ss:$100 sps:$4 sm:$0xff]  }
  0xf4   :  { %4008 = vmatprep.subr.bf16.mxu0 %v5760_v48  ;;  %v5815_v48 = vld [vmem:[%s7586_s10 + $0x3f8] ss:$100 sps:$4 sm:$0xff]  }
 0x103   :  { %v5241_v27 = vpop.f32.mrf.mxu1 }
 0x105   :  { %v5242_v29 = vpop.f32.mrf.mxu1 }
 0x106   :  { %v5263_v30 = vpop.f32.mrf.mxu0  ;;  %v5243_v31 = vadd.f32 %v5242_v29, %v5241_v27 }
 0x107   :  { %v5244_v33 = vpop.f32.mrf.mxu1 }
 0x108   :  { %v5264_v32 = vpop.f32.mrf.mxu0  ;;  %v1980_v35 = vadd.f32 %v5243_v31, %v1940_v24 }
 0x109   :  { %v5265_v36 = vadd.f32 %v5264_v32, %v5263_v30  ;;  %v5245_v38 = vpop.f32.mrf.mxu1 }
 0x10a   :  { %v5266_v37 = vpop.f32.mrf.mxu0 }
 0x10b   :  { %v2020_v39 = vadd.f32 %v5265_v36, %v1980_v35  ;;  %v4952_v36 = vld [vmem:[%s7585_s4] ss:$0 sm:$0xff] }
 0x10c   :  { %v5267_v41 = vpop.f32.mrf.mxu0 }
 0x123   :  { %v5285_v50 = vpop.f32.mrf.mxu1 }
 0x125   :  { %v5286_v51 = vpop.f32.mrf.mxu1 }
 0x126   :  { %v5307_v52 = vpop.f32.mrf.mxu0  ;;  %v5287_v53 = vadd.f32 %v5286_v51, %v5285_v50  ;;  %v5766_v50 = vld [vmem:[%s7586_s10 + $0x4bc] ss:$100 sps:$4 sm:$0xff]   ;;  %v5772_v51 = vld [vmem:[%s7586_s10 + $0x3f4] ss:$100 sps:$4 sm:$0xff]  }
 0x127   :  { %v5288_v55 = vpop.f32.mrf.mxu1 }
 0x128   :  { %v5308_v54 = vpop.f32.mrf.mxu0  ;;  %v2060_v56 = vadd.f32 %v5287_v53, %v2020_v39  ;;  %v5770_v53 = vld [vmem:[%s7586_s10 + $0x3f0] ss:$100 sps:$4 sm:$0xff]  }
 0x129   :  { %v5309_v57 = vadd.f32 %v5308_v54, %v5307_v52  ;;  %v5289_v59 = vpop.f32.mrf.mxu1  ;;  %v5778_v55 = vld [vmem:[%s7586_s10 + $0x32c] ss:$100 sps:$4 sm:$0xff]  }
 0x12a   :  { %v5310_v58 = vpop.f32.mrf.mxu0  ;;  %v5784_v59 = vld [vmem:[%s7586_s10 + $0x264] ss:$100 sps:$4 sm:$0xff]  }
 0x12b   :  { %v2100_v60 = vadd.f32 %v5309_v57, %v2060_v56  ;;  %v5776_v57 = vld [vmem:[%s7586_s10 + $0x328] ss:$100 sps:$4 sm:$0xff]  }
 0x12c   :  { %v5311_v61 = vpop.f32.mrf.mxu0 }
 0x12d   :  { %v5790_v61 = vld [vmem:[%s7586_s10 + $0x19c] ss:$100 sps:$4 sm:$0xff]  }
 0x143   :  { %v5329_v62 = vpop.f32.mrf.mxu1 }
 0x145   :  { %v5330_v63 = vpop.f32.mrf.mxu1 }
 0x146   :  { %v5351_v1 = vpop.f32.mrf.mxu0  ;;  %v5331_v2 = vadd.f32 %v5330_v63, %v5329_v62  ;;  %v5788_v62 = vld [vmem:[%s7586_s10 + $0x198] ss:$100 sps:$4 sm:$0xff]   ;;  %v4953_v63 = vld [vmem:[%s7587_s6] ss:$0 sm:$0xff] }
 0x147   :  { %v5332_v4 = vpop.f32.mrf.mxu1 }
 0x148   :  { %v5352_v3 = vpop.f32.mrf.mxu0  ;;  %v2140_v5 = vadd.f32 %v5331_v2, %v2100_v60  ;;  %v5782_v60 = vld [vmem:[%s7586_s10 + $0x260] ss:$100 sps:$4 sm:$0xff]   ;;  %v5755_v4 = vld [vmem:[%s7586_s10 + $0x578] ss:$100 sps:$4 sm:$0xff]  }
 0x149   :  { %v5353_v7 = vadd.f32 %v5352_v3, %v5351_v1  ;;  %v5333_v9 = vpop.f32.mrf.mxu1 }
 0x14a   :  { %v5354_v8 = vpop.f32.mrf.mxu0 }
 0x14b   :  { %v2180_v6 = vadd.f32 %v5353_v7, %v2140_v5  ;;  %v5763_v7 = vld [vmem:[%s7586_s10 + $0x4b4] ss:$100 sps:$4 sm:$0xff]  }
 0x14c   :  { %v5355_v10 = vpop.f32.mrf.mxu0 }
 0x14d   :  { %v5769_v10 = vld [vmem:[%s7586_s10 + $0x3ec] ss:$100 sps:$4 sm:$0xff]  }
 0x163   :  { %v5373_v11 = vpop.f32.mrf.mxu1 }
 0x165   :  { %v5374_v12 = vpop.f32.mrf.mxu1 }
 0x166   :  { %v5395_v13 = vpop.f32.mrf.mxu0  ;;  %v5375_v26 = vadd.f32 %v5374_v12, %v5373_v11  ;;  %v5767_v11 = vld [vmem:[%s7586_s10 + $0x3e8] ss:$100 sps:$4 sm:$0xff]  }
 0x167   :  { %v5376_v15 = vpop.f32.mrf.mxu1  ;;  %v5775_v12 = vld [vmem:[%s7586_s10 + $0x324] ss:$100 sps:$4 sm:$0xff]  }
 0x168   :  { %v5396_v14 = vpop.f32.mrf.mxu0  ;;  %v2220_v29 = vadd.f32 %v5375_v26, %v2180_v6  ;;  %v5761_v6 = vld [vmem:[%s7586_s10 + $0x4b0] ss:$100 sps:$4 sm:$0xff]   ;;  %v5779_v15 = vld [vmem:[%s7586_s10 + $0x258] ss:$100 sps:$4 sm:$0xff]  }
 0x169   :  { %v5377_v17 = vpop.f32.mrf.mxu1  ;;  %v5397_v28 = vadd.f32 %v5396_v14, %v5395_v13  ;;  %v5773_v13 = vld [vmem:[%s7586_s10 + $0x320] ss:$100 sps:$4 sm:$0xff]   ;;  %v5805_v26 = vld [vmem:[%s7586_s10 + $0x58c] ss:$100 sps:$4 sm:$0xff]  }
 0x16a   :  { %v5398_v16 = vpop.f32.mrf.mxu0  ;;  %v5781_v14 = vld [vmem:[%s7586_s10 + $0x25c] ss:$100 sps:$4 sm:$0xff]   ;;  %v5785_v17 = vld [vmem:[%s7586_s10 + $0x190] ss:$100 sps:$4 sm:$0xff]  }
 0x16b   :  { %v2260_v31 = vadd.f32 %v5397_v28, %v2220_v29  ;;  %v5787_v16 = vld [vmem:[%s7586_s10 + $0x194] ss:$100 sps:$4 sm:$0xff]  }
 0x16c   :  { %v5399_v18 = vpop.f32.mrf.mxu0  ;;  %v5808_v28 = vld [vmem:[%s7586_s10 + $0x594] ss:$100 sps:$4 sm:$0xff]  }
 0x16d   :  { %v5793_v18 = vld [vmem:[%s7586_s10 + $0xcc] ss:$100 sps:$4 sm:$0xff]  }
 0x183   :  { %v5417_v19 = vpop.f32.mrf.mxu1 }
 0x185   :  { %v5418_v20 = vpop.f32.mrf.mxu1 }
 0x186   :  { %v5439_v21 = vpop.f32.mrf.mxu0  ;;  %v5419_v30 = vadd.f32 %v5418_v20, %v5417_v19  ;;  %v5796_v19 = vld [vmem:[%s7586_s10 + $0xd4] ss:$100 sps:$4 sm:$0xff]   ;;  %v5791_v20 = vld [vmem:[%s7586_s10 + $0xc8] ss:$100 sps:$4 sm:$0xff]  }
 0x187   :  { %v5420_v23 = vpop.f32.mrf.mxu1 }
 0x188   :  { %v5440_v22 = vpop.f32.mrf.mxu0  ;;  %v2300_v33 = vadd.f32 %v5419_v30, %v2260_v31  ;;  %v5802_v23 = vld [vmem:[%s7586_s10 + $0xc] ss:$100 sps:$4 sm:$0xff]   ;;  %v4965_v30 = vld [vmem:[%s7589_s9] ss:$0 sm:$0xff] }
 0x189   :  { %v5421_v25 = vpop.f32.mrf.mxu1  ;;  %v5441_v32 = vadd.f32 %v5440_v22, %v5439_v21  ;;  %v5794_v21 = vld [vmem:[%s7586_s10 + $0xd0] ss:$100 sps:$4 sm:$0xff]   ;;  %v5799_v22 = vld [vmem:[%s7586_s10 + $0x4] ss:$100 sps:$4 sm:$0xff]  }
 0x18a   :  { %v5442_v24 = vpop.f32.mrf.mxu0  ;;  %v5800_v25 = vld [vmem:[%s7586_s10 + $0x8] ss:$100 sps:$4 sm:$0xff]  }
 0x18b   :  { %v2340_v34 = vadd.f32 %v5441_v32, %v2300_v33  ;;  %v6855_v52 = vpop.f32.mrf.mxu1  ;;  %v5797_v24 = vld [vmem:[%s7586_s10] ss:$100 sps:$4 sm:$0xff]  }
 0x18c   :  { %v5443_v27 = vpop.f32.mrf.mxu0 }
 0x18d   :  { %v5514_v54 = vpop.f32.mrf.mxu1  ;;  %v6055_v27 = vmov 0  }
 0x18e   :  { %v5829_v54 = vld [vmem:[%s7586_s10 + $0x26c] ss:$100 sps:$4 sm:$0xff]  }
 0x18f   :  { %v2557_v56 = vpop.f32.mrf.mxu1 }
 0x190   :  { %v5827_v56 = vld [vmem:[%s7586_s10 + $0x268] ss:$100 sps:$4 sm:$0xff]  }
 0x191   :  { %v5515_v58 = vpop.f32.mrf.mxu1 }
 0x192   :  { %v5835_v58 = vld [vmem:[%s7586_s10 + $0x1a4] ss:$100 sps:$4 sm:$0xff]  }
 0x196   :  { %v2379_v35 = vpop.f32.mrf.mxu0 }
 0x197   :  { %v2380_v37 = vadd.f32 %v2379_v35, %v2340_v34 }
 0x198   :  { %v5488_v38 = vpop.f32.mrf.mxu0 }
 0x199   :  { %v2392_v39 = vadd.f32 %v4952_v36, %v2380_v37  ;;  %v5803_v37 = vld [vmem:[%s7586_s10 + $0x588] ss:$100 sps:$4 sm:$0xff]   ;;  %v5806_v38 = vld [vmem:[%s7586_s10 + $0x590] ss:$100 sps:$4 sm:$0xff]  }
 0x19a   :  { %v2382_v41 = vpop.f32.mrf.mxu0 }
 0x19b   :  { %v2393_v42 = vmax.f32 %v2392_v39, 0.0  ;;  %v5811_v41 = vld [vmem:[%s7586_s10 + $0x4c4] ss:$100 sps:$4 sm:$0xff]  }
 0x19c   :  { %v5489_v43 = vpop.f32.mrf.mxu0 }
 0x19d   :  { %v2394_v44 = vpack.c.bf16 %v2393_v42, %v2393_v42  ;;  %v5814_v42 = vld [vmem:[%s7586_s10 + $0x4cc] ss:$100 sps:$4 sm:$0xff]   ;;  %v5809_v43 = vld [vmem:[%s7586_s10 + $0x4c0] ss:$100 sps:$4 sm:$0xff]  }
 0x19f   :  { %5507 = vmatmul.mubr.bf16.vlgmr.msra.gmra.mxu0 %v2394_v44  ;;  %v5812_v44 = vld [vmem:[%s7586_s10 + $0x4c8] ss:$100 sps:$4 sm:$0xff]  }
 0x1a0   :  { %4009 = vmatpush1.bf16.msra.mxu0 %v5758_v47  ;;  %4040 = vmatprep.mubr.bf16.mxu0 %v6055_v27  ;;  %v5820_v47 = vld [vmem:[%s7586_s10 + $0x404] ss:$100 sps:$4 sm:$0xff]  }
 0x1a1   :  { %4010 = vmatprep.subr.bf16.mxu0 %v5766_v50  ;;  %v5823_v50 = vld [vmem:[%s7586_s10 + $0x334] ss:$100 sps:$4 sm:$0xff]  }
 0x1a4   :  { %4011 = vmatpush1.bf16.msra.mxu0 %v5764_v49  ;;  %v5818_v49 = vld [vmem:[%s7586_s10 + $0x400] ss:$100 sps:$4 sm:$0xff]  }
 0x1a5   :  { %4012 = vmatprep.subr.bf16.mxu0 %v5772_v51  ;;  %v5826_v51 = vld [vmem:[%s7586_s10 + $0x33c] ss:$100 sps:$4 sm:$0xff]  }
 0x1a8   :  { %4013 = vmatpush1.bf16.msra.mxu0 %v5770_v53  ;;  %v5824_v53 = vld [vmem:[%s7586_s10 + $0x338] ss:$100 sps:$4 sm:$0xff]  }
 0x1a9   :  { %4014 = vmatprep.subr.bf16.mxu0 %v5778_v55  ;;  %v5832_v55 = vld [vmem:[%s7586_s10 + $0x274] ss:$100 sps:$4 sm:$0xff]  }
 0x1ac   :  { %4015 = vmatpush1.bf16.msra.mxu0 %v5776_v57  ;;  %v5830_v57 = vld [vmem:[%s7586_s10 + $0x270] ss:$100 sps:$4 sm:$0xff]  }
 0x1ad   :  { %4016 = vmatprep.subr.bf16.mxu0 %v5784_v59  ;;  %v5838_v59 = vld [vmem:[%s7586_s10 + $0x1ac] ss:$100 sps:$4 sm:$0xff]  }
 0x1b0   :  { %4017 = vmatpush1.bf16.msra.mxu0 %v5782_v60  ;;  %v5833_v60 = vld [vmem:[%s7586_s10 + $0x1a0] ss:$100 sps:$4 sm:$0xff]  }
 0x1b1   :  { %4018 = vmatprep.subr.bf16.mxu0 %v5790_v61  ;;  %v5836_v61 = vld [vmem:[%s7586_s10 + $0x1a8] ss:$100 sps:$4 sm:$0xff]  }
 0x1b4   :  { %4019 = vmatpush1.bf16.msra.mxu0 %v5788_v62  ;;  %v5841_v62 = vld [vmem:[%s7586_s10 + $0xdc] ss:$100 sps:$4 sm:$0xff]  }
 0x1b5   :  { %4020 = vmatprep.subr.bf16.mxu0 %v5796_v19  ;;  %v5871_v19 = vld [vmem:[%s7586_s10 + $0x344] ss:$100 sps:$4 sm:$0xff]  }
 0x1b8   :  { %4021 = vmatpush1.bf16.msra.mxu0 %v5794_v21  ;;  %v5869_v21 = vld [vmem:[%s7586_s10 + $0x340] ss:$100 sps:$4 sm:$0xff]  }
 0x1b9   :  { %4022 = vmatprep.subr.bf16.mxu0 %v5802_v23  ;;  %v5877_v23 = vld [vmem:[%s7586_s10 + $0x27c] ss:$100 sps:$4 sm:$0xff]  }
 0x1bc   :  { %4023 = vmatpush1.bf16.msra.mxu0 %v5800_v25  ;;  %v5875_v25 = vld [vmem:[%s7586_s10 + $0x278] ss:$100 sps:$4 sm:$0xff]  }
 0x1bd   :  { %4090 = vmatprep.subr.bf16.mxu0 %v5808_v28  ;;  %v5883_v28 = vld [vmem:[%s7586_s10 + $0x1b4] ss:$100 sps:$4 sm:$0xff]  }
 0x25f   :  { %v2500_v1 = vpop.f32.mrf.mxu0 }
 0x260   :  { %v2501_v2 = vadd.f32 %v4953_v63, %v2500_v1  ;;  %v5844_v63 = vld [vmem:[%s7586_s10 + $0xe4] ss:$100 sps:$4 sm:$0xff]   ;;  %v5839_v1 = vld [vmem:[%s7586_s10 + $0xd8] ss:$100 sps:$4 sm:$0xff]  }
 0x261   :  { %v5508_v3 = vpop.f32.mrf.mxu0 }
 0x262   :  { %2507 = vst.msk [vmem:[%s7588_s12] sm:$0x3] %vm2506_vm5, %v2501_v2  ;;  %v2508_v5 = vpack.c.bf16 %v2501_v2, %v2501_v2  ;;  %v5842_v2 = vld [vmem:[%s7586_s10 + $0xe0] ss:$100 sps:$4 sm:$0xff]   ;;  %v5847_v3 = vld [vmem:[%s7586_s10 + $0x14] ss:$100 sps:$4 sm:$0xff]  }
 0x263   :  { %v2503_v8 = vpop.f32.mrf.mxu0 }
 0x264   :  { %5519 = vmatmul.mubr.msk.bf16.vlgmr.msra.gmra.mxu1 %vm2560_vm6, %v2508_v5  ;;  %v5845_v5 = vld [vmem:[%s7586_s10 + $0x10] ss:$100 sps:$4 sm:$0xff]   ;;  %v5853_v8 = vld [vmem:[%s7586_s10 + $0x59c] ss:$100 sps:$4 sm:$0xff]  }
 0x265   :  { %v5509_v9 = vpop.f32.mrf.mxu0  ;;  %3968 = vmatpush1.bf16.msra.mxu1 %v5755_v4  ;;  %3999 = vmatprep.mubr.bf16.mxu1 %v6055_v27  ;;  %v5850_v4 = vld [vmem:[%s7586_s10 + $0x1c] ss:$100 sps:$4 sm:$0xff]  }
 0x266   :  { %3969 = vmatprep.subr.bf16.mxu1 %v5763_v7  ;;  %v5848_v7 = vld [vmem:[%s7586_s10 + $0x18] ss:$100 sps:$4 sm:$0xff]   ;;  %v5856_v9 = vld [vmem:[%s7586_s10 + $0x5a4] ss:$100 sps:$4 sm:$0xff]  }
 0x269   :  { %3970 = vmatpush1.bf16.msra.mxu1 %v5761_v6  ;;  %v5851_v6 = vld [vmem:[%s7586_s10 + $0x598] ss:$100 sps:$4 sm:$0xff]  }
 0x26a   :  { %3971 = vmatprep.subr.bf16.mxu1 %v5769_v10  ;;  %v5854_v10 = vld [vmem:[%s7586_s10 + $0x5a0] ss:$100 sps:$4 sm:$0xff]  }
 0x26d   :  { %3972 = vmatpush1.bf16.msra.mxu1 %v5767_v11  ;;  %v5859_v11 = vld [vmem:[%s7586_s10 + $0x4d4] ss:$100 sps:$4 sm:$0xff]  }
 0x26e   :  { %3973 = vmatprep.subr.bf16.mxu1 %v5775_v12  ;;  %v5862_v12 = vld [vmem:[%s7586_s10 + $0x4dc] ss:$100 sps:$4 sm:$0xff]  }
 0x271   :  { %3974 = vmatpush1.bf16.msra.mxu1 %v5773_v13  ;;  %v5857_v13 = vld [vmem:[%s7586_s10 + $0x4d0] ss:$100 sps:$4 sm:$0xff]  }
 0x272   :  { %3975 = vmatprep.subr.bf16.mxu1 %v5781_v14  ;;  %v5860_v14 = vld [vmem:[%s7586_s10 + $0x4d8] ss:$100 sps:$4 sm:$0xff]  }
 0x275   :  { %3976 = vmatpush1.bf16.msra.mxu1 %v5779_v15  ;;  %v5865_v15 = vld [vmem:[%s7586_s10 + $0x40c] ss:$100 sps:$4 sm:$0xff]  }
 0x276   :  { %3977 = vmatprep.subr.bf16.mxu1 %v5787_v16  ;;  %v5868_v16 = vld [vmem:[%s7586_s10 + $0x414] ss:$100 sps:$4 sm:$0xff]  }
 0x279   :  { %3978 = vmatpush1.bf16.msra.mxu1 %v5785_v17  ;;  %v5863_v17 = vld [vmem:[%s7586_s10 + $0x408] ss:$100 sps:$4 sm:$0xff]  }
 0x27a   :  { %3979 = vmatprep.subr.bf16.mxu1 %v5793_v18  ;;  %v5866_v18 = vld [vmem:[%s7586_s10 + $0x410] ss:$100 sps:$4 sm:$0xff]  }
 0x27d   :  { %3980 = vmatpush1.bf16.msra.mxu1 %v5791_v20  ;;  %v5874_v20 = vld [vmem:[%s7586_s10 + $0x34c] ss:$100 sps:$4 sm:$0xff]  }
 0x27e   :  { %3981 = vmatprep.subr.bf16.mxu1 %v5799_v22  ;;  %v5872_v22 = vld [vmem:[%s7586_s10 + $0x348] ss:$100 sps:$4 sm:$0xff]  }
 0x281   :  { %3982 = vmatpush1.bf16.msra.mxu1 %v5797_v24  ;;  %v5880_v24 = vld [vmem:[%s7586_s10 + $0x284] ss:$100 sps:$4 sm:$0xff]  }
 0x282   :  { %4049 = vmatprep.subr.bf16.mxu1 %v5805_v26  ;;  %v5878_v26 = vld [vmem:[%s7586_s10 + $0x280] ss:$100 sps:$4 sm:$0xff]  }
 0x324   :  { %v2602_v29 = vpop.f32.mrf.mxu1 }
 0x325   :  { %v2603_v31 = vadd.f32 %v2602_v29, %v6855_v52  ;;  %v5821_v52 = vld [vmem:[%s7586_s10 + $0x330] ss:$100 sps:$4 sm:$0xff]   ;;  %v5886_v29 = vld [vmem:[%s7586_s10 + $0x1bc] ss:$100 sps:$4 sm:$0xff]  }
 0x326   :  { %v5520_v32 = vpop.f32.mrf.mxu1 }
 0x327   :  { %v2615_v33 = vadd.f32 %v4965_v30, %v2603_v31  ;;  %v5881_v30 = vld [vmem:[%s7586_s10 + $0x1b0] ss:$100 sps:$4 sm:$0xff]   ;;  %v5884_v31 = vld [vmem:[%s7586_s10 + $0x1b8] ss:$100 sps:$4 sm:$0xff]  }
 0x328   :  { %v2605_v34 = vpop.f32.mrf.mxu1  ;;  %v5889_v32 = vld [vmem:[%s7586_s10 + $0xec] ss:$100 sps:$4 sm:$0xff]  }
 0x329   :  { %v2616_v35 = vmax.f32 %v2615_v33, 0.0  ;;  %v5892_v33 = vld [vmem:[%s7586_s10 + $0xf4] ss:$100 sps:$4 sm:$0xff]   ;;  %v5887_v34 = vld [vmem:[%s7586_s10 + $0xe8] ss:$100 sps:$4 sm:$0xff]  }
 0x32a   :  { %v5521_v36 = vpop.f32.mrf.mxu1 }
 0x32b   :  { %v6959_v39 = vpack.c.bf16 %v2616_v35, %v2616_v35  ;;  %v5890_v35 = vld [vmem:[%s7586_s10 + $0xf0] ss:$100 sps:$4 sm:$0xff]   ;;  %v5895_v36 = vld [vmem:[%s7586_s10 + $0x24] ss:$100 sps:$4 sm:$0xff]  }
 0x32d   :  { %4000 = vmatmul.mubr.bf16.vlgmr.msra.gmra.mxu1 %v6959_v39  ;;  %4041 = vmatmul.mubr.bf16.vlgmr.msra.gmra.mxu0 %v6959_v39 }
 0x32e   :  { %4050 = vmatpush1.bf16.msra.mxu1 %v5803_v37  ;;  %4091 = vmatpush1.bf16.msra.mxu0 %v5806_v38  ;;  %v5898_v37 = vld [vmem:[%s7586_s10 + $0x2c] ss:$100 sps:$4 sm:$0xff]   ;;  %v5893_v38 = vld [vmem:[%s7586_s10 + $0x20] ss:$100 sps:$4 sm:$0xff]  }
 0x32f   :  { %4051 = vmatprep.subr.bf16.mxu1 %v5811_v41  ;;  %4092 = vmatprep.subr.bf16.mxu0 %v5814_v42  ;;  %v5896_v41 = vld [vmem:[%s7586_s10 + $0x28] ss:$100 sps:$4 sm:$0xff]  }
 0x330   :  { %4081 = vmatprep.mubr.bf16.mxu1 %v6055_v27  ;;  %4122 = vmatprep.mubr.bf16.mxu0 %v6055_v27  ;;  %v5901_v42 = vld [vmem:[%s7586_s10 + $0x5ac] ss:$100 sps:$4 sm:$0xff]  }
 0x332   :  { %4052 = vmatpush1.bf16.msra.mxu1 %v5809_v43  ;;  %4093 = vmatpush1.bf16.msra.mxu0 %v5812_v44  ;;  %v5904_v43 = vld [vmem:[%s7586_s10 + $0x5b4] ss:$100 sps:$4 sm:$0xff]   ;;  %v5899_v44 = vld [vmem:[%s7586_s10 + $0x5a8] ss:$100 sps:$4 sm:$0xff]  }
 0x333   :  { %4053 = vmatprep.subr.bf16.mxu1 %v5817_v45  ;;  %4094 = vmatprep.subr.bf16.mxu0 %v5820_v47  ;;  %v5902_v45 = vld [vmem:[%s7586_s10 + $0x5b0] ss:$100 sps:$4 sm:$0xff]   ;;  %v5907_v47 = vld [vmem:[%s7586_s10 + $0x4e4] ss:$100 sps:$4 sm:$0xff]  }
 0x336   :  { %4054 = vmatpush1.bf16.msra.mxu1 %v5815_v48  ;;  %4095 = vmatpush1.bf16.msra.mxu0 %v5818_v49  ;;  %v5910_v48 = vld [vmem:[%s7586_s10 + $0x4ec] ss:$100 sps:$4 sm:$0xff]   ;;  %v5905_v49 = vld [vmem:[%s7586_s10 + $0x4e0] ss:$100 sps:$4 sm:$0xff]  }
 0x337   :  { %4055 = vmatprep.subr.bf16.mxu1 %v5823_v50  ;;  %4096 = vmatprep.subr.bf16.mxu0 %v5826_v51  ;;  %v5908_v50 = vld [vmem:[%s7586_s10 + $0x4e8] ss:$100 sps:$4 sm:$0xff]   ;;  %v5913_v51 = vld [vmem:[%s7586_s10 + $0x41c] ss:$100 sps:$4 sm:$0xff]  }
 0x33a   :  { %4056 = vmatpush1.bf16.msra.mxu1 %v5821_v52  ;;  %4097 = vmatpush1.bf16.msra.mxu0 %v5824_v53  ;;  %v5916_v52 = vld [vmem:[%s7586_s10 + $0x424] ss:$100 sps:$4 sm:$0xff]   ;;  %v5911_v53 = vld [vmem:[%s7586_s10 + $0x418] ss:$100 sps:$4 sm:$0xff]  }
 0x33b   :  { %4057 = vmatprep.subr.bf16.mxu1 %v5829_v54  ;;  %4098 = vmatprep.subr.bf16.mxu0 %v5832_v55  ;;  %v5914_v54 = vld [vmem:[%s7586_s10 + $0x420] ss:$100 sps:$4 sm:$0xff]   ;;  %v5919_v55 = vld [vmem:[%s7586_s10 + $0x354] ss:$100 sps:$4 sm:$0xff]  }
 0x33e   :  { %4058 = vmatpush1.bf16.msra.mxu1 %v5827_v56  ;;  %4099 = vmatpush1.bf16.msra.mxu0 %v5830_v57  ;;  %v5922_v56 = vld [vmem:[%s7586_s10 + $0x35c] ss:$100 sps:$4 sm:$0xff]   ;;  %v5917_v57 = vld [vmem:[%s7586_s10 + $0x350] ss:$100 sps:$4 sm:$0xff]  }
 0x33f   :  { %4059 = vmatprep.subr.bf16.mxu1 %v5835_v58  ;;  %4100 = vmatprep.subr.bf16.mxu0 %v5838_v59  ;;  %v5920_v58 = vld [vmem:[%s7586_s10 + $0x358] ss:$100 sps:$4 sm:$0xff]   ;;  %v5925_v59 = vld [vmem:[%s7586_s10 + $0x28c] ss:$100 sps:$4 sm:$0xff]  }
 0x342   :  { %4060 = vmatpush1.bf16.msra.mxu1 %v5833_v60  ;;  %4101 = vmatpush1.bf16.msra.mxu0 %v5836_v61  ;;  %v5928_v60 = vld [vmem:[%s7586_s10 + $0x294] ss:$100 sps:$4 sm:$0xff]   ;;  %v5923_v61 = vld [vmem:[%s7586_s10 + $0x288] ss:$100 sps:$4 sm:$0xff]  }
 0x343   :  { %4061 = vmatprep.subr.bf16.mxu1 %v5841_v62  ;;  %4102 = vmatprep.subr.bf16.mxu0 %v5844_v63  ;;  %v5926_v62 = vld [vmem:[%s7586_s10 + $0x290] ss:$100 sps:$4 sm:$0xff]   ;;  %v5931_v63 = vld [vmem:[%s7586_s10 + $0x1c4] ss:$100 sps:$4 sm:$0xff]  }
 0x346   :  { %4062 = vmatpush1.bf16.msra.mxu1 %v5839_v1  ;;  %4103 = vmatpush1.bf16.msra.mxu0 %v5842_v2  ;;  %v5934_v1 = vld [vmem:[%s7586_s10 + $0x1cc] ss:$100 sps:$4 sm:$0xff]   ;;  %v5929_v2 = vld [vmem:[%s7586_s10 + $0x1c0] ss:$100 sps:$4 sm:$0xff]  }
 0x347   :  { %4063 = vmatprep.subr.bf16.mxu1 %v5847_v3  ;;  %4104 = vmatprep.subr.bf16.mxu0 %v5850_v4  ;;  %v5932_v3 = vld [vmem:[%s7586_s10 + $0x1c8] ss:$100 sps:$4 sm:$0xff]   ;;  %v5937_v4 = vld [vmem:[%s7586_s10 + $0xfc] ss:$100 sps:$4 sm:$0xff]  }
 0x34a   :  { %4064 = vmatpush1.bf16.msra.mxu1 %v5845_v5  ;;  %4105 = vmatpush1.bf16.msra.mxu0 %v5848_v7  ;;  %v5940_v5 = vld [vmem:[%s7586_s10 + $0x104] ss:$100 sps:$4 sm:$0xff]   ;;  %v5935_v7 = vld [vmem:[%s7586_s10 + $0xf8] ss:$100 sps:$4 sm:$0xff]  }
 0x34b   :  { %4131 = vmatprep.subr.bf16.mxu1 %v5853_v8  ;;  %4172 = vmatprep.subr.bf16.mxu0 %v5856_v9  ;;  %v5938_v8 = vld [vmem:[%s7586_s10 + $0x100] ss:$100 sps:$4 sm:$0xff]   ;;  %v5943_v9 = vld [vmem:[%s7586_s10 + $0x34] ss:$100 sps:$4 sm:$0xff]  }
 0x34d   :  { %4082 = vmatmul.mubr.bf16.vlgmr.msra.gmra.mxu1 %v6959_v39  ;;  %4123 = vmatmul.mubr.bf16.vlgmr.msra.gmra.mxu0 %v6959_v39 }
 0x34e   :  { %4132 = vmatpush1.bf16.msra.mxu1 %v5851_v6  ;;  %4173 = vmatpush1.bf16.msra.mxu0 %v5854_v10  ;;  %v5946_v6 = vld [vmem:[%s7586_s10 + $0x3c] ss:$100 sps:$4 sm:$0xff]   ;;  %v5941_v10 = vld [vmem:[%s7586_s10 + $0x30] ss:$100 sps:$4 sm:$0xff]  }
 0x34f   :  { %4133 = vmatprep.subr.bf16.mxu1 %v5859_v11  ;;  %4174 = vmatprep.subr.bf16.mxu0 %v5862_v12  ;;  %v5944_v11 = vld [vmem:[%s7586_s10 + $0x38] ss:$100 sps:$4 sm:$0xff]  }
 0x350   :  { %4163 = vmatprep.mubr.bf16.mxu1 %v6055_v27  ;;  %4204 = vmatprep.mubr.bf16.mxu0 %v6055_v27  ;;  %v5949_v12 = vld [vmem:[%s7586_s10 + $0x5bc] ss:$100 sps:$4 sm:$0xff]  }
 0x352   :  { %4134 = vmatpush1.bf16.msra.mxu1 %v5857_v13  ;;  %4175 = vmatpush1.bf16.msra.mxu0 %v5860_v14  ;;  %v5952_v13 = vld [vmem:[%s7586_s10 + $0x5c4] ss:$100 sps:$4 sm:$0xff]   ;;  %v5947_v14 = vld [vmem:[%s7586_s10 + $0x5b8] ss:$100 sps:$4 sm:$0xff]  }
 0x353   :  { %4135 = vmatprep.subr.bf16.mxu1 %v5865_v15  ;;  %4176 = vmatprep.subr.bf16.mxu0 %v5868_v16  ;;  %v5950_v15 = vld [vmem:[%s7586_s10 + $0x5c0] ss:$100 sps:$4 sm:$0xff]   ;;  %v5955_v16 = vld [vmem:[%s7586_s10 + $0x4f4] ss:$100 sps:$4 sm:$0xff]  }
 0x356   :  { %4136 = vmatpush1.bf16.msra.mxu1 %v5863_v17  ;;  %4177 = vmatpush1.bf16.msra.mxu0 %v5866_v18  ;;  %v5958_v17 = vld [vmem:[%s7586_s10 + $0x4fc] ss:$100 sps:$4 sm:$0xff]   ;;  %v5953_v18 = vld [vmem:[%s7586_s10 + $0x4f0] ss:$100 sps:$4 sm:$0xff]  }
 0x357   :  { %4137 = vmatprep.subr.bf16.mxu1 %v5871_v19  ;;  %4178 = vmatprep.subr.bf16.mxu0 %v5874_v20  ;;  %v5956_v19 = vld [vmem:[%s7586_s10 + $0x4f8] ss:$100 sps:$4 sm:$0xff]   ;;  %v5961_v20 = vld [vmem:[%s7586_s10 + $0x42c] ss:$100 sps:$4 sm:$0xff]  }
 0x35a   :  { %4138 = vmatpush1.bf16.msra.mxu1 %v5869_v21  ;;  %4179 = vmatpush1.bf16.msra.mxu0 %v5872_v22  ;;  %v5964_v21 = vld [vmem:[%s7586_s10 + $0x434] ss:$100 sps:$4 sm:$0xff]   ;;  %v5959_v22 = vld [vmem:[%s7586_s10 + $0x428] ss:$100 sps:$4 sm:$0xff]  }
 0x35b   :  { %4139 = vmatprep.subr.bf16.mxu1 %v5877_v23  ;;  %4180 = vmatprep.subr.bf16.mxu0 %v5880_v24  ;;  %v5962_v23 = vld [vmem:[%s7586_s10 + $0x430] ss:$100 sps:$4 sm:$0xff]   ;;  %v5967_v24 = vld [vmem:[%s7586_s10 + $0x364] ss:$100 sps:$4 sm:$0xff]  }
 0x35e   :  { %4140 = vmatpush1.bf16.msra.mxu1 %v5875_v25  ;;  %4181 = vmatpush1.bf16.msra.mxu0 %v5878_v26  ;;  %v5970_v25 = vld [vmem:[%s7586_s10 + $0x36c] ss:$100 sps:$4 sm:$0xff]   ;;  %v5965_v26 = vld [vmem:[%s7586_s10 + $0x360] ss:$100 sps:$4 sm:$0xff]  }
 0x35f   :  { %4141 = vmatprep.subr.bf16.mxu1 %v5883_v28  ;;  %4182 = vmatprep.subr.bf16.mxu0 %v5886_v29  ;;  %v5968_v28 = vld [vmem:[%s7586_s10 + $0x368] ss:$100 sps:$4 sm:$0xff]   ;;  %v5973_v29 = vld [vmem:[%s7586_s10 + $0x29c] ss:$100 sps:$4 sm:$0xff]  }
 0x362   :  { %4142 = vmatpush1.bf16.msra.mxu1 %v5881_v30  ;;  %4183 = vmatpush1.bf16.msra.mxu0 %v5884_v31  ;;  %v5976_v30 = vld [vmem:[%s7586_s10 + $0x2a4] ss:$100 sps:$4 sm:$0xff]   ;;  %v5971_v31 = vld [vmem:[%s7586_s10 + $0x298] ss:$100 sps:$4 sm:$0xff]  }
 0x363   :  { %4143 = vmatprep.subr.bf16.mxu1 %v5889_v32  ;;  %4184 = vmatprep.subr.bf16.mxu0 %v5892_v33  ;;  %v5974_v32 = vld [vmem:[%s7586_s10 + $0x2a0] ss:$100 sps:$4 sm:$0xff]   ;;  %v5979_v33 = vld [vmem:[%s7586_s10 + $0x1d4] ss:$100 sps:$4 sm:$0xff]  }
 0x366   :  { %4144 = vmatpush1.bf16.msra.mxu1 %v5887_v34  ;;  %4185 = vmatpush1.bf16.msra.mxu0 %v5890_v35  ;;  %v5982_v34 = vld [vmem:[%s7586_s10 + $0x1dc] ss:$100 sps:$4 sm:$0xff]   ;;  %v5977_v35 = vld [vmem:[%s7586_s10 + $0x1d0] ss:$100 sps:$4 sm:$0xff]  }
 0x367   :  { %4145 = vmatprep.subr.bf16.mxu1 %v5895_v36  ;;  %4186 = vmatprep.subr.bf16.mxu0 %v5898_v37  ;;  %v5980_v36 = vld [vmem:[%s7586_s10 + $0x1d8] ss:$100 sps:$4 sm:$0xff]   ;;  %v5985_v37 = vld [vmem:[%s7586_s10 + $0x10c] ss:$100 sps:$4 sm:$0xff]  }
 0x36a   :  { %4146 = vmatpush1.bf16.msra.mxu1 %v5893_v38  ;;  %4187 = vmatpush1.bf16.msra.mxu0 %v5896_v41  ;;  %v5988_v38 = vld [vmem:[%s7586_s10 + $0x114] ss:$100 sps:$4 sm:$0xff]   ;;  %v5983_v41 = vld [vmem:[%s7586_s10 + $0x108] ss:$100 sps:$4 sm:$0xff]  }
 0x36b   :  { %4213 = vmatprep.subr.bf16.mxu1 %v5901_v42  ;;  %4254 = vmatprep.subr.bf16.mxu0 %v5904_v43  ;;  %v5986_v42 = vld [vmem:[%s7586_s10 + $0x110] ss:$100 sps:$4 sm:$0xff]   ;;  %v5991_v43 = vld [vmem:[%s7586_s10 + $0x44] ss:$100 sps:$4 sm:$0xff]  }
 0x36d   :  { %4164 = vmatmul.mubr.bf16.vlgmr.msra.gmra.mxu1 %v6959_v39  ;;  %4205 = vmatmul.mubr.bf16.vlgmr.msra.gmra.mxu0 %v6959_v39 }
 0x36e   :  { %4214 = vmatpush1.bf16.msra.mxu1 %v5899_v44  ;;  %4255 = vmatpush1.bf16.msra.mxu0 %v5902_v45  ;;  %v5994_v44 = vld [vmem:[%s7586_s10 + $0x4c] ss:$100 sps:$4 sm:$0xff]   ;;  %v5989_v45 = vld [vmem:[%s7586_s10 + $0x40] ss:$100 sps:$4 sm:$0xff]  }
 0x36f   :  { %4215 = vmatprep.subr.bf16.mxu1 %v5907_v47  ;;  %4256 = vmatprep.subr.bf16.mxu0 %v5910_v48  ;;  %v5992_v47 = vld [vmem:[%s7586_s10 + $0x48] ss:$100 sps:$4 sm:$0xff]  }
 0x370   :  { %4245 = vmatprep.mubr.bf16.mxu1 %v6055_v27  ;;  %4286 = vmatprep.mubr.bf16.mxu0 %v6055_v27  ;;  %v5997_v48 = vld [vmem:[%s7586_s10 + $0x5cc] ss:$100 sps:$4 sm:$0xff]  }
 0x372   :  { %4216 = vmatpush1.bf16.msra.mxu1 %v5905_v49  ;;  %4257 = vmatpush1.bf16.msra.mxu0 %v5908_v50  ;;  %v6000_v49 = vld [vmem:[%s7586_s10 + $0x5d4] ss:$100 sps:$4 sm:$0xff]   ;;  %v5995_v50 = vld [vmem:[%s7586_s10 + $0x5c8] ss:$100 sps:$4 sm:$0xff]  }
 0x373   :  { %4217 = vmatprep.subr.bf16.mxu1 %v5913_v51  ;;  %4258 = vmatprep.subr.bf16.mxu0 %v5916_v52  ;;  %v5998_v51 = vld [vmem:[%s7586_s10 + $0x5d0] ss:$100 sps:$4 sm:$0xff]   ;;  %v6003_v52 = vld [vmem:[%s7586_s10 + $0x504] ss:$100 sps:$4 sm:$0xff]  }
 0x376   :  { %4218 = vmatpush1.bf16.msra.mxu1 %v5911_v53  ;;  %4259 = vmatpush1.bf16.msra.mxu0 %v5914_v54  ;;  %v6006_v53 = vld [vmem:[%s7586_s10 + $0x50c] ss:$100 sps:$4 sm:$0xff]   ;;  %v6001_v54 = vld [vmem:[%s7586_s10 + $0x500] ss:$100 sps:$4 sm:$0xff]  }
 0x377   :  { %4219 = vmatprep.subr.bf16.mxu1 %v5919_v55  ;;  %4260 = vmatprep.subr.bf16.mxu0 %v5922_v56  ;;  %v6004_v55 = vld [vmem:[%s7586_s10 + $0x508] ss:$100 sps:$4 sm:$0xff]   ;;  %v6009_v56 = vld [vmem:[%s7586_s10 + $0x43c] ss:$100 sps:$4 sm:$0xff]  }
 0x37a   :  { %4220 = vmatpush1.bf16.msra.mxu1 %v5917_v57  ;;  %4261 = vmatpush1.bf16.msra.mxu0 %v5920_v58  ;;  %v6012_v57 = vld [vmem:[%s7586_s10 + $0x444] ss:$100 sps:$4 sm:$0xff]   ;;  %v6007_v58 = vld [vmem:[%s7586_s10 + $0x438] ss:$100 sps:$4 sm:$0xff]  }
 0x37b   :  { %4221 = vmatprep.subr.bf16.mxu1 %v5925_v59  ;;  %4262 = vmatprep.subr.bf16.mxu0 %v5928_v60  ;;  %v6010_v59 = vld [vmem:[%s7586_s10 + $0x440] ss:$100 sps:$4 sm:$0xff]   ;;  %v6015_v60 = vld [vmem:[%s7586_s10 + $0x374] ss:$100 sps:$4 sm:$0xff]  }
 0x37e   :  { %4222 = vmatpush1.bf16.msra.mxu1 %v5923_v61  ;;  %4263 = vmatpush1.bf16.msra.mxu0 %v5926_v62  ;;  %v6013_v61 = vld [vmem:[%s7586_s10 + $0x370] ss:$100 sps:$4 sm:$0xff]   ;;  %v6016_v62 = vld [vmem:[%s7586_s10 + $0x378] ss:$100 sps:$4 sm:$0xff]  }
 0x37f   :  { %4223 = vmatprep.subr.bf16.mxu1 %v5931_v63  ;;  %4264 = vmatprep.subr.bf16.mxu0 %v5934_v1  ;;  %v6021_v63 = vld [vmem:[%s7586_s10 + $0x2ac] ss:$100 sps:$4 sm:$0xff]   ;;  %v6024_v1 = vld [vmem:[%s7586_s10 + $0x2b4] ss:$100 sps:$4 sm:$0xff]  }
 0x382   :  { %4224 = vmatpush1.bf16.msra.mxu1 %v5929_v2  ;;  %4265 = vmatpush1.bf16.msra.mxu0 %v5932_v3  ;;  %v6019_v2 = vld [vmem:[%s7586_s10 + $0x2a8] ss:$100 sps:$4 sm:$0xff]   ;;  %v6022_v3 = vld [vmem:[%s7586_s10 + $0x2b0] ss:$100 sps:$4 sm:$0xff]  }
 0x383   :  { %4225 = vmatprep.subr.bf16.mxu1 %v5937_v4  ;;  %4266 = vmatprep.subr.bf16.mxu0 %v5940_v5  ;;  %v6027_v4 = vld [vmem:[%s7586_s10 + $0x1e4] ss:$100 sps:$4 sm:$0xff]   ;;  %v6030_v5 = vld [vmem:[%s7586_s10 + $0x1ec] ss:$100 sps:$4 sm:$0xff]  }
 0x386   :  { %4226 = vmatpush1.bf16.msra.mxu1 %v5935_v7  ;;  %4267 = vmatpush1.bf16.msra.mxu0 %v5938_v8  ;;  %v6025_v7 = vld [vmem:[%s7586_s10 + $0x1e0] ss:$100 sps:$4 sm:$0xff]   ;;  %v6028_v8 = vld [vmem:[%s7586_s10 + $0x1e8] ss:$100 sps:$4 sm:$0xff]  }
 0x387   :  { %4227 = vmatprep.subr.bf16.mxu1 %v5943_v9  ;;  %4268 = vmatprep.subr.bf16.mxu0 %v5946_v6  ;;  %v6033_v9 = vld [vmem:[%s7586_s10 + $0x11c] ss:$100 sps:$4 sm:$0xff]   ;;  %v6036_v6 = vld [vmem:[%s7586_s10 + $0x124] ss:$100 sps:$4 sm:$0xff]  }
 0x38a   :  { %4228 = vmatpush1.bf16.msra.mxu1 %v5941_v10  ;;  %4269 = vmatpush1.bf16.msra.mxu0 %v5944_v11  ;;  %v6031_v10 = vld [vmem:[%s7586_s10 + $0x118] ss:$100 sps:$4 sm:$0xff]   ;;  %v6034_v11 = vld [vmem:[%s7586_s10 + $0x120] ss:$100 sps:$4 sm:$0xff]  }
 0x38b   :  { %4295 = vmatprep.subr.bf16.mxu1 %v5949_v12  ;;  %4336 = vmatprep.subr.bf16.mxu0 %v5952_v13  ;;  %v6039_v12 = vld [vmem:[%s7586_s10 + $0x54] ss:$100 sps:$4 sm:$0xff]   ;;  %v6042_v13 = vld [vmem:[%s7586_s10 + $0x5c] ss:$100 sps:$4 sm:$0xff]  }
 0x38d   :  { %4246 = vmatmul.mubr.bf16.vlgmr.msra.gmra.mxu1 %v6959_v39  ;;  %4287 = vmatmul.mubr.bf16.vlgmr.msra.gmra.mxu0 %v6959_v39 }
 0x38e   :  { %4296 = vmatpush1.bf16.msra.mxu1 %v5947_v14  ;;  %4337 = vmatpush1.bf16.msra.mxu0 %v5950_v15  ;;  %v6037_v14 = vld [vmem:[%s7586_s10 + $0x50] ss:$100 sps:$4 sm:$0xff]   ;;  %v6040_v15 = vld [vmem:[%s7586_s10 + $0x58] ss:$100 sps:$4 sm:$0xff]  }
 0x38f   :  { %4297 = vmatprep.subr.bf16.mxu1 %v5955_v16  ;;  %4338 = vmatprep.subr.bf16.mxu0 %v5958_v17  ;;  %v6043_v16 = vld [vmem:[%s7586_s10 + $0x5d8] ss:$100 sps:$4 sm:$0xff]   ;;  %v6044_v17 = vld [vmem:[%s7586_s10 + $0x510] ss:$100 sps:$4 sm:$0xff]  }
 0x390   :  { %4327 = vmatprep.mubr.bf16.mxu1 %v6055_v27  ;;  %4368 = vmatprep.mubr.bf16.mxu0 %v6055_v27 }
 0x392   :  { %4298 = vmatpush1.bf16.msra.mxu1 %v5953_v18  ;;  %4339 = vmatpush1.bf16.msra.mxu0 %v5956_v19  ;;  %v6045_v18 = vld [vmem:[%s7586_s10 + $0x448] ss:$100 sps:$4 sm:$0xff]   ;;  %v6046_v19 = vld [vmem:[%s7586_s10 + $0x380] ss:$100 sps:$4 sm:$0xff]  }
 0x393   :  { %4299 = vmatprep.subr.bf16.mxu1 %v5961_v20  ;;  %4340 = vmatprep.subr.bf16.mxu0 %v5964_v21  ;;  %v6047_v20 = vld [vmem:[%s7586_s10 + $0x2b8] ss:$100 sps:$4 sm:$0xff]   ;;  %v6048_v21 = vld [vmem:[%s7586_s10 + $0x1f0] ss:$100 sps:$4 sm:$0xff]  }
 0x396   :  { %4300 = vmatpush1.bf16.msra.mxu1 %v5959_v22  ;;  %4341 = vmatpush1.bf16.msra.mxu0 %v5962_v23  ;;  %v6049_v22 = vld [vmem:[%s7586_s10 + $0x128] ss:$100 sps:$4 sm:$0xff]   ;;  %v6050_v23 = vld [vmem:[%s7586_s10 + $0x60] ss:$100 sps:$4 sm:$0xff]  }
 0x397   :  { %4301 = vmatprep.subr.bf16.mxu1 %v5967_v24  ;;  %4342 = vmatprep.subr.bf16.mxu0 %v5970_v25 }
 0x39a   :  { %4302 = vmatpush1.bf16.msra.mxu1 %v5965_v26  ;;  %4343 = vmatpush1.bf16.msra.mxu0 %v5968_v28 }
 0x39b   :  { %4303 = vmatprep.subr.bf16.mxu1 %v5973_v29  ;;  %4344 = vmatprep.subr.bf16.mxu0 %v5976_v30 }
 0x39e   :  { %4304 = vmatpush1.bf16.msra.mxu1 %v5971_v31  ;;  %4345 = vmatpush1.bf16.msra.mxu0 %v5974_v32 }
 0x39f   :  { %4305 = vmatprep.subr.bf16.mxu1 %v5979_v33  ;;  %4346 = vmatprep.subr.bf16.mxu0 %v5982_v34  ;;  %v7487_v33 = vsub.s32 1, %v6234_v40  ;;  %v7490_v34 = vsub.s32 3, %v6234_v40 }
 0x3a2   :  { %4306 = vmatpush1.bf16.msra.mxu1 %v5977_v35  ;;  %4347 = vmatpush1.bf16.msra.mxu0 %v5980_v36  ;;  %v7493_v35 = vsub.s32 0, %v6234_v40 }
 0x3a3   :  { %4307 = vmatprep.subr.bf16.mxu1 %v5985_v37  ;;  %4348 = vmatprep.subr.bf16.mxu0 %v5988_v38 }
 0x3a6   :  { %4308 = vmatpush1.bf16.msra.mxu1 %v5983_v41  ;;  %4349 = vmatpush1.bf16.msra.mxu0 %v5986_v42 }
 0x3a7   :  { %4309 = vmatprep.subr.bf16.mxu1 %v5991_v43  ;;  %4350 = vmatprep.subr.bf16.mxu0 %v5994_v44  ;;  %v7506_v44 = vsub.s32 4, %v6234_v40 }
 0x3aa   :  { %4310 = vmatpush1.bf16.msra.mxu1 %v5989_v45  ;;  %4351 = vmatpush1.bf16.msra.mxu0 %v5992_v47  ;;  %v7509_v45 = vsub.s32 6, %v6234_v40 }
 0x3ab   :  { %4377 = vmatprep.subr.bf16.mxu1 %v5997_v48  ;;  %4418 = vmatprep.subr.bf16.mxu0 %v6000_v49  ;;  %v7512_v49 = vsub.s32 5, %v6234_v40 }
 0x3ad   :  { %4328 = vmatmul.mubr.bf16.vlgmr.msra.gmra.mxu1 %v6959_v39  ;;  %4369 = vmatmul.mubr.bf16.vlgmr.msra.gmra.mxu0 %v6959_v39 }
 0x3ae   :  { %4378 = vmatpush1.bf16.msra.mxu1 %v5995_v50  ;;  %4419 = vmatpush1.bf16.msra.mxu0 %v5998_v51  ;;  %v7515_v50 = vsub.s32 7, %v6234_v40 }
 0x3af   :  { %4379 = vmatprep.subr.bf16.mxu1 %v6003_v52  ;;  %4420 = vmatprep.subr.bf16.mxu0 %v6006_v53 }
 0x3b0   :  { %4409 = vmatprep.mubr.bf16.mxu1 %v6055_v27  ;;  %4450 = vmatprep.mubr.bf16.mxu0 %v6055_v27  ;;  %v6018_v27 = vld [vmem:[%s7586_s10 + $0x37c] ss:$100 sps:$4 sm:$0xff]  }
 0x3b2   :  { %4380 = vmatpush1.bf16.msra.mxu1 %v6001_v54  ;;  %4421 = vmatpush1.bf16.msra.mxu0 %v6004_v55 }
 0x3b3   :  { %4381 = vmatprep.subr.bf16.mxu1 %v6009_v56  ;;  %4422 = vmatprep.subr.bf16.mxu0 %v6012_v57 }
 0x3b6   :  { %4382 = vmatpush1.bf16.msra.mxu1 %v6007_v58  ;;  %4423 = vmatpush1.bf16.msra.mxu0 %v6010_v59 }
 0x3b7   :  { %4383 = vmatprep.subr.bf16.mxu1 %v6015_v60  ;;  %4424 = vmatprep.subr.bf16.mxu0 %v6018_v27 }
 0x3ba   :  { %4384 = vmatpush1.bf16.msra.mxu1 %v6013_v61  ;;  %4425 = vmatpush1.bf16.msra.mxu0 %v6016_v62 }
 0x3bb   :  { %4385 = vmatprep.subr.bf16.mxu1 %v6021_v63  ;;  %4426 = vmatprep.subr.bf16.mxu0 %v6024_v1 }
 0x3be   :  { %4386 = vmatpush1.bf16.msra.mxu1 %v6019_v2  ;;  %4427 = vmatpush1.bf16.msra.mxu0 %v6022_v3 }
 0x3bf   :  { %4387 = vmatprep.subr.bf16.mxu1 %v6027_v4  ;;  %4428 = vmatprep.subr.bf16.mxu0 %v6030_v5 }
 0x3c2   :  { %4388 = vmatpush1.bf16.msra.mxu1 %v6025_v7  ;;  %4429 = vmatpush1.bf16.msra.mxu0 %v6028_v8 }
 0x3c3   :  { %4389 = vmatprep.subr.bf16.mxu1 %v6033_v9  ;;  %4430 = vmatprep.subr.bf16.mxu0 %v6036_v6 }
 0x3c6   :  { %4390 = vmatpush1.bf16.msra.mxu1 %v6031_v10  ;;  %4431 = vmatpush1.bf16.msra.mxu0 %v6034_v11 }
 0x3c7   :  { %4391 = vmatprep.subr.bf16.mxu1 %v6039_v12  ;;  %4432 = vmatprep.subr.bf16.mxu0 %v6042_v13 }
 0x3ca   :  { %4392 = vmatpush1.bf16.msra.mxu1 %v6037_v14  ;;  %4433 = vmatpush1.bf16.msra.mxu0 %v6040_v15 }
 0x3cb   :  { %5522 = vmatprep.subr.bf16.mxu1 %v6052_v0 }
 0x3cd   :  { %4410 = vmatmul.mubr.bf16.vlgmr.msra.gmra.mxu1 %v6959_v39  ;;  %4451 = vmatmul.mubr.bf16.vlgmr.msra.gmra.mxu0 %v6959_v39 }
 0x3ce   :  { %5523 = vmatpush3.bf16.msra.mxu1 %v6043_v16  ;;  %5538 = vmatprep.mubr.msk.bf16.mxu1 %vm6053_vm1, %v6052_v0 }
 0x3cf   :  { %5524 = vmatprep.subr.bf16.mxu1 %v6052_v0 }
 0x3d2   :  { %5525 = vmatpush3.bf16.msra.mxu1 %v6044_v17 }
 0x3d3   :  { %5526 = vmatprep.subr.bf16.mxu1 %v6052_v0 }
 0x3d6   :  { %5527 = vmatpush3.bf16.msra.mxu1 %v6045_v18 }
 0x3d7   :  { %5528 = vmatprep.subr.bf16.mxu1 %v6052_v0 }
 0x3da   :  { %5529 = vmatpush3.bf16.msra.mxu1 %v6046_v19 }
 0x3db   :  { %5530 = vmatprep.subr.bf16.mxu1 %v6052_v0 }
 0x3de   :  { %5531 = vmatpush3.bf16.msra.mxu1 %v6047_v20 }
 0x3df   :  { %5532 = vmatprep.subr.bf16.mxu1 %v6052_v0 }
 0x3e2   :  { %5533 = vmatpush3.bf16.msra.mxu1 %v6048_v21 }
 0x3e3   :  { %5534 = vmatprep.subr.bf16.mxu1 %v6052_v0 }
 0x3e6   :  { %5535 = vmatpush3.bf16.msra.mxu1 %v6049_v22 }
 0x3e7   :  { %5536 = vmatprep.subr.bf16.mxu1 %v6052_v0  ;;  %v7496_v0 = vsub.s32 2, %v6234_v40 }
 0x3ea   :  { %5537 = vmatpush3.bf16.msra.mxu1 %v6050_v23 }
 0x3ed   :  { %5539 = vmatmul.mubr.bf16.vlgmr.msra.gmra.mxu1 %v6959_v39  ;;  %v4001_v24 = vpop.f32.mrf.mxu1  ;;  %v4042_v25 = vpop.f32.mrf.mxu0  ;;  %v2826_v39 = vld [vmem:[%s7590_s11] sm:$0xff] }
 0x3ee   :  { %v2841_v36 = vrot.slane %v2826_v39, %v7487_v33  ;;  %v2849_v37 = vrot.slane %v2826_v39, %v7490_v34  ;;  %v2837_v38 = vrot.slane %v2826_v39, %v7493_v35  ;;  %v2845_v41 = vrot.slane %v2826_v39, %v7496_v0 }
 0x3ef   :  { %v4003_v26 = vpop.f32.mrf.mxu1  ;;  %v4044_v28 = vpop.f32.mrf.mxu0  ;;  %v2853_v53 = vrot.slane %v2826_v39, %v7506_v44  ;;  %v2861_v54 = vrot.slane %v2826_v39, %v7509_v45  ;;  %v2857_v57 = vrot.slane %v2826_v39, %v7512_v49  ;;  %v2865_v58 = vrot.slane %v2826_v39, %v7515_v50 }
 0x3f0   :  { %v4004_v42 = vadd.f32 %v4003_v26, %v2841_v36  ;;  %v4045_v43 = vadd.f32 %v4044_v28, %v2849_v37  ;;  %v4002_v47 = vadd.f32 %v4001_v24, %v2837_v38  ;;  %v4043_v48 = vadd.f32 %v4042_v25, %v2845_v41 }
 0x3f1   :  { %v4005_v29 = vpop.f32.mrf.mxu1  ;;  %v4046_v30 = vpop.f32.mrf.mxu0 }
 0x3f2   :  { %v4500_v51 = vmax.f32 %v4004_v42, 0.0  ;;  %v4502_v52 = vmax.f32 %v4045_v43, 0.0  ;;  %v4499_v55 = vmax.f32 %v4002_v47, 0.0  ;;  %v4501_v56 = vmax.f32 %v4043_v48, 0.0 }
 0x3f3   :  { %v4006_v31 = vpop.f32.mrf.mxu1  ;;  %v4047_v32 = vpop.f32.mrf.mxu0 }
 0x3f4   :  { %v5167_v59 = vpack.c.bf16 %v4500_v51, %v4499_v55  ;;  %v5168_v60 = vpack.c.bf16 %v4502_v52, %v4501_v56  ;;  %v2827_v32 = vld [vmem:[%s7590_s11 + $0x8] sm:$0xff] }
 0x3f5   :  { %v2873_v39 = vrot.slane %v2827_v32, %v7487_v33  ;;  %v2881_v36 = vrot.slane %v2827_v32, %v7490_v34  ;;  %v2869_v37 = vrot.slane %v2827_v32, %v7493_v35  ;;  %v2877_v38 = vrot.slane %v2827_v32, %v7496_v0 }
 0x3f6   :  { %v4584_v4 = vrot.slane %v5167_v59, %v6246_v46  ;;  %v4591_v5 = vrot.slane %v5168_v60, %v6246_v46  ;;  %v2885_v52 = vrot.slane %v2827_v32, %v7506_v44  ;;  %v2889_v56 = vrot.slane %v2827_v32, %v7512_v49 }
 0x3f8   :  { %v4606_v16 = vcombine.low %v4584_v4, %v4591_v5 }
 0x3fa   :  { %v4614_v20 = vrot.slane %v4606_v16, %v6246_v46 }
 0x40d   :  { %v4083_v27 = vpop.f32.mrf.mxu1  ;;  %v4124_v61 = vpop.f32.mrf.mxu0 }
 0x40e   :  { %v4084_v62 = vadd.f32 %v4083_v27, %v2853_v53  ;;  %v4125_v63 = vadd.f32 %v4124_v61, %v2861_v54  ;;  %v2893_v53 = vrot.slane %v2827_v32, %v7509_v45 }
 0x40f   :  { %v4085_v40 = vpop.f32.mrf.mxu1  ;;  %v4126_v1 = vpop.f32.mrf.mxu0 }
 0x410   :  { %v4086_v2 = vadd.f32 %v4085_v40, %v2857_v57  ;;  %v4127_v3 = vadd.f32 %v4126_v1, %v2865_v58  ;;  %v4503_v9 = vmax.f32 %v4084_v62, 0.0  ;;  %v4505_v6 = vmax.f32 %v4125_v63, 0.0 }
 0x411   :  { %v4087_v7 = vpop.f32.mrf.mxu1  ;;  %v4128_v8 = vpop.f32.mrf.mxu0  ;;  %v2897_v57 = vrot.slane %v2827_v32, %v7515_v50 }
 0x412   :  { %v4504_v10 = vmax.f32 %v4086_v2, 0.0  ;;  %v4506_v11 = vmax.f32 %v4127_v3, 0.0 }
 0x413   :  { %v4088_v12 = vpop.f32.mrf.mxu1  ;;  %v4129_v13 = vpop.f32.mrf.mxu0 }
 0x414   :  { %v5169_v14 = vpack.c.bf16 %v4504_v10, %v4503_v9  ;;  %v5170_v15 = vpack.c.bf16 %v4506_v11, %v4505_v6 }
 0x416   :  { %v4598_v17 = vrot.slane %v5169_v14, %v6246_v46  ;;  %v4605_v18 = vrot.slane %v5170_v15, %v6246_v46 }
 0x418   :  { %v4607_v19 = vcombine.low %v4598_v17, %v4605_v18 }
 0x41a   :  { %v4621_v21 = vrot.slane %v4607_v19, %v6246_v46 }
 0x41c   :  { %v4622_v22 = vcombine.low %v4614_v20, %v4621_v21 }
 0x41e   :  { %4739 = vst [vmem:[%s7591_s13] sm:$0xff] %v4622_v22 }
 0x42d   :  { %v4165_v23 = vpop.f32.mrf.mxu1  ;;  %v4206_v24 = vpop.f32.mrf.mxu0 }
 0x42e   :  { %v4166_v43 = vadd.f32 %v4165_v23, %v2869_v37  ;;  %v4207_v47 = vadd.f32 %v4206_v24, %v2877_v38 }
 0x42f   :  { %v4167_v25 = vpop.f32.mrf.mxu1  ;;  %v4208_v26 = vpop.f32.mrf.mxu0 }
 0x430   :  { %v4168_v41 = vadd.f32 %v4167_v25, %v2873_v39  ;;  %v4209_v42 = vadd.f32 %v4208_v26, %v2881_v36  ;;  %v4507_v54 = vmax.f32 %v4166_v43, 0.0  ;;  %v4509_v55 = vmax.f32 %v4207_v47, 0.0 }
 0x431   :  { %v4169_v28 = vpop.f32.mrf.mxu1  ;;  %v4210_v29 = vpop.f32.mrf.mxu0 }
 0x432   :  { %v4508_v48 = vmax.f32 %v4168_v41, 0.0  ;;  %v4510_v51 = vmax.f32 %v4209_v42, 0.0 }
 0x433   :  { %v4170_v30 = vpop.f32.mrf.mxu1  ;;  %v4211_v31 = vpop.f32.mrf.mxu0 }
 0x434   :  { %v5171_v58 = vpack.c.bf16 %v4508_v48, %v4507_v54  ;;  %v5172_v59 = vpack.c.bf16 %v4510_v51, %v4509_v55  ;;  %v2828_v31 = vld [vmem:[%s7590_s11 + $0x10] sm:$0xff] }
 0x435   :  { %v2905_v32 = vrot.slane %v2828_v31, %v7487_v33  ;;  %v2913_v39 = vrot.slane %v2828_v31, %v7490_v34  ;;  %v2901_v36 = vrot.slane %v2828_v31, %v7493_v35  ;;  %v2909_v37 = vrot.slane %v2828_v31, %v7496_v0 }
 0x436   :  { %v4633_v3 = vrot.slane %v5171_v58, %v6246_v46  ;;  %v4640_v4 = vrot.slane %v5172_v59, %v6246_v46  ;;  %v2917_v51 = vrot.slane %v2828_v31, %v7506_v44  ;;  %v2921_v33 = vrot.slane %v2828_v31, %v7512_v49 }
 0x437   :  { %v2929_v34 = vrot.slane %v2828_v31, %v7515_v50 }
 0x438   :  { %v4655_v15 = vcombine.low %v4633_v3, %v4640_v4 }
 0x43a   :  { %v4663_v19 = vrot.slane %v4655_v15, %v6246_v46 }
 0x44d   :  { %v4247_v60 = vpop.f32.mrf.mxu1  ;;  %v4288_v27 = vpop.f32.mrf.mxu0 }
 0x44e   :  { %v4248_v61 = vadd.f32 %v4247_v60, %v2885_v52  ;;  %v4289_v62 = vadd.f32 %v4288_v27, %v2893_v53  ;;  %v2925_v52 = vrot.slane %v2828_v31, %v7509_v45 }
 0x44f   :  { %v4249_v63 = vpop.f32.mrf.mxu1  ;;  %v4290_v40 = vpop.f32.mrf.mxu0 }
 0x450   :  { %v4250_v1 = vadd.f32 %v4249_v63, %v2889_v56  ;;  %v4291_v2 = vadd.f32 %v4290_v40, %v2897_v57  ;;  %v4511_v8 = vmax.f32 %v4248_v61, 0.0  ;;  %v4513_v9 = vmax.f32 %v4289_v62, 0.0 }
 0x451   :  { %v4251_v5 = vpop.f32.mrf.mxu1  ;;  %v4292_v7 = vpop.f32.mrf.mxu0 }
 0x452   :  { %v4512_v6 = vmax.f32 %v4250_v1, 0.0  ;;  %v4514_v10 = vmax.f32 %v4291_v2, 0.0 }
 0x453   :  { %v4252_v11 = vpop.f32.mrf.mxu1  ;;  %v4293_v12 = vpop.f32.mrf.mxu0 }
 0x454   :  { %v5173_v13 = vpack.c.bf16 %v4512_v6, %v4511_v8  ;;  %v5174_v14 = vpack.c.bf16 %v4514_v10, %v4513_v9 }
 0x456   :  { %v4647_v16 = vrot.slane %v5173_v13, %v6246_v46  ;;  %v4654_v17 = vrot.slane %v5174_v14, %v6246_v46  ;;  %v4966_v13 = vld [vmem:[%s7590_s11 + $0x18] ss:$0 sm:$0xff] }
 0x458   :  { %v4656_v18 = vcombine.low %v4647_v16, %v4654_v17 }
 0x45a   :  { %v4670_v20 = vrot.slane %v4656_v18, %v6246_v46 }
 0x45c   :  { %v4671_v21 = vcombine.low %v4663_v19, %v4670_v20 }
 0x45e   :  { %4740 = vst [vmem:[%s7591_s13 + $0x8] sm:$0xff] %v4671_v21 }
 0x46d   :  { %v4329_v22 = vpop.f32.mrf.mxu1  ;;  %v4370_v23 = vpop.f32.mrf.mxu0 }
 0x46e   :  { %v4330_v42 = vadd.f32 %v4329_v22, %v2901_v36  ;;  %v4371_v43 = vadd.f32 %v4370_v23, %v2909_v37 }
 0x46f   :  { %v4331_v24 = vpop.f32.mrf.mxu1  ;;  %v4372_v25 = vpop.f32.mrf.mxu0 }
 0x470   :  { %v4332_v38 = vadd.f32 %v4331_v24, %v2905_v32  ;;  %v4373_v41 = vadd.f32 %v4372_v25, %v2913_v39  ;;  %v4515_v53 = vmax.f32 %v4330_v42, 0.0  ;;  %v4517_v54 = vmax.f32 %v4371_v43, 0.0 }
 0x471   :  { %v4333_v26 = vpop.f32.mrf.mxu1  ;;  %v4374_v28 = vpop.f32.mrf.mxu0 }
 0x472   :  { %v4516_v47 = vmax.f32 %v4332_v38, 0.0  ;;  %v4518_v48 = vmax.f32 %v4373_v41, 0.0 }
 0x473   :  { %v4334_v29 = vpop.f32.mrf.mxu1  ;;  %v4375_v30 = vpop.f32.mrf.mxu0 }
 0x474   :  { %v5175_v55 = vpack.c.bf16 %v4516_v47, %v4515_v53  ;;  %v5176_v35 = vpack.c.bf16 %v4518_v48, %v4517_v54 }
 0x476   :  { %v4682_v44 = vrot.slane %v5175_v55, %v6246_v46  ;;  %v4689_v45 = vrot.slane %v5176_v35, %v6246_v46 }
 0x478   :  { %v4704_v7 = vcombine.low %v4682_v44, %v4689_v45 }
 0x47a   :  { %v4712_v10 = vrot.slane %v4704_v7, %v6246_v46 }
 0x48d   :  { %v4411_v56 = vpop.f32.mrf.mxu1  ;;  %v4452_v0 = vpop.f32.mrf.mxu0 }
 0x48e   :  { %v4412_v57 = vadd.f32 %v4411_v56, %v2917_v51  ;;  %v4453_v58 = vadd.f32 %v4452_v0, %v2925_v52 }
 0x48f   :  { %v4413_v59 = vpop.f32.mrf.mxu1  ;;  %v4454_v60 = vpop.f32.mrf.mxu0 }
 0x490   :  { %v4414_v27 = vadd.f32 %v4413_v59, %v2921_v33  ;;  %v4455_v61 = vadd.f32 %v4454_v60, %v2929_v34  ;;  %v4519_v40 = vmax.f32 %v4412_v57, 0.0  ;;  %v4521_v49 = vmax.f32 %v4453_v58, 0.0 }
 0x491   :  { %v4415_v62 = vpop.f32.mrf.mxu1  ;;  %v4456_v63 = vpop.f32.mrf.mxu0 }
 0x492   :  { %v4520_v1 = vmax.f32 %v4414_v27, 0.0  ;;  %v4522_v50 = vmax.f32 %v4455_v61, 0.0 }
 0x493   :  { %v4416_v2 = vpop.f32.mrf.mxu1  ;;  %v4457_v3 = vpop.f32.mrf.mxu0 }
 0x494   :  { %v5177_v4 = vpack.c.bf16 %v4520_v1, %v4519_v40  ;;  %v5178_v5 = vpack.c.bf16 %v4522_v50, %v4521_v49 }
 0x496   :  { %v4696_v8 = vrot.slane %v5177_v4, %v6246_v46  ;;  %v4703_v9 = vrot.slane %v5178_v5, %v6246_v46 }
 0x498   :  { %v4705_v6 = vcombine.low %v4696_v8, %v4703_v9 }
 0x49a   :  { %v4719_v11 = vrot.slane %v4705_v6, %v6246_v46 }
 0x49c   :  { %v4720_v12 = vcombine.low %v4712_v10, %v4719_v11 }
 0x49e   :  { %4741 = vst [vmem:[%s7591_s13 + $0x10] sm:$0xff] %v4720_v12 }
 0x4ad   :  { %v4493_v14 = vpop.f32.mrf.mxu1 }
 0x4ae   :  { %v4494_v15 = vadd.f32 %v4966_v13, %v4493_v14 }
 0x4af   :  { %v5540_v16 = vpop.f32.mrf.mxu1 }
 0x4b0   :  { %v4523_v17 = vmax.f32 %v4494_v15, 0.0 }
 0x4b1   :  { %v4496_v18 = vpop.f32.mrf.mxu1 }
 0x4b2   :  { %v4548_v19 = vpack.c.bf16 %v4523_v17, %v4523_v17 }
 0x4b3   :  { %v5541_v20 = vpop.f32.mrf.mxu1 }
 0x4b4   :  { %v4727_v21 = vrot.slane %v4548_v19, %v6246_v46 }
 0x4b6   :  { %v4734_v22 = vrot.slane %v4727_v21, %v6246_v46 }
 0x4b8   :  { %4743 = vst.msk [vmem:[%s7591_s13 + $0x18] sm:$0x1] %vm4742_vm7, %v4734_v22 }

// kernel: cvae_forward.8
= control target key start
LH: loop header
LB: loop body
LE: loop exit
PB: predicated region body
PF: predicated region fallthrough
CT: control target
= control target key end

     0   :  { %v61_v47 = vlaneseq  ;;  %s921_s1 = inlined_call_operand.vmem [shape: bf16[256,256], index: 1, kind: input, shape index: {}]   ;;  %s922_s0 = inlined_call_operand.vmem [shape: bf16[98,256], index: 0, kind: input, shape index: {}]   ;;  %s923_s2 = inlined_call_operand.vmem [shape: f32[1,256], index: 2, kind: input, shape index: {}]   ;;  %s924_s3 = inlined_call_operand.vmem [shape: bf16[98,256], index: 3, kind: output, shape index: {}]  }
   0x1   :  { %v626_v0 = vld [vmem:[%s921_s1 + $0x74] ss:$8 sps:$4 sm:$0xff]   ;;  %v628_v1 = vld [vmem:[%s921_s1 + $0x70] ss:$8 sps:$4 sm:$0xff]   ;;  %v629_v2 = vld [vmem:[%s921_s1 + $0x64] ss:$8 sps:$4 sm:$0xff]  }
   0x2   :  { %298 = vmatprep.subr.bf16.mxu0 %v626_v0  ;;  %594 = vmatprep.subr.bf16.mxu1 %v626_v0  ;;  %v631_v3 = vld [vmem:[%s921_s1 + $0x60] ss:$8 sps:$4 sm:$0xff]   ;;  %v632_v4 = vld [vmem:[%s921_s1 + $0x54] ss:$8 sps:$4 sm:$0xff]   ;;  %v634_v5 = vld [vmem:[%s921_s1 + $0x50] ss:$8 sps:$4 sm:$0xff]  }
   0x3   :  { %299 = vmatpush1.bf16.msra.mxu0 %v628_v1  ;;  %610 = vmatpush1.bf16.msra.mxu1 %v628_v1  ;;  %v635_v6 = vld [vmem:[%s921_s1 + $0x44] ss:$8 sps:$4 sm:$0xff]   ;;  %v637_v7 = vld [vmem:[%s921_s1 + $0x40] ss:$8 sps:$4 sm:$0xff]   ;;  %v638_v8 = vld [vmem:[%s921_s1 + $0x34] ss:$8 sps:$4 sm:$0xff]  }
   0x4   :  { %300 = vmatprep.subr.bf16.mxu0 %v629_v2  ;;  %595 = vmatprep.subr.bf16.mxu1 %v629_v2  ;;  %v640_v9 = vld [vmem:[%s921_s1 + $0x30] ss:$8 sps:$4 sm:$0xff]   ;;  %v641_v10 = vld [vmem:[%s921_s1 + $0x24] ss:$8 sps:$4 sm:$0xff]   ;;  %v643_v11 = vld [vmem:[%s921_s1 + $0x20] ss:$8 sps:$4 sm:$0xff]  }
   0x5   :  { %v644_v12 = vld [vmem:[%s921_s1 + $0x14] ss:$8 sps:$4 sm:$0xff]   ;;  %v676_v13 = vld [vmem:[%s922_s0 + $0x4] ss:$8 sps:$4 sm:$0xff]   ;;  %v646_v14 = vld [vmem:[%s921_s1 + $0x10] ss:$8 sps:$4 sm:$0xff]  }
   0x6   :  { %v679_v15 = vld [vmem:[%s922_s0 + $0x44] ss:$8 sps:$4 sm:$0xff]   ;;  %330 = vmatprep.mubr.bf16.mxu0 %v676_v13  ;;  %v649_v17 = vld [vmem:[%s921_s1] ss:$8 sps:$4 sm:$0xff]   ;;  %v650_v18 = vld [vmem:[%s921_s1 + $0xf4] ss:$8 sps:$4 sm:$0xff]  }
   0x7   :  { %301 = vmatpush1.bf16.msra.mxu0 %v631_v3  ;;  %611 = vmatpush1.bf16.msra.mxu1 %v631_v3  ;;  %v647_v16 = vld [vmem:[%s921_s1 + $0x4] ss:$8 sps:$4 sm:$0xff]   ;;  %v652_v19 = vld [vmem:[%s921_s1 + $0xf0] ss:$8 sps:$4 sm:$0xff]   ;;  %v655_v21 = vld [vmem:[%s921_s1 + $0xe0] ss:$8 sps:$4 sm:$0xff]  }
   0x8   :  { %302 = vmatprep.subr.bf16.mxu0 %v632_v4  ;;  %596 = vmatprep.subr.bf16.mxu1 %v632_v4  ;;  %v653_v20 = vld [vmem:[%s921_s1 + $0xe4] ss:$8 sps:$4 sm:$0xff]   ;;  %v656_v22 = vld [vmem:[%s921_s1 + $0xd4] ss:$8 sps:$4 sm:$0xff]   ;;  %v658_v23 = vld [vmem:[%s921_s1 + $0xd0] ss:$8 sps:$4 sm:$0xff]  }
   0x9   :  { %370 = vmatprep.mubr.bf16.mxu1 %v679_v15  ;;  %v659_v24 = vld [vmem:[%s921_s1 + $0xc4] ss:$8 sps:$4 sm:$0xff]   ;;  %v661_v25 = vld [vmem:[%s921_s1 + $0xc0] ss:$8 sps:$4 sm:$0xff]   ;;  %v662_v26 = vld [vmem:[%s921_s1 + $0xb4] ss:$8 sps:$4 sm:$0xff]  }
   0xa   :  { %v664_v27 = vld [vmem:[%s921_s1 + $0xb0] ss:$8 sps:$4 sm:$0xff]   ;;  %v665_v28 = vld [vmem:[%s921_s1 + $0xa4] ss:$8 sps:$4 sm:$0xff]   ;;  %v667_v29 = vld [vmem:[%s921_s1 + $0xa0] ss:$8 sps:$4 sm:$0xff]  }
   0xb   :  { %303 = vmatpush1.bf16.msra.mxu0 %v634_v5  ;;  %612 = vmatpush1.bf16.msra.mxu1 %v634_v5  ;;  %v668_v30 = vld [vmem:[%s921_s1 + $0x94] ss:$8 sps:$4 sm:$0xff]   ;;  %v670_v31 = vld [vmem:[%s921_s1 + $0x90] ss:$8 sps:$4 sm:$0xff]   ;;  %v671_v32 = vld [vmem:[%s921_s1 + $0x84] ss:$8 sps:$4 sm:$0xff]  }
   0xc   :  { %304 = vmatprep.subr.bf16.mxu0 %v635_v6  ;;  %597 = vmatprep.subr.bf16.mxu1 %v635_v6  ;;  %v673_v33 = vld [vmem:[%s921_s1 + $0x80] ss:$8 sps:$4 sm:$0xff]   ;;  %v680_v36 = vld [vmem:[%s922_s0 + $0x14] ss:$8 sps:$4 sm:$0xff]   ;;  %v682_v39 = vld [vmem:[%s922_s0 + $0x10] ss:$8 sps:$4 sm:$0xff]  }
   0xd   :  { %v674_v34 = vld [vmem:[%s922_s0] ss:$8 sps:$4 sm:$0xff]   ;;  %v683_v37 = vld [vmem:[%s922_s0 + $0x54] ss:$8 sps:$4 sm:$0xff]   ;;  %v685_v40 = vld [vmem:[%s922_s0 + $0x50] ss:$8 sps:$4 sm:$0xff]  }
   0xe   :  { %v677_v35 = vld [vmem:[%s922_s0 + $0x40] ss:$8 sps:$4 sm:$0xff]   ;;  %v686_v41 = vld [vmem:[%s922_s0 + $0x24] ss:$8 sps:$4 sm:$0xff]   ;;  %v691_v45 = vld [vmem:[%s922_s0 + $0x34] ss:$8 sps:$4 sm:$0xff]  }
   0xf   :  { %305 = vmatpush1.bf16.msra.mxu0 %v637_v7  ;;  %613 = vmatpush1.bf16.msra.mxu1 %v637_v7  ;;  %v26_v38 = vld [vmem:[%s922_s0 + $0x60] sm:$0x11]  ;;  %v693_v46 = vld [vmem:[%s922_s0 + $0x30] ss:$8 sps:$4 sm:$0xff]   ;;  %v62_v48 = vshrl.u32 %v61_v47, 7 }
  0x10   :  { %306 = vmatprep.subr.bf16.mxu0 %v638_v8  ;;  %598 = vmatprep.subr.bf16.mxu1 %v638_v8  ;;  %v535_v42 = vcombine.high %v26_v38, %v26_v38  ;;  %v688_v43 = vld [vmem:[%s922_s0 + $0x20] ss:$8 sps:$4 sm:$0xff]   ;;  %v534_v44 = vcombine.low %v26_v38, %v26_v38 }
  0x11   :  { %v63_v49 = vsub.s32 0, %v62_v48  ;;  %v59_v50 = vld [vmem:[%s923_s2] sm:$0x3]  ;;  %v67_v51 = vsub.s32 1, %v62_v48 }
  0x13   :  { %307 = vmatpush1.bf16.msra.mxu0 %v640_v9  ;;  %614 = vmatpush1.bf16.msra.mxu1 %v640_v9  ;;  %v852_v52 = vrot.slane %v59_v50, %v63_v49  ;;  %v854_v53 = vrot.slane %v59_v50, %v67_v51 }
  0x14   :  { %308 = vmatprep.subr.bf16.mxu0 %v641_v10  ;;  %599 = vmatprep.subr.bf16.mxu1 %v641_v10 }
  0x17   :  { %309 = vmatpush1.bf16.msra.mxu0 %v643_v11  ;;  %615 = vmatpush1.bf16.msra.mxu1 %v643_v11 }
  0x18   :  { %310 = vmatprep.subr.bf16.mxu0 %v644_v12  ;;  %600 = vmatprep.subr.bf16.mxu1 %v644_v12 }
  0x1b   :  { %311 = vmatpush1.bf16.msra.mxu0 %v646_v14  ;;  %616 = vmatpush1.bf16.msra.mxu1 %v646_v14 }
  0x1c   :  { %312 = vmatprep.subr.bf16.mxu0 %v647_v16  ;;  %601 = vmatprep.subr.bf16.mxu1 %v647_v16 }
  0x1f   :  { %313 = vmatpush1.bf16.msra.mxu0 %v649_v17  ;;  %617 = vmatpush1.bf16.msra.mxu1 %v649_v17 }
  0x20   :  { %314 = vmatprep.subr.bf16.mxu0 %v650_v18  ;;  %602 = vmatprep.subr.bf16.mxu1 %v650_v18 }
  0x23   :  { %315 = vmatpush2.bf16.msra.mxu0 %v652_v19  ;;  %618 = vmatpush2.bf16.msra.mxu1 %v652_v19 }
  0x24   :  { %316 = vmatprep.subr.bf16.mxu0 %v653_v20  ;;  %603 = vmatprep.subr.bf16.mxu1 %v653_v20 }
  0x27   :  { %317 = vmatpush2.bf16.msra.mxu0 %v655_v21  ;;  %619 = vmatpush2.bf16.msra.mxu1 %v655_v21 }
  0x28   :  { %318 = vmatprep.subr.bf16.mxu0 %v656_v22  ;;  %604 = vmatprep.subr.bf16.mxu1 %v656_v22 }
  0x2b   :  { %319 = vmatpush2.bf16.msra.mxu0 %v658_v23  ;;  %620 = vmatpush2.bf16.msra.mxu1 %v658_v23 }
  0x2c   :  { %320 = vmatprep.subr.bf16.mxu0 %v659_v24  ;;  %605 = vmatprep.subr.bf16.mxu1 %v659_v24 }
  0x2f   :  { %321 = vmatpush2.bf16.msra.mxu0 %v661_v25  ;;  %621 = vmatpush2.bf16.msra.mxu1 %v661_v25 }
  0x30   :  { %322 = vmatprep.subr.bf16.mxu0 %v662_v26  ;;  %606 = vmatprep.subr.bf16.mxu1 %v662_v26 }
  0x33   :  { %323 = vmatpush2.bf16.msra.mxu0 %v664_v27  ;;  %622 = vmatpush2.bf16.msra.mxu1 %v664_v27 }
  0x34   :  { %324 = vmatprep.subr.bf16.mxu0 %v665_v28  ;;  %607 = vmatprep.subr.bf16.mxu1 %v665_v28 }
  0x37   :  { %325 = vmatpush2.bf16.msra.mxu0 %v667_v29  ;;  %623 = vmatpush2.bf16.msra.mxu1 %v667_v29 }
  0x38   :  { %326 = vmatprep.subr.bf16.mxu0 %v668_v30  ;;  %608 = vmatprep.subr.bf16.mxu1 %v668_v30 }
  0x3b   :  { %327 = vmatpush2.bf16.msra.mxu0 %v670_v31  ;;  %624 = vmatpush2.bf16.msra.mxu1 %v670_v31 }
  0x3c   :  { %328 = vmatprep.subr.bf16.mxu0 %v671_v32  ;;  %609 = vmatprep.subr.bf16.mxu1 %v671_v32 }
  0x3f   :  { %329 = vmatpush2.bf16.msra.mxu0 %v673_v33  ;;  %625 = vmatpush2.bf16.msra.mxu1 %v673_v33 }
  0x42   :  { %331 = vmatmul.mubr.bf16.vlgmr.msra.gmra.mxu0 %v674_v34  ;;  %371 = vmatmul.mubr.bf16.vlgmr.msra.gmra.mxu1 %v677_v35 }
  0x43   :  { %340 = vmatprep.mubr.bf16.mxu0 %v680_v36  ;;  %380 = vmatprep.mubr.bf16.mxu1 %v683_v37 }
  0x4a   :  { %341 = vmatmul.mubr.bf16.gmra.mxu0 %v682_v39  ;;  %381 = vmatmul.mubr.bf16.gmra.mxu1 %v685_v40 }
  0x4b   :  { %350 = vmatprep.mubr.bf16.mxu0 %v686_v41  ;;  %390 = vmatprep.mubr.bf16.mxu1 %v535_v42 }
  0x52   :  { %351 = vmatmul.mubr.bf16.gmra.mxu0 %v688_v43  ;;  %391 = vmatmul.mubr.bf16.gmra.mxu1 %v534_v44 }
  0x53   :  { %360 = vmatprep.mubr.bf16.mxu0 %v691_v45 }
  0x5a   :  { %361 = vmatmul.mubr.bf16.gmra.mxu0 %v693_v46 }
 0x102   :  { %v332_v54 = vpop.f32.mrf.mxu0  ;;  %v372_v55 = vpop.f32.mrf.mxu1 }
 0x103   :  { %v333_v56 = vadd.f32 %v332_v54, %v852_v52  ;;  %v373_v57 = vadd.f32 %v372_v55, %v852_v52 }
 0x104   :  { %v334_v58 = vpop.f32.mrf.mxu0  ;;  %v374_v59 = vpop.f32.mrf.mxu1 }
 0x105   :  { %v335_v60 = vadd.f32 %v334_v58, %v854_v53  ;;  %v415_v61 = vmax.f32 %v373_v57, 0.0  ;;  %v375_v62 = vadd.f32 %v374_v59, %v854_v53  ;;  %v399_v63 = vmax.f32 %v333_v56, 0.0 }
 0x106   :  { %v336_v0 = vpop.f32.mrf.mxu0  ;;  %v376_v1 = vpop.f32.mrf.mxu1 }
 0x107   :  { %v400_v2 = vmax.f32 %v335_v60, 0.0  ;;  %v337_v3 = vadd.f32 %v336_v0, %v852_v52  ;;  %v416_v4 = vmax.f32 %v375_v62, 0.0  ;;  %v377_v5 = vadd.f32 %v376_v1, %v852_v52 }
 0x108   :  { %v338_v6 = vpop.f32.mrf.mxu0  ;;  %v378_v7 = vpop.f32.mrf.mxu1 }
 0x109   :  { %v581_v8 = vpack.c.bf16 %v400_v2, %v399_v63  ;;  %v339_v9 = vadd.f32 %v338_v6, %v854_v53  ;;  %v589_v10 = vpack.c.bf16 %v416_v4, %v415_v61  ;;  %v417_v12 = vmax.f32 %v377_v5, 0.0 }
 0x10a   :  { %v342_v11 = vpop.f32.mrf.mxu0  ;;  %v379_v13 = vadd.f32 %v378_v7, %v854_v53  ;;  %v382_v14 = vpop.f32.mrf.mxu1  ;;  %v401_v15 = vmax.f32 %v337_v3, 0.0 }
 0x10b   :  { %505 = vst [vmem:[%s924_s3] sm:$0xff] %v581_v8  ;;  %v402_v16 = vmax.f32 %v339_v9, 0.0  ;;  %v343_v17 = vadd.f32 %v342_v11, %v852_v52  ;;  %513 = vst [vmem:[%s924_s3 + $0x40] sm:$0xff] %v589_v10  ;;  %v383_v18 = vadd.f32 %v382_v14, %v852_v52 }
 0x10c   :  { %v344_v19 = vpop.f32.mrf.mxu0  ;;  %v418_v20 = vmax.f32 %v379_v13, 0.0  ;;  %v384_v21 = vpop.f32.mrf.mxu1 }
 0x10d   :  { %v582_v22 = vpack.c.bf16 %v402_v16, %v401_v15  ;;  %v345_v23 = vadd.f32 %v344_v19, %v854_v53  ;;  %v419_v26 = vmax.f32 %v383_v18, 0.0  ;;  %v385_v27 = vadd.f32 %v384_v21, %v854_v53 }
 0x10e   :  { %v346_v24 = vpop.f32.mrf.mxu0  ;;  %v590_v25 = vpack.c.bf16 %v418_v20, %v417_v12  ;;  %v386_v28 = vpop.f32.mrf.mxu1  ;;  %v403_v29 = vmax.f32 %v343_v17, 0.0 }
 0x10f   :  { %506 = vst [vmem:[%s924_s3 + $0x8] sm:$0xff] %v582_v22  ;;  %v404_v30 = vmax.f32 %v345_v23, 0.0  ;;  %v347_v31 = vadd.f32 %v346_v24, %v852_v52  ;;  %v387_v32 = vadd.f32 %v386_v28, %v852_v52  ;;  %v420_v34 = vmax.f32 %v385_v27, 0.0 }
 0x110   :  { %514 = vst [vmem:[%s924_s3 + $0x48] sm:$0xff] %v590_v25  ;;  %v348_v33 = vpop.f32.mrf.mxu0  ;;  %v388_v35 = vpop.f32.mrf.mxu1 }
 0x111   :  { %v583_v36 = vpack.c.bf16 %v404_v30, %v403_v29  ;;  %v349_v37 = vadd.f32 %v348_v33, %v854_v53  ;;  %v591_v39 = vpack.c.bf16 %v420_v34, %v419_v26  ;;  %v421_v40 = vmax.f32 %v387_v32, 0.0 }
 0x112   :  { %v352_v38 = vpop.f32.mrf.mxu0  ;;  %v389_v41 = vadd.f32 %v388_v35, %v854_v53  ;;  %v392_v42 = vpop.f32.mrf.mxu1  ;;  %v405_v43 = vmax.f32 %v347_v31, 0.0 }
 0x113   :  { %507 = vst [vmem:[%s924_s3 + $0x10] sm:$0xff] %v583_v36  ;;  %v406_v44 = vmax.f32 %v349_v37, 0.0  ;;  %v353_v45 = vadd.f32 %v352_v38, %v852_v52  ;;  %v393_v46 = vadd.f32 %v392_v42, %v852_v52  ;;  %515 = vst [vmem:[%s924_s3 + $0x50] sm:$0xff] %v591_v39 }
 0x114   :  { %v354_v47 = vpop.f32.mrf.mxu0  ;;  %v422_v48 = vmax.f32 %v389_v41, 0.0  ;;  %v394_v49 = vpop.f32.mrf.mxu1 }
 0x115   :  { %v584_v50 = vpack.c.bf16 %v406_v44, %v405_v43  ;;  %v355_v51 = vadd.f32 %v354_v47, %v854_v53  ;;  %v423_v56 = vmax.f32 %v393_v46, 0.0  ;;  %v395_v57 = vadd.f32 %v394_v49, %v854_v53 }
 0x116   :  { %v356_v54 = vpop.f32.mrf.mxu0  ;;  %v592_v55 = vpack.c.bf16 %v422_v48, %v421_v40  ;;  %v396_v58 = vpop.f32.mrf.mxu1  ;;  %v407_v59 = vmax.f32 %v353_v45, 0.0 }
 0x117   :  { %508 = vst [vmem:[%s924_s3 + $0x18] sm:$0xff] %v584_v50  ;;  %v408_v60 = vmax.f32 %v355_v51, 0.0  ;;  %v357_v61 = vadd.f32 %v356_v54, %v852_v52  ;;  %v424_v63 = vmax.f32 %v395_v57, 0.0 }
 0x118   :  { %516 = vst [vmem:[%s924_s3 + $0x58] sm:$0xff] %v592_v55  ;;  %v358_v62 = vpop.f32.mrf.mxu0  ;;  %v397_v0 = vpop.f32.mrf.mxu1 }
 0x119   :  { %v585_v1 = vpack.c.bf16 %v408_v60, %v407_v59  ;;  %v359_v2 = vadd.f32 %v358_v62, %v854_v53  ;;  %v593_v4 = vpack.c.bf16 %v424_v63, %v423_v56  ;;  %v409_v5 = vmax.f32 %v357_v61, 0.0 }
 0x11a   :  { %v362_v3 = vpop.f32.mrf.mxu0 }
 0x11b   :  { %509 = vst [vmem:[%s924_s3 + $0x20] sm:$0xff] %v585_v1  ;;  %v410_v6 = vmax.f32 %v359_v2, 0.0  ;;  %v363_v7 = vadd.f32 %v362_v3, %v852_v52  ;;  %517 = vst [vmem:[%s924_s3 + $0x60] sm:$0x11] %v593_v4 }
 0x11c   :  { %v364_v8 = vpop.f32.mrf.mxu0 }
 0x11d   :  { %v586_v9 = vpack.c.bf16 %v410_v6, %v409_v5  ;;  %v365_v10 = vadd.f32 %v364_v8, %v854_v53  ;;  %v411_v12 = vmax.f32 %v363_v7, 0.0 }
 0x11e   :  { %v366_v11 = vpop.f32.mrf.mxu0 }
 0x11f   :  { %510 = vst [vmem:[%s924_s3 + $0x28] sm:$0xff] %v586_v9  ;;  %v412_v13 = vmax.f32 %v365_v10, 0.0  ;;  %v367_v14 = vadd.f32 %v366_v11, %v852_v52 }
 0x120   :  { %v368_v15 = vpop.f32.mrf.mxu0 }
 0x121   :  { %v587_v16 = vpack.c.bf16 %v412_v13, %v411_v12  ;;  %v369_v17 = vadd.f32 %v368_v15, %v854_v53  ;;  %v413_v18 = vmax.f32 %v367_v14, 0.0 }
 0x123   :  { %511 = vst [vmem:[%s924_s3 + $0x30] sm:$0xff] %v587_v16  ;;  %v414_v19 = vmax.f32 %v369_v17, 0.0 }
 0x125   :  { %v588_v20 = vpack.c.bf16 %v414_v19, %v413_v18 }
 0x127   :  { %512 = vst [vmem:[%s924_s3 + $0x38] sm:$0xff] %v588_v20 }

// kernel: cvae_forward.9
= control target key start
LH: loop header
LB: loop body
LE: loop exit
PB: predicated region body
PF: predicated region fallthrough
CT: control target
= control target key end

     0   :  { %v1882_v0 = vmov 0   ;;  %v1883_v30 = vmov 0.0   ;;  %vm1884_vm0 = vmmov 0   ;;  %vm1306_vm1 = vcmask 31744   ;;  %s2496_s1 = inlined_call_operand.vmem [shape: bf16[256,128], index: 1, kind: input, shape index: {}]   ;;  %s2497_s0 = inlined_call_operand.vmem [shape: bf16[392,256], index: 0, kind: input, shape index: {}]   ;;  %s2498_s3 = inlined_call_operand.vmem [shape: bf16[128,4], index: 3, kind: input, shape index: {}]   ;;  %s2499_s2 = inlined_call_operand.vmem [shape: f32[1,128], index: 2, kind: input, shape index: {}]   ;;  %s2500_s4 = inlined_call_operand.vmem [shape: f32[1,4], index: 4, kind: input, shape index: {}]   ;;  %s2501_s5 = inlined_call_operand.vmem [shape: f32[392,4], index: 5, kind: output, shape index: {}]  }
   0x1   :  { %452 = vmatprep.subr.bf16.mxu0 %v1882_v0  ;;  %v1588_v1 = vld [vmem:[%s2496_s1 + $0x38] sm:$0xff]   ;;  %v1589_v2 = vld [vmem:[%s2496_s1 + $0x30] sm:$0xff]   ;;  %v1590_v3 = vld [vmem:[%s2496_s1 + $0x28] sm:$0xff]   ;;  %1469 = vmatprep.subr.bf16.mxu1 %v1883_v30 }
   0x2   :  { %453 = vmatpush1.bf16.msra.mxu0 %v1588_v1  ;;  %v1591_v4 = vld [vmem:[%s2496_s1 + $0x20] sm:$0xff]   ;;  %v1592_v5 = vld [vmem:[%s2496_s1 + $0x18] sm:$0xff]   ;;  %v1593_v7 = vld [vmem:[%s2496_s1 + $0x10] sm:$0xff]   ;;  %1485 = vmatprep.mubr.msk.bf16.mxu1 %vm1884_vm0, %v1883_v30 }
   0x3   :  { %454 = vmatprep.subr.bf16.mxu0 %v1882_v0  ;;  %v1606_v6 = vld [vmem:[%s2497_s0 + $0x4] ss:$8 sps:$4 sm:$0xff]   ;;  %v1596_v10 = vld [vmem:[%s2496_s1 + $0x78] sm:$0xff]   ;;  %v1597_v11 = vld [vmem:[%s2496_s1 + $0x70] sm:$0xff]  }
   0x4   :  { %484 = vmatprep.mubr.bf16.mxu0 %v1606_v6  ;;  %v1594_v8 = vld [vmem:[%s2496_s1 + $0x8] sm:$0xff]   ;;  %v1595_v9 = vld [vmem:[%s2496_s1] sm:$0xff]   ;;  %v1600_v14 = vld [vmem:[%s2496_s1 + $0x58] sm:$0xff]  }
   0x5   :  { %v1598_v12 = vld [vmem:[%s2496_s1 + $0x68] sm:$0xff]   ;;  %v1599_v13 = vld [vmem:[%s2496_s1 + $0x60] sm:$0xff]   ;;  %v1601_v15 = vld [vmem:[%s2496_s1 + $0x50] sm:$0xff]  }
   0x6   :  { %455 = vmatpush1.bf16.msra.mxu0 %v1589_v2  ;;  %v1602_v16 = vld [vmem:[%s2496_s1 + $0x48] sm:$0xff]   ;;  %v1603_v17 = vld [vmem:[%s2496_s1 + $0x40] sm:$0xff]   ;;  %v1607_v19 = vld [vmem:[%s2497_s0 + $0x14] ss:$8 sps:$4 sm:$0xff]  }
   0x7   :  { %456 = vmatprep.subr.bf16.mxu0 %v1882_v0  ;;  %v1604_v18 = vld [vmem:[%s2497_s0] ss:$8 sps:$4 sm:$0xff]   ;;  %v1609_v20 = vld [vmem:[%s2497_s0 + $0x10] ss:$8 sps:$4 sm:$0xff]   ;;  %v1610_v21 = vld [vmem:[%s2497_s0 + $0x24] ss:$8 sps:$4 sm:$0xff]  }
   0x8   :  { %v1612_v22 = vld [vmem:[%s2497_s0 + $0x20] ss:$8 sps:$4 sm:$0xff]   ;;  %v1613_v23 = vld [vmem:[%s2497_s0 + $0x34] ss:$8 sps:$4 sm:$0xff]   ;;  %v1615_v24 = vld [vmem:[%s2497_s0 + $0x30] ss:$8 sps:$4 sm:$0xff]  }
   0x9   :  { %v1616_v25 = vld [vmem:[%s2497_s0 + $0x44] ss:$8 sps:$4 sm:$0xff]   ;;  %v1618_v26 = vld [vmem:[%s2497_s0 + $0x40] ss:$8 sps:$4 sm:$0xff]   ;;  %v1619_v27 = vld [vmem:[%s2497_s0 + $0x54] ss:$8 sps:$4 sm:$0xff]  }
   0xa   :  { %457 = vmatpush1.bf16.msra.mxu0 %v1590_v3  ;;  %v1621_v28 = vld [vmem:[%s2497_s0 + $0x50] ss:$8 sps:$4 sm:$0xff]   ;;  %v1622_v29 = vld [vmem:[%s2497_s0 + $0x64] ss:$8 sps:$4 sm:$0xff]   ;;  %v1624_v32 = vld [vmem:[%s2497_s0 + $0x60] ss:$8 sps:$4 sm:$0xff]  }
   0xb   :  { %458 = vmatprep.subr.bf16.mxu0 %v1882_v0  ;;  %v1670_v31 = vld [vmem:[%s2498_s3 + $0x38] sm:$0xff]   ;;  %v1674_v34 = vld [vmem:[%s2498_s3 + $0x30] sm:$0xff]   ;;  %v1675_v35 = vld [vmem:[%s2498_s3 + $0x28] sm:$0xff]  }
   0xc   :  { %v1625_v33 = vld [vmem:[%s2497_s0 + $0x74] ss:$8 sps:$4 sm:$0xff]   ;;  %1470 = vmatpush3.bf16.msra.mxu1 %v1670_v31  ;;  %v1627_v36 = vld [vmem:[%s2497_s0 + $0x70] ss:$8 sps:$4 sm:$0xff]   ;;  %v1628_v37 = vld [vmem:[%s2497_s0 + $0x84] ss:$8 sps:$4 sm:$0xff]  }
   0xd   :  { %1471 = vmatprep.subr.bf16.mxu1 %v1883_v30  ;;  %v1679_v38 = vld [vmem:[%s2498_s3 + $0x20] sm:$0xff]   ;;  %v1680_v39 = vld [vmem:[%s2498_s3 + $0x18] sm:$0xff]   ;;  %v1683_v42 = vld [vmem:[%s2498_s3 + $0x10] sm:$0xff]  }
   0xe   :  { %459 = vmatpush1.bf16.msra.mxu0 %v1591_v4  ;;  %v1630_v40 = vld [vmem:[%s2497_s0 + $0x80] ss:$8 sps:$4 sm:$0xff]   ;;  %v1631_v41 = vld [vmem:[%s2497_s0 + $0x94] ss:$8 sps:$4 sm:$0xff]   ;;  %v1633_v44 = vld [vmem:[%s2497_s0 + $0x90] ss:$8 sps:$4 sm:$0xff]  }
   0xf   :  { %460 = vmatprep.subr.bf16.mxu0 %v1882_v0  ;;  %v1684_v43 = vld [vmem:[%s2498_s3 + $0x8] sm:$0xff]   ;;  %v1685_v46 = vld [vmem:[%s2498_s3] sm:$0xff]   ;;  %v1637_v48 = vld [vmem:[%s2497_s0 + $0xb4] ss:$8 sps:$4 sm:$0xff]  }
  0x10   :  { %1472 = vmatpush3.bf16.msra.mxu1 %v1674_v34  ;;  %v1634_v45 = vld [vmem:[%s2497_s0 + $0xa4] ss:$8 sps:$4 sm:$0xff]   ;;  %v1636_v47 = vld [vmem:[%s2497_s0 + $0xa0] ss:$8 sps:$4 sm:$0xff]   ;;  %v1639_v49 = vld [vmem:[%s2497_s0 + $0xb0] ss:$8 sps:$4 sm:$0xff]  }
  0x11   :  { %1473 = vmatprep.subr.bf16.mxu1 %v1883_v30  ;;  %v1640_v50 = vld [vmem:[%s2497_s0 + $0xc4] ss:$8 sps:$4 sm:$0xff]   ;;  %v1642_v51 = vld [vmem:[%s2497_s0 + $0xc0] ss:$8 sps:$4 sm:$0xff]   ;;  %v1643_v52 = vld [vmem:[%s2497_s0 + $0xd4] ss:$8 sps:$4 sm:$0xff]  }
  0x12   :  { %461 = vmatpush1.bf16.msra.mxu0 %v1592_v5  ;;  %v1645_v53 = vld [vmem:[%s2497_s0 + $0xd0] ss:$8 sps:$4 sm:$0xff]   ;;  %v1646_v54 = vld [vmem:[%s2497_s0 + $0xe4] ss:$8 sps:$4 sm:$0xff]   ;;  %v1648_v55 = vld [vmem:[%s2497_s0 + $0xe0] ss:$8 sps:$4 sm:$0xff]  }
  0x13   :  { %462 = vmatprep.subr.bf16.mxu0 %v1882_v0  ;;  %v1649_v56 = vld [vmem:[%s2497_s0 + $0xf4] ss:$8 sps:$4 sm:$0xff]   ;;  %v1651_v57 = vld [vmem:[%s2497_s0 + $0xf0] ss:$8 sps:$4 sm:$0xff]   ;;  %v1652_v58 = vld [vmem:[%s2497_s0 + $0x104] ss:$8 sps:$4 sm:$0xff]  }
  0x14   :  { %1474 = vmatpush3.bf16.msra.mxu1 %v1675_v35  ;;  %v1654_v59 = vld [vmem:[%s2497_s0 + $0x100] ss:$8 sps:$4 sm:$0xff]   ;;  %v1655_v60 = vld [vmem:[%s2497_s0 + $0x114] ss:$8 sps:$4 sm:$0xff]   ;;  %v1657_v61 = vld [vmem:[%s2497_s0 + $0x110] ss:$8 sps:$4 sm:$0xff]  }
  0x15   :  { %1475 = vmatprep.subr.bf16.mxu1 %v1883_v30  ;;  %v1658_v62 = vld [vmem:[%s2497_s0 + $0x124] ss:$8 sps:$4 sm:$0xff]   ;;  %v1660_v63 = vld [vmem:[%s2497_s0 + $0x120] ss:$8 sps:$4 sm:$0xff]   ;;  %v1663_v1 = vld [vmem:[%s2497_s0 + $0x130] ss:$8 sps:$4 sm:$0xff]  }
  0x16   :  { %463 = vmatpush1.bf16.msra.mxu0 %v1593_v7  ;;  %v1664_v2 = vld [vmem:[%s2497_s0 + $0x144] ss:$8 sps:$4 sm:$0xff]   ;;  %v1666_v3 = vld [vmem:[%s2497_s0 + $0x140] ss:$8 sps:$4 sm:$0xff]   ;;  %v1667_v4 = vld [vmem:[%s2497_s0 + $0x154] ss:$8 sps:$4 sm:$0xff]  }
  0x17   :  { %464 = vmatprep.subr.bf16.mxu0 %v1882_v0  ;;  %v1669_v5 = vld [vmem:[%s2497_s0 + $0x150] ss:$8 sps:$4 sm:$0xff]   ;;  %v1671_v6 = vld [vmem:[%s2497_s0 + $0x164] ss:$8 sps:$4 sm:$0xff]   ;;  %v1673_v7 = vld [vmem:[%s2497_s0 + $0x160] ss:$8 sps:$4 sm:$0xff]  }
  0x18   :  { %1476 = vmatpush3.bf16.msra.mxu1 %v1679_v38 }
  0x19   :  { %1477 = vmatprep.subr.bf16.mxu1 %v1883_v30 }
  0x1a   :  { %465 = vmatpush1.bf16.msra.mxu0 %v1594_v8  ;;  %v1676_v8 = vld [vmem:[%s2497_s0 + $0x174] ss:$8 sps:$4 sm:$0xff]  }
  0x1b   :  { %466 = vmatprep.subr.bf16.mxu0 %v1882_v0 }
  0x1c   :  { %1478 = vmatpush3.bf16.msra.mxu1 %v1680_v39 }
  0x1d   :  { %1479 = vmatprep.subr.bf16.mxu1 %v1883_v30 }
  0x1e   :  { %467 = vmatpush1.bf16.msra.mxu0 %v1595_v9  ;;  %v69_v9 = vld [vmem:[%s2497_s0 + $0x180] sm:$0xff] }
  0x1f   :  { %468 = vmatprep.subr.bf16.mxu0 %v1882_v0 }
  0x20   :  { %1480 = vmatpush3.bf16.msra.mxu1 %v1683_v42 }
  0x21   :  { %1481 = vmatprep.subr.bf16.mxu1 %v1883_v30 }
  0x22   :  { %469 = vmatpush2.bf16.msra.mxu0 %v1596_v10  ;;  %v1678_v10 = vld [vmem:[%s2497_s0 + $0x170] ss:$8 sps:$4 sm:$0xff]  }
  0x23   :  { %470 = vmatprep.subr.bf16.mxu0 %v1882_v0 }
  0x24   :  { %1482 = vmatpush3.bf16.msra.mxu1 %v1684_v43 }
  0x25   :  { %1483 = vmatprep.subr.bf16.mxu1 %v1883_v30 }
  0x26   :  { %471 = vmatpush2.bf16.msra.mxu0 %v1597_v11  ;;  %v1410_v11 = vcombine.high %v69_v9, %v69_v9 }
  0x27   :  { %472 = vmatprep.subr.bf16.mxu0 %v1882_v0 }
  0x28   :  { %1484 = vmatpush3.bf16.msra.mxu1 %v1685_v46 }
  0x2a   :  { %473 = vmatpush2.bf16.msra.mxu0 %v1598_v12  ;;  %v1409_v12 = vcombine.low %v69_v9, %v69_v9 }
  0x2b   :  { %474 = vmatprep.subr.bf16.mxu0 %v1882_v0 }
  0x2e   :  { %475 = vmatpush2.bf16.msra.mxu0 %v1599_v13  ;;  %v2147_v13 = vld [vmem:[%s2499_s2] ss:$0 sm:$0xff] }
  0x2f   :  { %476 = vmatprep.subr.bf16.mxu0 %v1882_v0 }
  0x32   :  { %477 = vmatpush2.bf16.msra.mxu0 %v1600_v14 }
  0x33   :  { %478 = vmatprep.subr.bf16.mxu0 %v1882_v0 }
  0x36   :  { %479 = vmatpush2.bf16.msra.mxu0 %v1601_v15 }
  0x37   :  { %480 = vmatprep.subr.bf16.mxu0 %v1882_v0 }
  0x3a   :  { %481 = vmatpush2.bf16.msra.mxu0 %v1602_v16 }
  0x3b   :  { %482 = vmatprep.subr.bf16.mxu0 %v1882_v0  ;;  %v1661_v0 = vld [vmem:[%s2497_s0 + $0x134] ss:$8 sps:$4 sm:$0xff]  }
  0x3e   :  { %483 = vmatpush2.bf16.msra.mxu0 %v1603_v17 }
  0x41   :  { %485 = vmatmul.mubr.bf16.vlgmr.msra.gmra.mxu0 %v1604_v18 }
  0x42   :  { %492 = vmatprep.mubr.bf16.mxu0 %v1607_v19 }
  0x49   :  { %493 = vmatmul.mubr.bf16.gmra.mxu0 %v1609_v20 }
  0x4a   :  { %500 = vmatprep.mubr.bf16.mxu0 %v1610_v21 }
  0x51   :  { %501 = vmatmul.mubr.bf16.gmra.mxu0 %v1612_v22 }
  0x52   :  { %508 = vmatprep.mubr.bf16.mxu0 %v1613_v23 }
  0x59   :  { %509 = vmatmul.mubr.bf16.gmra.mxu0 %v1615_v24 }
  0x5a   :  { %516 = vmatprep.mubr.bf16.mxu0 %v1616_v25 }
  0x61   :  { %517 = vmatmul.mubr.bf16.gmra.mxu0 %v1618_v26 }
  0x62   :  { %524 = vmatprep.mubr.bf16.mxu0 %v1619_v27 }
  0x69   :  { %525 = vmatmul.mubr.bf16.gmra.mxu0 %v1621_v28 }
  0x6a   :  { %532 = vmatprep.mubr.bf16.mxu0 %v1622_v29 }
  0x71   :  { %533 = vmatmul.mubr.bf16.gmra.mxu0 %v1624_v32 }
  0x72   :  { %540 = vmatprep.mubr.bf16.mxu0 %v1625_v33 }
  0x79   :  { %541 = vmatmul.mubr.bf16.gmra.mxu0 %v1627_v36 }
  0x7a   :  { %548 = vmatprep.mubr.bf16.mxu0 %v1628_v37 }
  0x81   :  { %549 = vmatmul.mubr.bf16.gmra.mxu0 %v1630_v40 }
  0x82   :  { %556 = vmatprep.mubr.bf16.mxu0 %v1631_v41 }
  0x89   :  { %557 = vmatmul.mubr.bf16.gmra.mxu0 %v1633_v44 }
  0x8a   :  { %564 = vmatprep.mubr.bf16.mxu0 %v1634_v45 }
  0x91   :  { %565 = vmatmul.mubr.bf16.gmra.mxu0 %v1636_v47 }
  0x92   :  { %572 = vmatprep.mubr.bf16.mxu0 %v1637_v48 }
  0x99   :  { %573 = vmatmul.mubr.bf16.gmra.mxu0 %v1639_v49 }
  0x9a   :  { %580 = vmatprep.mubr.bf16.mxu0 %v1640_v50 }
  0xa1   :  { %581 = vmatmul.mubr.bf16.gmra.mxu0 %v1642_v51 }
  0xa2   :  { %588 = vmatprep.mubr.bf16.mxu0 %v1643_v52 }
  0xa9   :  { %589 = vmatmul.mubr.bf16.gmra.mxu0 %v1645_v53 }
  0xaa   :  { %596 = vmatprep.mubr.bf16.mxu0 %v1646_v54 }
  0xb1   :  { %597 = vmatmul.mubr.bf16.gmra.mxu0 %v1648_v55 }
  0xb2   :  { %604 = vmatprep.mubr.bf16.mxu0 %v1649_v56 }
  0xb9   :  { %605 = vmatmul.mubr.bf16.gmra.mxu0 %v1651_v57 }
  0xba   :  { %612 = vmatprep.mubr.bf16.mxu0 %v1652_v58 }
  0xc1   :  { %613 = vmatmul.mubr.bf16.gmra.mxu0 %v1654_v59 }
  0xc2   :  { %620 = vmatprep.mubr.bf16.mxu0 %v1655_v60 }
  0xc9   :  { %621 = vmatmul.mubr.bf16.gmra.mxu0 %v1657_v61 }
  0xca   :  { %628 = vmatprep.mubr.bf16.mxu0 %v1658_v62 }
  0xd1   :  { %629 = vmatmul.mubr.bf16.gmra.mxu0 %v1660_v63 }
  0xd2   :  { %636 = vmatprep.mubr.bf16.mxu0 %v1661_v0 }
  0xd9   :  { %637 = vmatmul.mubr.bf16.gmra.mxu0 %v1663_v1 }
  0xda   :  { %644 = vmatprep.mubr.bf16.mxu0 %v1664_v2 }
  0xe1   :  { %645 = vmatmul.mubr.bf16.gmra.mxu0 %v1666_v3 }
  0xe2   :  { %652 = vmatprep.mubr.bf16.mxu0 %v1667_v4 }
  0xe9   :  { %653 = vmatmul.mubr.bf16.gmra.mxu0 %v1669_v5 }
  0xea   :  { %660 = vmatprep.mubr.bf16.mxu0 %v1671_v6 }
  0xf1   :  { %661 = vmatmul.mubr.bf16.gmra.mxu0 %v1673_v7 }
  0xf2   :  { %668 = vmatprep.mubr.bf16.mxu0 %v1676_v8 }
  0xf9   :  { %669 = vmatmul.mubr.bf16.gmra.mxu0 %v1678_v10 }
  0xfa   :  { %676 = vmatprep.mubr.bf16.mxu0 %v1410_v11 }
 0x101   :  { %v486_v14 = vpop.f32.mrf.mxu0  ;;  %677 = vmatmul.mubr.bf16.gmra.mxu0 %v1409_v12 }
 0x102   :  { %v487_v16 = vadd.f32 %v2147_v13, %v486_v14 }
 0x103   :  { %v488_v15 = vpop.f32.mrf.mxu0 }
 0x104   :  { %v684_v20 = vmax.f32 %v487_v16, 0.0 }
 0x105   :  { %v489_v17 = vpop.f32.mrf.mxu0 }
 0x106   :  { %v490_v18 = vadd.f32 %v2147_v13, %v489_v17 }
 0x107   :  { %v491_v19 = vpop.f32.mrf.mxu0 }
 0x108   :  { %v685_v21 = vmax.f32 %v490_v18, 0.0 }
 0x109   :  { %v494_v22 = vpop.f32.mrf.mxu0 }
 0x10a   :  { %v733_v23 = vpack.c.bf16 %v685_v21, %v684_v20  ;;  %v495_v25 = vadd.f32 %v2147_v13, %v494_v22 }
 0x10b   :  { %v496_v24 = vpop.f32.mrf.mxu0 }
 0x10c   :  { %1486 = vmatmul.mubr.bf16.vlgmr.msra.gmra.mxu1 %v733_v23  ;;  %v686_v29 = vmax.f32 %v495_v25, 0.0 }
 0x10d   :  { %v497_v26 = vpop.f32.mrf.mxu0  ;;  %1489 = vmatprep.mubr.msk.bf16.mxu1 %vm1884_vm0, %v1883_v30 }
 0x10e   :  { %v498_v27 = vadd.f32 %v2147_v13, %v497_v26 }
 0x10f   :  { %v499_v28 = vpop.f32.mrf.mxu0 }
 0x110   :  { %v687_v31 = vmax.f32 %v498_v27, 0.0 }
 0x111   :  { %v502_v32 = vpop.f32.mrf.mxu0 }
 0x112   :  { %v734_v33 = vpack.c.bf16 %v687_v31, %v686_v29  ;;  %v503_v35 = vadd.f32 %v2147_v13, %v502_v32 }
 0x113   :  { %v504_v34 = vpop.f32.mrf.mxu0 }
 0x114   :  { %1490 = vmatmul.mubr.bf16.gmra.mxu1 %v734_v33  ;;  %v688_v39 = vmax.f32 %v503_v35, 0.0 }
 0x115   :  { %v505_v36 = vpop.f32.mrf.mxu0  ;;  %1493 = vmatprep.mubr.msk.bf16.mxu1 %vm1884_vm0, %v1883_v30 }
 0x116   :  { %v506_v37 = vadd.f32 %v2147_v13, %v505_v36 }
 0x117   :  { %v507_v38 = vpop.f32.mrf.mxu0 }
 0x118   :  { %v689_v40 = vmax.f32 %v506_v37, 0.0 }
 0x119   :  { %v510_v41 = vpop.f32.mrf.mxu0 }
 0x11a   :  { %v735_v42 = vpack.c.bf16 %v689_v40, %v688_v39  ;;  %v511_v44 = vadd.f32 %v2147_v13, %v510_v41 }
 0x11b   :  { %v512_v43 = vpop.f32.mrf.mxu0 }
 0x11c   :  { %1494 = vmatmul.mubr.bf16.gmra.mxu1 %v735_v42  ;;  %v690_v48 = vmax.f32 %v511_v44, 0.0 }
 0x11d   :  { %v513_v45 = vpop.f32.mrf.mxu0  ;;  %1497 = vmatprep.mubr.msk.bf16.mxu1 %vm1884_vm0, %v1883_v30 }
 0x11e   :  { %v514_v46 = vadd.f32 %v2147_v13, %v513_v45 }
 0x11f   :  { %v515_v47 = vpop.f32.mrf.mxu0 }
 0x120   :  { %v691_v49 = vmax.f32 %v514_v46, 0.0 }
 0x121   :  { %v518_v50 = vpop.f32.mrf.mxu0 }
 0x122   :  { %v736_v51 = vpack.c.bf16 %v691_v49, %v690_v48  ;;  %v519_v53 = vadd.f32 %v2147_v13, %v518_v50 }
 0x123   :  { %v520_v52 = vpop.f32.mrf.mxu0 }
 0x124   :  { %1498 = vmatmul.mubr.bf16.gmra.mxu1 %v736_v51  ;;  %v692_v57 = vmax.f32 %v519_v53, 0.0 }
 0x125   :  { %v521_v54 = vpop.f32.mrf.mxu0  ;;  %1501 = vmatprep.mubr.msk.bf16.mxu1 %vm1884_vm0, %v1883_v30 }
 0x126   :  { %v522_v55 = vadd.f32 %v2147_v13, %v521_v54 }
 0x127   :  { %v523_v56 = vpop.f32.mrf.mxu0 }
 0x128   :  { %v693_v58 = vmax.f32 %v522_v55, 0.0 }
 0x129   :  { %v526_v59 = vpop.f32.mrf.mxu0 }
 0x12a   :  { %v737_v60 = vpack.c.bf16 %v693_v58, %v692_v57  ;;  %v527_v62 = vadd.f32 %v2147_v13, %v526_v59 }
 0x12b   :  { %v528_v61 = vpop.f32.mrf.mxu0 }
 0x12c   :  { %1502 = vmatmul.mubr.bf16.gmra.mxu1 %v737_v60  ;;  %v694_v2 = vmax.f32 %v527_v62, 0.0 }
 0x12d   :  { %v529_v63 = vpop.f32.mrf.mxu0  ;;  %1505 = vmatprep.mubr.msk.bf16.mxu1 %vm1884_vm0, %v1883_v30 }
 0x12e   :  { %v530_v0 = vadd.f32 %v2147_v13, %v529_v63 }
 0x12f   :  { %v531_v1 = vpop.f32.mrf.mxu0 }
 0x130   :  { %v695_v3 = vmax.f32 %v530_v0, 0.0 }
 0x131   :  { %v534_v4 = vpop.f32.mrf.mxu0 }
 0x132   :  { %v738_v5 = vpack.c.bf16 %v695_v3, %v694_v2  ;;  %v535_v7 = vadd.f32 %v2147_v13, %v534_v4 }
 0x133   :  { %v536_v6 = vpop.f32.mrf.mxu0 }
 0x134   :  { %1506 = vmatmul.mubr.bf16.gmra.mxu1 %v738_v5  ;;  %v696_v11 = vmax.f32 %v535_v7, 0.0 }
 0x135   :  { %v537_v8 = vpop.f32.mrf.mxu0  ;;  %1509 = vmatprep.mubr.msk.bf16.mxu1 %vm1884_vm0, %v1883_v30 }
 0x136   :  { %v538_v9 = vadd.f32 %v2147_v13, %v537_v8 }
 0x137   :  { %v539_v10 = vpop.f32.mrf.mxu0 }
 0x138   :  { %v697_v12 = vmax.f32 %v538_v9, 0.0 }
 0x139   :  { %v542_v14 = vpop.f32.mrf.mxu0 }
 0x13a   :  { %v739_v15 = vpack.c.bf16 %v697_v12, %v696_v11  ;;  %v543_v17 = vadd.f32 %v2147_v13, %v542_v14 }
 0x13b   :  { %v544_v16 = vpop.f32.mrf.mxu0 }
 0x13c   :  { %1510 = vmatmul.mubr.bf16.gmra.mxu1 %v739_v15  ;;  %v698_v21 = vmax.f32 %v543_v17, 0.0 }
 0x13d   :  { %v545_v18 = vpop.f32.mrf.mxu0  ;;  %1513 = vmatprep.mubr.msk.bf16.mxu1 %vm1884_vm0, %v1883_v30 }
 0x13e   :  { %v546_v19 = vadd.f32 %v2147_v13, %v545_v18 }
 0x13f   :  { %v547_v20 = vpop.f32.mrf.mxu0 }
 0x140   :  { %v699_v22 = vmax.f32 %v546_v19, 0.0 }
 0x141   :  { %v550_v23 = vpop.f32.mrf.mxu0 }
 0x142   :  { %v740_v24 = vpack.c.bf16 %v699_v22, %v698_v21  ;;  %v551_v26 = vadd.f32 %v2147_v13, %v550_v23 }
 0x143   :  { %v552_v25 = vpop.f32.mrf.mxu0 }
 0x144   :  { %1514 = vmatmul.mubr.bf16.gmra.mxu1 %v740_v24  ;;  %v700_v31 = vmax.f32 %v551_v26, 0.0 }
 0x145   :  { %v553_v27 = vpop.f32.mrf.mxu0  ;;  %1517 = vmatprep.mubr.msk.bf16.mxu1 %vm1884_vm0, %v1883_v30 }
 0x146   :  { %v554_v28 = vadd.f32 %v2147_v13, %v553_v27 }
 0x147   :  { %v555_v29 = vpop.f32.mrf.mxu0 }
 0x148   :  { %v701_v32 = vmax.f32 %v554_v28, 0.0 }
 0x149   :  { %v558_v33 = vpop.f32.mrf.mxu0 }
 0x14a   :  { %v741_v34 = vpack.c.bf16 %v701_v32, %v700_v31  ;;  %v559_v36 = vadd.f32 %v2147_v13, %v558_v33 }
 0x14b   :  { %v560_v35 = vpop.f32.mrf.mxu0 }
 0x14c   :  { %1518 = vmatmul.mubr.bf16.gmra.mxu1 %v741_v34  ;;  %v702_v40 = vmax.f32 %v559_v36, 0.0 }
 0x14d   :  { %v561_v37 = vpop.f32.mrf.mxu0  ;;  %1521 = vmatprep.mubr.msk.bf16.mxu1 %vm1884_vm0, %v1883_v30 }
 0x14e   :  { %v562_v38 = vadd.f32 %v2147_v13, %v561_v37 }
 0x14f   :  { %v563_v39 = vpop.f32.mrf.mxu0 }
 0x150   :  { %v703_v41 = vmax.f32 %v562_v38, 0.0 }
 0x151   :  { %v566_v42 = vpop.f32.mrf.mxu0 }
 0x152   :  { %v742_v43 = vpack.c.bf16 %v703_v41, %v702_v40  ;;  %v567_v45 = vadd.f32 %v2147_v13, %v566_v42 }
 0x153   :  { %v568_v44 = vpop.f32.mrf.mxu0 }
 0x154   :  { %1522 = vmatmul.mubr.bf16.gmra.mxu1 %v742_v43  ;;  %v704_v49 = vmax.f32 %v567_v45, 0.0 }
 0x155   :  { %v569_v46 = vpop.f32.mrf.mxu0  ;;  %1525 = vmatprep.mubr.msk.bf16.mxu1 %vm1884_vm0, %v1883_v30 }
 0x156   :  { %v570_v47 = vadd.f32 %v2147_v13, %v569_v46 }
 0x157   :  { %v571_v48 = vpop.f32.mrf.mxu0 }
 0x158   :  { %v705_v50 = vmax.f32 %v570_v47, 0.0 }
 0x159   :  { %v574_v51 = vpop.f32.mrf.mxu0 }
 0x15a   :  { %v743_v52 = vpack.c.bf16 %v705_v50, %v704_v49  ;;  %v575_v54 = vadd.f32 %v2147_v13, %v574_v51 }
 0x15b   :  { %v576_v53 = vpop.f32.mrf.mxu0 }
 0x15c   :  { %1526 = vmatmul.mubr.bf16.gmra.mxu1 %v743_v52  ;;  %v706_v58 = vmax.f32 %v575_v54, 0.0 }
 0x15d   :  { %v577_v55 = vpop.f32.mrf.mxu0  ;;  %1529 = vmatprep.mubr.msk.bf16.mxu1 %vm1884_vm0, %v1883_v30 }
 0x15e   :  { %v578_v56 = vadd.f32 %v2147_v13, %v577_v55 }
 0x15f   :  { %v579_v57 = vpop.f32.mrf.mxu0 }
 0x160   :  { %v707_v59 = vmax.f32 %v578_v56, 0.0 }
 0x161   :  { %v582_v60 = vpop.f32.mrf.mxu0 }
 0x162   :  { %v744_v61 = vpack.c.bf16 %v707_v59, %v706_v58  ;;  %v583_v63 = vadd.f32 %v2147_v13, %v582_v60 }
 0x163   :  { %v584_v62 = vpop.f32.mrf.mxu0 }
 0x164   :  { %1530 = vmatmul.mubr.bf16.gmra.mxu1 %v744_v61  ;;  %v708_v3 = vmax.f32 %v583_v63, 0.0 }
 0x165   :  { %v585_v0 = vpop.f32.mrf.mxu0  ;;  %1533 = vmatprep.mubr.msk.bf16.mxu1 %vm1884_vm0, %v1883_v30 }
 0x166   :  { %v586_v1 = vadd.f32 %v2147_v13, %v585_v0 }
 0x167   :  { %v587_v2 = vpop.f32.mrf.mxu0 }
 0x168   :  { %v709_v4 = vmax.f32 %v586_v1, 0.0 }
 0x169   :  { %v590_v5 = vpop.f32.mrf.mxu0 }
 0x16a   :  { %v745_v6 = vpack.c.bf16 %v709_v4, %v708_v3  ;;  %v591_v8 = vadd.f32 %v2147_v13, %v590_v5 }
 0x16b   :  { %v592_v7 = vpop.f32.mrf.mxu0 }
 0x16c   :  { %1534 = vmatmul.mubr.bf16.gmra.mxu1 %v745_v6  ;;  %v710_v12 = vmax.f32 %v591_v8, 0.0 }
 0x16d   :  { %v593_v9 = vpop.f32.mrf.mxu0  ;;  %1537 = vmatprep.mubr.msk.bf16.mxu1 %vm1884_vm0, %v1883_v30 }
 0x16e   :  { %v594_v10 = vadd.f32 %v2147_v13, %v593_v9 }
 0x16f   :  { %v595_v11 = vpop.f32.mrf.mxu0 }
 0x170   :  { %v711_v14 = vmax.f32 %v594_v10, 0.0 }
 0x171   :  { %v598_v15 = vpop.f32.mrf.mxu0 }
 0x172   :  { %v746_v16 = vpack.c.bf16 %v711_v14, %v710_v12  ;;  %v599_v18 = vadd.f32 %v2147_v13, %v598_v15 }
 0x173   :  { %v600_v17 = vpop.f32.mrf.mxu0 }
 0x174   :  { %1538 = vmatmul.mubr.bf16.gmra.mxu1 %v746_v16  ;;  %v712_v22 = vmax.f32 %v599_v18, 0.0 }
 0x175   :  { %v601_v19 = vpop.f32.mrf.mxu0  ;;  %1541 = vmatprep.mubr.msk.bf16.mxu1 %vm1884_vm0, %v1883_v30 }
 0x176   :  { %v602_v20 = vadd.f32 %v2147_v13, %v601_v19 }
 0x177   :  { %v603_v21 = vpop.f32.mrf.mxu0 }
 0x178   :  { %v713_v23 = vmax.f32 %v602_v20, 0.0 }
 0x179   :  { %v606_v24 = vpop.f32.mrf.mxu0 }
 0x17a   :  { %v747_v25 = vpack.c.bf16 %v713_v23, %v712_v22  ;;  %v607_v27 = vadd.f32 %v2147_v13, %v606_v24 }
 0x17b   :  { %v608_v26 = vpop.f32.mrf.mxu0 }
 0x17c   :  { %1542 = vmatmul.mubr.bf16.gmra.mxu1 %v747_v25  ;;  %v714_v32 = vmax.f32 %v607_v27, 0.0 }
 0x17d   :  { %v609_v28 = vpop.f32.mrf.mxu0  ;;  %1545 = vmatprep.mubr.msk.bf16.mxu1 %vm1884_vm0, %v1883_v30 }
 0x17e   :  { %v610_v29 = vadd.f32 %v2147_v13, %v609_v28 }
 0x17f   :  { %v611_v31 = vpop.f32.mrf.mxu0 }
 0x180   :  { %v715_v33 = vmax.f32 %v610_v29, 0.0 }
 0x181   :  { %v614_v34 = vpop.f32.mrf.mxu0 }
 0x182   :  { %v748_v35 = vpack.c.bf16 %v715_v33, %v714_v32  ;;  %v615_v37 = vadd.f32 %v2147_v13, %v614_v34 }
 0x183   :  { %v616_v36 = vpop.f32.mrf.mxu0 }
 0x184   :  { %1546 = vmatmul.mubr.bf16.gmra.mxu1 %v748_v35  ;;  %v716_v41 = vmax.f32 %v615_v37, 0.0 }
 0x185   :  { %v617_v38 = vpop.f32.mrf.mxu0  ;;  %1549 = vmatprep.mubr.msk.bf16.mxu1 %vm1884_vm0, %v1883_v30 }
 0x186   :  { %v618_v39 = vadd.f32 %v2147_v13, %v617_v38 }
 0x187   :  { %v619_v40 = vpop.f32.mrf.mxu0 }
 0x188   :  { %v717_v42 = vmax.f32 %v618_v39, 0.0 }
 0x189   :  { %v622_v43 = vpop.f32.mrf.mxu0 }
 0x18a   :  { %v749_v44 = vpack.c.bf16 %v717_v42, %v716_v41  ;;  %v623_v46 = vadd.f32 %v2147_v13, %v622_v43 }
 0x18b   :  { %v624_v45 = vpop.f32.mrf.mxu0 }
 0x18c   :  { %1550 = vmatmul.mubr.bf16.gmra.mxu1 %v749_v44  ;;  %v718_v50 = vmax.f32 %v623_v46, 0.0 }
 0x18d   :  { %v625_v47 = vpop.f32.mrf.mxu0  ;;  %1553 = vmatprep.mubr.msk.bf16.mxu1 %vm1884_vm0, %v1883_v30 }
 0x18e   :  { %v626_v48 = vadd.f32 %v2147_v13, %v625_v47 }
 0x18f   :  { %v627_v49 = vpop.f32.mrf.mxu0 }
 0x190   :  { %v719_v51 = vmax.f32 %v626_v48, 0.0 }
 0x191   :  { %v630_v52 = vpop.f32.mrf.mxu0 }
 0x192   :  { %v750_v53 = vpack.c.bf16 %v719_v51, %v718_v50  ;;  %v631_v55 = vadd.f32 %v2147_v13, %v630_v52  ;;  %v2249_v52 = vld [vmem:[%s2500_s4] ss:$0 sm:$0xff] }
 0x193   :  { %v632_v54 = vpop.f32.mrf.mxu0 }
 0x194   :  { %1554 = vmatmul.mubr.bf16.gmra.mxu1 %v750_v53  ;;  %v720_v59 = vmax.f32 %v631_v55, 0.0 }
 0x195   :  { %v633_v56 = vpop.f32.mrf.mxu0  ;;  %1557 = vmatprep.mubr.msk.bf16.mxu1 %vm1884_vm0, %v1883_v30 }
 0x196   :  { %v634_v57 = vadd.f32 %v2147_v13, %v633_v56 }
 0x197   :  { %v635_v58 = vpop.f32.mrf.mxu0 }
 0x198   :  { %v721_v60 = vmax.f32 %v634_v57, 0.0 }
 0x199   :  { %v638_v61 = vpop.f32.mrf.mxu0 }
 0x19a   :  { %v751_v62 = vpack.c.bf16 %v721_v60, %v720_v59  ;;  %v639_v0 = vadd.f32 %v2147_v13, %v638_v61 }
 0x19b   :  { %v640_v63 = vpop.f32.mrf.mxu0 }
 0x19c   :  { %1558 = vmatmul.mubr.bf16.gmra.mxu1 %v751_v62  ;;  %v722_v4 = vmax.f32 %v639_v0, 0.0 }
 0x19d   :  { %v641_v1 = vpop.f32.mrf.mxu0  ;;  %1561 = vmatprep.mubr.msk.bf16.mxu1 %vm1884_vm0, %v1883_v30 }
 0x19e   :  { %v642_v2 = vadd.f32 %v2147_v13, %v641_v1 }
 0x19f   :  { %v643_v3 = vpop.f32.mrf.mxu0 }
 0x1a0   :  { %v723_v5 = vmax.f32 %v642_v2, 0.0 }
 0x1a1   :  { %v646_v6 = vpop.f32.mrf.mxu0 }
 0x1a2   :  { %v752_v7 = vpack.c.bf16 %v723_v5, %v722_v4  ;;  %v647_v9 = vadd.f32 %v2147_v13, %v646_v6 }
 0x1a3   :  { %v648_v8 = vpop.f32.mrf.mxu0 }
 0x1a4   :  { %1562 = vmatmul.mubr.bf16.gmra.mxu1 %v752_v7  ;;  %v724_v14 = vmax.f32 %v647_v9, 0.0 }
 0x1a5   :  { %v649_v10 = vpop.f32.mrf.mxu0  ;;  %1565 = vmatprep.mubr.msk.bf16.mxu1 %vm1884_vm0, %v1883_v30 }
 0x1a6   :  { %v650_v11 = vadd.f32 %v2147_v13, %v649_v10 }
 0x1a7   :  { %v651_v12 = vpop.f32.mrf.mxu0 }
 0x1a8   :  { %v725_v15 = vmax.f32 %v650_v11, 0.0 }
 0x1a9   :  { %v654_v16 = vpop.f32.mrf.mxu0 }
 0x1aa   :  { %v753_v17 = vpack.c.bf16 %v725_v15, %v724_v14  ;;  %v655_v19 = vadd.f32 %v2147_v13, %v654_v16 }
 0x1ab   :  { %v656_v18 = vpop.f32.mrf.mxu0 }
 0x1ac   :  { %1566 = vmatmul.mubr.bf16.gmra.mxu1 %v753_v17  ;;  %v726_v23 = vmax.f32 %v655_v19, 0.0 }
 0x1ad   :  { %v657_v20 = vpop.f32.mrf.mxu0  ;;  %1569 = vmatprep.mubr.msk.bf16.mxu1 %vm1884_vm0, %v1883_v30 }
 0x1ae   :  { %v658_v21 = vadd.f32 %v2147_v13, %v657_v20 }
 0x1af   :  { %v659_v22 = vpop.f32.mrf.mxu0 }
 0x1b0   :  { %v727_v24 = vmax.f32 %v658_v21, 0.0 }
 0x1b1   :  { %v662_v25 = vpop.f32.mrf.mxu0 }
 0x1b2   :  { %v754_v26 = vpack.c.bf16 %v727_v24, %v726_v23  ;;  %v663_v28 = vadd.f32 %v2147_v13, %v662_v25 }
 0x1b3   :  { %v664_v27 = vpop.f32.mrf.mxu0 }
 0x1b4   :  { %1570 = vmatmul.mubr.bf16.gmra.mxu1 %v754_v26  ;;  %v728_v33 = vmax.f32 %v663_v28, 0.0 }
 0x1b5   :  { %v665_v29 = vpop.f32.mrf.mxu0  ;;  %1573 = vmatprep.mubr.msk.bf16.mxu1 %vm1884_vm0, %v1883_v30 }
 0x1b6   :  { %v666_v31 = vadd.f32 %v2147_v13, %v665_v29 }
 0x1b7   :  { %v667_v32 = vpop.f32.mrf.mxu0 }
 0x1b8   :  { %v729_v34 = vmax.f32 %v666_v31, 0.0 }
 0x1b9   :  { %v670_v35 = vpop.f32.mrf.mxu0 }
 0x1ba   :  { %v755_v36 = vpack.c.bf16 %v729_v34, %v728_v33  ;;  %v671_v38 = vadd.f32 %v2147_v13, %v670_v35 }
 0x1bb   :  { %v672_v37 = vpop.f32.mrf.mxu0 }
 0x1bc   :  { %1574 = vmatmul.mubr.bf16.gmra.mxu1 %v755_v36  ;;  %v730_v42 = vmax.f32 %v671_v38, 0.0 }
 0x1bd   :  { %v673_v39 = vpop.f32.mrf.mxu0  ;;  %1577 = vmatprep.mubr.msk.bf16.mxu1 %vm1884_vm0, %v1883_v30 }
 0x1be   :  { %v674_v40 = vadd.f32 %v2147_v13, %v673_v39 }
 0x1bf   :  { %v675_v41 = vpop.f32.mrf.mxu0 }
 0x1c0   :  { %v731_v43 = vmax.f32 %v674_v40, 0.0 }
 0x1c1   :  { %v678_v44 = vpop.f32.mrf.mxu0 }
 0x1c2   :  { %v756_v45 = vpack.c.bf16 %v731_v43, %v730_v42  ;;  %v679_v46 = vadd.f32 %v2147_v13, %v678_v44 }
 0x1c3   :  { %v680_v47 = vpop.f32.mrf.mxu0 }
 0x1c4   :  { %v732_v48 = vmax.f32 %v679_v46, 0.0  ;;  %1578 = vmatmul.mubr.bf16.gmra.mxu1 %v756_v45 }
 0x1c5   :  { %v681_v49 = vpop.f32.mrf.mxu0  ;;  %1581 = vmatprep.mubr.msk.bf16.mxu1 %vm1884_vm0, %v1883_v30 }
 0x1c6   :  { %v757_v51 = vpack.c.bf16 %v732_v48, %v732_v48 }
 0x1c7   :  { %v682_v50 = vpop.f32.mrf.mxu0 }
 0x1cc   :  { %v863_v53 = vpop.f32.mrf.mxu1  ;;  %1582 = vmatmul.mubr.bf16.gmra.mxu1 %v757_v51 }
 0x1cd   :  { %v864_v54 = vadd.f32 %v2249_v52, %v863_v53 }
 0x1ce   :  { %v1487_v55 = vpop.f32.mrf.mxu1 }
 0x1cf   :  { %v1061_v13 = vsub.f32 0.0, %v864_v54 }
 0x1d0   :  { %v866_v56 = vpop.f32.mrf.mxu1 }
 0x1d1   :  { %v1110_v57 = vmul.f32 1.442695, %v1061_v13  ;;  %v867_v58 = vadd.f32 %v2249_v52, %v866_v56 }
 0x1d2   :  { %v1488_v59 = vpop.f32.mrf.mxu1 }
 0x1d3   :  { %1686 = vpow2.f32 %v1110_v57  ;;  %v1062_v30 = vsub.f32 0.0, %v867_v58 }
 0x1d4   :  { %v871_v60 = vpop.f32.mrf.mxu1 }
 0x1d5   :  { %v1112_v61 = vmul.f32 1.442695, %v1062_v30  ;;  %v872_v62 = vadd.f32 %v2249_v52, %v871_v60 }
 0x1d6   :  { %v1491_v63 = vpop.f32.mrf.mxu1 }
 0x1d7   :  { %1688 = vpow2.f32 %v1112_v61  ;;  %v1063_v0 = vsub.f32 0.0, %v872_v62 }
 0x1d8   :  { %v874_v1 = vpop.f32.mrf.mxu1 }
 0x1d9   :  { %v1114_v2 = vmul.f32 1.442695, %v1063_v0  ;;  %v875_v3 = vadd.f32 %v2249_v52, %v874_v1 }
 0x1da   :  { %v1492_v4 = vpop.f32.mrf.mxu1 }
 0x1db   :  { %1690 = vpow2.f32 %v1114_v2  ;;  %v1064_v5 = vsub.f32 0.0, %v875_v3 }
 0x1dc   :  { %v879_v6 = vpop.f32.mrf.mxu1 }
 0x1dd   :  { %v1116_v7 = vmul.f32 1.442695, %v1064_v5  ;;  %v880_v8 = vadd.f32 %v2249_v52, %v879_v6 }
 0x1de   :  { %v1495_v9 = vpop.f32.mrf.mxu1 }
 0x1df   :  { %1692 = vpow2.f32 %v1116_v7  ;;  %v1065_v10 = vsub.f32 0.0, %v880_v8 }
 0x1e0   :  { %v1687_v11 = vpop.eup %1686  ;;  %v882_v12 = vpop.f32.mrf.mxu1 }
 0x1e1   :  { %v1208_v14 = vadd.f32 1.0, %v1687_v11  ;;  %v1118_v15 = vmul.f32 1.442695, %v1065_v10  ;;  %v883_v16 = vadd.f32 %v2249_v52, %v882_v12 }
 0x1e2   :  { %v1496_v17 = vpop.f32.mrf.mxu1 }
 0x1e3   :  { %1694 = vrcp.f32 %v1208_v14  ;;  %v1066_v18 = vsub.f32 0.0, %v883_v16 }
 0x1e4   :  { %v1689_v19 = vpop.eup %1688  ;;  %1696 = vpow2.f32 %v1118_v15  ;;  %v887_v20 = vpop.f32.mrf.mxu1 }
 0x1e5   :  { %v1209_v21 = vadd.f32 1.0, %v1689_v19  ;;  %v1120_v22 = vmul.f32 1.442695, %v1066_v18  ;;  %v888_v23 = vadd.f32 %v2249_v52, %v887_v20 }
 0x1e6   :  { %v1499_v24 = vpop.f32.mrf.mxu1 }
 0x1e7   :  { %1698 = vrcp.f32 %v1209_v21  ;;  %v1067_v25 = vsub.f32 0.0, %v888_v23 }
 0x1e8   :  { %v1691_v26 = vpop.eup %1690  ;;  %1700 = vpow2.f32 %v1120_v22  ;;  %v890_v27 = vpop.f32.mrf.mxu1 }
 0x1e9   :  { %v1210_v28 = vadd.f32 1.0, %v1691_v26  ;;  %v1122_v29 = vmul.f32 1.442695, %v1067_v25  ;;  %v891_v31 = vadd.f32 %v2249_v52, %v890_v27 }
 0x1ea   :  { %v1500_v32 = vpop.f32.mrf.mxu1 }
 0x1eb   :  { %1702 = vrcp.f32 %v1210_v28  ;;  %v1068_v33 = vsub.f32 0.0, %v891_v31 }
 0x1ec   :  { %v1693_v34 = vpop.eup %1692  ;;  %1704 = vpow2.f32 %v1122_v29  ;;  %v895_v35 = vpop.f32.mrf.mxu1 }
 0x1ed   :  { %v1211_v36 = vadd.f32 1.0, %v1693_v34  ;;  %v1124_v37 = vmul.f32 1.442695, %v1068_v33  ;;  %v896_v38 = vadd.f32 %v2249_v52, %v895_v35 }
 0x1ee   :  { %v1503_v39 = vpop.f32.mrf.mxu1 }
 0x1ef   :  { %1706 = vrcp.f32 %v1211_v36  ;;  %v1069_v40 = vsub.f32 0.0, %v896_v38 }
 0x1f0   :  { %v1695_v41 = vpop.eup %1694  ;;  %1708 = vpow2.f32 %v1124_v37  ;;  %v898_v42 = vpop.f32.mrf.mxu1 }
 0x1f1   :  { %v1697_v43 = vpop.eup %1696  ;;  %1307 = vst.msk [vmem:[%s2501_s5] sm:$0xff] %vm1306_vm1, %v1695_v41  ;;  %v1126_v44 = vmul.f32 1.442695, %v1069_v40  ;;  %v899_v45 = vadd.f32 %v2249_v52, %v898_v42 }
 0x1f2   :  { %v1212_v46 = vadd.f32 1.0, %v1697_v43  ;;  %v1504_v47 = vpop.f32.mrf.mxu1 }
 0x1f3   :  { %1710 = vpow2.f32 %v1126_v44  ;;  %v1070_v48 = vsub.f32 0.0, %v899_v45 }
 0x1f4   :  { %v1699_v49 = vpop.eup %1698  ;;  %1712 = vrcp.f32 %v1212_v46  ;;  %v903_v50 = vpop.f32.mrf.mxu1 }
 0x1f5   :  { %v1701_v51 = vpop.eup %1700  ;;  %1308 = vst.msk [vmem:[%s2501_s5 + $0x8] sm:$0xff] %vm1306_vm1, %v1699_v49  ;;  %v1128_v53 = vmul.f32 1.442695, %v1070_v48  ;;  %v904_v54 = vadd.f32 %v2249_v52, %v903_v50 }
 0x1f6   :  { %v1213_v55 = vadd.f32 1.0, %v1701_v51  ;;  %v1507_v13 = vpop.f32.mrf.mxu1 }
 0x1f7   :  { %1714 = vpow2.f32 %v1128_v53  ;;  %v1071_v56 = vsub.f32 0.0, %v904_v54 }
 0x1f8   :  { %v1703_v57 = vpop.eup %1702  ;;  %1716 = vrcp.f32 %v1213_v55  ;;  %v906_v58 = vpop.f32.mrf.mxu1 }
 0x1f9   :  { %v1705_v59 = vpop.eup %1704  ;;  %1309 = vst.msk [vmem:[%s2501_s5 + $0x10] sm:$0xff] %vm1306_vm1, %v1703_v57  ;;  %v1130_v30 = vmul.f32 1.442695, %v1071_v56  ;;  %v907_v60 = vadd.f32 %v2249_v52, %v906_v58 }
 0x1fa   :  { %v1214_v61 = vadd.f32 1.0, %v1705_v59  ;;  %v1508_v62 = vpop.f32.mrf.mxu1 }
 0x1fb   :  { %1718 = vpow2.f32 %v1130_v30  ;;  %v1072_v63 = vsub.f32 0.0, %v907_v60 }
 0x1fc   :  { %v1707_v0 = vpop.eup %1706  ;;  %1720 = vrcp.f32 %v1214_v61  ;;  %v911_v1 = vpop.f32.mrf.mxu1 }
 0x1fd   :  { %v1709_v2 = vpop.eup %1708  ;;  %1310 = vst.msk [vmem:[%s2501_s5 + $0x18] sm:$0xff] %vm1306_vm1, %v1707_v0  ;;  %v1132_v3 = vmul.f32 1.442695, %v1072_v63  ;;  %v912_v4 = vadd.f32 %v2249_v52, %v911_v1 }
 0x1fe   :  { %v1215_v5 = vadd.f32 1.0, %v1709_v2  ;;  %v1511_v6 = vpop.f32.mrf.mxu1 }
 0x1ff   :  { %1722 = vpow2.f32 %v1132_v3  ;;  %v1073_v7 = vsub.f32 0.0, %v912_v4 }
 0x200   :  { %v1711_v8 = vpop.eup %1710  ;;  %1724 = vrcp.f32 %v1215_v5  ;;  %v914_v9 = vpop.f32.mrf.mxu1 }
 0x201   :  { %v1713_v10 = vpop.eup %1712  ;;  %v1216_v11 = vadd.f32 1.0, %v1711_v8  ;;  %v1134_v12 = vmul.f32 1.442695, %v1073_v7  ;;  %v915_v14 = vadd.f32 %v2249_v52, %v914_v9 }
 0x202   :  { %1311 = vst.msk [vmem:[%s2501_s5 + $0x20] sm:$0xff] %vm1306_vm1, %v1713_v10  ;;  %v1512_v15 = vpop.f32.mrf.mxu1 }
 0x203   :  { %1726 = vrcp.f32 %v1216_v11  ;;  %v1074_v16 = vsub.f32 0.0, %v915_v14 }
 0x204   :  { %v1715_v17 = vpop.eup %1714  ;;  %1728 = vpow2.f32 %v1134_v12  ;;  %v919_v18 = vpop.f32.mrf.mxu1 }
 0x205   :  { %v1717_v19 = vpop.eup %1716  ;;  %v1217_v20 = vadd.f32 1.0, %v1715_v17  ;;  %v1136_v21 = vmul.f32 1.442695, %v1074_v16  ;;  %v920_v22 = vadd.f32 %v2249_v52, %v919_v18 }
 0x206   :  { %1312 = vst.msk [vmem:[%s2501_s5 + $0x28] sm:$0xff] %vm1306_vm1, %v1717_v19  ;;  %v1515_v23 = vpop.f32.mrf.mxu1 }
 0x207   :  { %1730 = vrcp.f32 %v1217_v20  ;;  %v1075_v24 = vsub.f32 0.0, %v920_v22 }
 0x208   :  { %v1719_v25 = vpop.eup %1718  ;;  %1732 = vpow2.f32 %v1136_v21  ;;  %v922_v26 = vpop.f32.mrf.mxu1 }
 0x209   :  { %v1721_v27 = vpop.eup %1720  ;;  %v1218_v28 = vadd.f32 1.0, %v1719_v25  ;;  %v1138_v29 = vmul.f32 1.442695, %v1075_v24  ;;  %v923_v31 = vadd.f32 %v2249_v52, %v922_v26 }
 0x20a   :  { %1313 = vst.msk [vmem:[%s2501_s5 + $0x30] sm:$0xff] %vm1306_vm1, %v1721_v27  ;;  %v1516_v32 = vpop.f32.mrf.mxu1 }
 0x20b   :  { %1734 = vrcp.f32 %v1218_v28  ;;  %v1076_v33 = vsub.f32 0.0, %v923_v31 }
 0x20c   :  { %v1723_v34 = vpop.eup %1722  ;;  %1736 = vpow2.f32 %v1138_v29  ;;  %v927_v35 = vpop.f32.mrf.mxu1 }
 0x20d   :  { %v1725_v36 = vpop.eup %1724  ;;  %v1219_v37 = vadd.f32 1.0, %v1723_v34  ;;  %v1140_v38 = vmul.f32 1.442695, %v1076_v33  ;;  %v928_v39 = vadd.f32 %v2249_v52, %v927_v35 }
 0x20e   :  { %1314 = vst.msk [vmem:[%s2501_s5 + $0x38] sm:$0xff] %vm1306_vm1, %v1725_v36  ;;  %v1519_v40 = vpop.f32.mrf.mxu1 }
 0x20f   :  { %1738 = vrcp.f32 %v1219_v37  ;;  %v1077_v41 = vsub.f32 0.0, %v928_v39 }
 0x210   :  { %v1727_v42 = vpop.eup %1726  ;;  %1740 = vpow2.f32 %v1140_v38  ;;  %v930_v43 = vpop.f32.mrf.mxu1 }
 0x211   :  { %v1729_v44 = vpop.eup %1728  ;;  %1315 = vst.msk [vmem:[%s2501_s5 + $0x40] sm:$0xff] %vm1306_vm1, %v1727_v42  ;;  %v1142_v45 = vmul.f32 1.442695, %v1077_v41  ;;  %v931_v46 = vadd.f32 %v2249_v52, %v930_v43 }
 0x212   :  { %v1220_v47 = vadd.f32 1.0, %v1729_v44  ;;  %v1520_v48 = vpop.f32.mrf.mxu1 }
 0x213   :  { %1742 = vpow2.f32 %v1142_v45  ;;  %v1078_v49 = vsub.f32 0.0, %v931_v46 }
 0x214   :  { %v1731_v50 = vpop.eup %1730  ;;  %1744 = vrcp.f32 %v1220_v47  ;;  %v935_v51 = vpop.f32.mrf.mxu1 }
 0x215   :  { %v1733_v53 = vpop.eup %1732  ;;  %1316 = vst.msk [vmem:[%s2501_s5 + $0x48] sm:$0xff] %vm1306_vm1, %v1731_v50  ;;  %v1144_v54 = vmul.f32 1.442695, %v1078_v49  ;;  %v936_v55 = vadd.f32 %v2249_v52, %v935_v51 }
 0x216   :  { %v1221_v13 = vadd.f32 1.0, %v1733_v53  ;;  %v1523_v56 = vpop.f32.mrf.mxu1 }
 0x217   :  { %1746 = vpow2.f32 %v1144_v54  ;;  %v1079_v57 = vsub.f32 0.0, %v936_v55 }
 0x218   :  { %v1735_v58 = vpop.eup %1734  ;;  %1748 = vrcp.f32 %v1221_v13  ;;  %v938_v59 = vpop.f32.mrf.mxu1 }
 0x219   :  { %v1737_v30 = vpop.eup %1736  ;;  %1317 = vst.msk [vmem:[%s2501_s5 + $0x50] sm:$0xff] %vm1306_vm1, %v1735_v58  ;;  %v1146_v60 = vmul.f32 1.442695, %v1079_v57  ;;  %v939_v61 = vadd.f32 %v2249_v52, %v938_v59 }
 0x21a   :  { %v1222_v62 = vadd.f32 1.0, %v1737_v30  ;;  %v1524_v63 = vpop.f32.mrf.mxu1 }
 0x21b   :  { %1750 = vpow2.f32 %v1146_v60  ;;  %v1080_v0 = vsub.f32 0.0, %v939_v61 }
 0x21c   :  { %v1739_v1 = vpop.eup %1738  ;;  %1752 = vrcp.f32 %v1222_v62  ;;  %v943_v2 = vpop.f32.mrf.mxu1 }
 0x21d   :  { %v1741_v3 = vpop.eup %1740  ;;  %1318 = vst.msk [vmem:[%s2501_s5 + $0x58] sm:$0xff] %vm1306_vm1, %v1739_v1  ;;  %v1148_v4 = vmul.f32 1.442695, %v1080_v0  ;;  %v944_v5 = vadd.f32 %v2249_v52, %v943_v2 }
 0x21e   :  { %v1223_v6 = vadd.f32 1.0, %v1741_v3  ;;  %v1527_v7 = vpop.f32.mrf.mxu1 }
 0x21f   :  { %1754 = vpow2.f32 %v1148_v4  ;;  %v1081_v8 = vsub.f32 0.0, %v944_v5 }
 0x220   :  { %v1743_v9 = vpop.eup %1742  ;;  %1756 = vrcp.f32 %v1223_v6  ;;  %v946_v10 = vpop.f32.mrf.mxu1 }
 0x221   :  { %v1745_v11 = vpop.eup %1744  ;;  %v1224_v12 = vadd.f32 1.0, %v1743_v9  ;;  %v1150_v14 = vmul.f32 1.442695, %v1081_v8  ;;  %v947_v15 = vadd.f32 %v2249_v52, %v946_v10 }
 0x222   :  { %1319 = vst.msk [vmem:[%s2501_s5 + $0x60] sm:$0xff] %vm1306_vm1, %v1745_v11  ;;  %v1528_v16 = vpop.f32.mrf.mxu1 }
 0x223   :  { %1758 = vrcp.f32 %v1224_v12  ;;  %v1082_v17 = vsub.f32 0.0, %v947_v15 }
 0x224   :  { %v1747_v18 = vpop.eup %1746  ;;  %1760 = vpow2.f32 %v1150_v14  ;;  %v951_v19 = vpop.f32.mrf.mxu1 }
 0x225   :  { %v1749_v20 = vpop.eup %1748  ;;  %v1225_v21 = vadd.f32 1.0, %v1747_v18  ;;  %v1152_v22 = vmul.f32 1.442695, %v1082_v17  ;;  %v952_v23 = vadd.f32 %v2249_v52, %v951_v19 }
 0x226   :  { %1320 = vst.msk [vmem:[%s2501_s5 + $0x68] sm:$0xff] %vm1306_vm1, %v1749_v20  ;;  %v1531_v24 = vpop.f32.mrf.mxu1 }
 0x227   :  { %1762 = vrcp.f32 %v1225_v21  ;;  %v1083_v25 = vsub.f32 0.0, %v952_v23 }
 0x228   :  { %v1751_v26 = vpop.eup %1750  ;;  %1764 = vpow2.f32 %v1152_v22  ;;  %v954_v27 = vpop.f32.mrf.mxu1 }
 0x229   :  { %v1753_v28 = vpop.eup %1752  ;;  %v1226_v29 = vadd.f32 1.0, %v1751_v26  ;;  %v1154_v31 = vmul.f32 1.442695, %v1083_v25  ;;  %v955_v32 = vadd.f32 %v2249_v52, %v954_v27 }
 0x22a   :  { %1321 = vst.msk [vmem:[%s2501_s5 + $0x70] sm:$0xff] %vm1306_vm1, %v1753_v28  ;;  %v1532_v33 = vpop.f32.mrf.mxu1 }
 0x22b   :  { %1766 = vrcp.f32 %v1226_v29  ;;  %v1084_v34 = vsub.f32 0.0, %v955_v32 }
 0x22c   :  { %v1755_v35 = vpop.eup %1754  ;;  %1768 = vpow2.f32 %v1154_v31  ;;  %v959_v36 = vpop.f32.mrf.mxu1 }
 0x22d   :  { %v1757_v37 = vpop.eup %1756  ;;  %v1227_v38 = vadd.f32 1.0, %v1755_v35  ;;  %v1156_v39 = vmul.f32 1.442695, %v1084_v34  ;;  %v960_v40 = vadd.f32 %v2249_v52, %v959_v36 }
 0x22e   :  { %1322 = vst.msk [vmem:[%s2501_s5 + $0x78] sm:$0xff] %vm1306_vm1, %v1757_v37  ;;  %v1535_v41 = vpop.f32.mrf.mxu1 }
 0x22f   :  { %1770 = vrcp.f32 %v1227_v38  ;;  %v1085_v42 = vsub.f32 0.0, %v960_v40 }
 0x230   :  { %v1759_v43 = vpop.eup %1758  ;;  %1772 = vpow2.f32 %v1156_v39  ;;  %v962_v44 = vpop.f32.mrf.mxu1 }
 0x231   :  { %v1761_v45 = vpop.eup %1760  ;;  %1323 = vst.msk [vmem:[%s2501_s5 + $0x80] sm:$0xff] %vm1306_vm1, %v1759_v43  ;;  %v1158_v46 = vmul.f32 1.442695, %v1085_v42  ;;  %v963_v47 = vadd.f32 %v2249_v52, %v962_v44 }
 0x232   :  { %v1228_v48 = vadd.f32 1.0, %v1761_v45  ;;  %v1536_v49 = vpop.f32.mrf.mxu1 }
 0x233   :  { %1774 = vpow2.f32 %v1158_v46  ;;  %v1086_v50 = vsub.f32 0.0, %v963_v47 }
 0x234   :  { %v1763_v51 = vpop.eup %1762  ;;  %1776 = vrcp.f32 %v1228_v48  ;;  %v967_v53 = vpop.f32.mrf.mxu1 }
 0x235   :  { %v1765_v54 = vpop.eup %1764  ;;  %1324 = vst.msk [vmem:[%s2501_s5 + $0x88] sm:$0xff] %vm1306_vm1, %v1763_v51  ;;  %v1160_v55 = vmul.f32 1.442695, %v1086_v50  ;;  %v968_v13 = vadd.f32 %v2249_v52, %v967_v53 }
 0x236   :  { %v1229_v56 = vadd.f32 1.0, %v1765_v54  ;;  %v1539_v57 = vpop.f32.mrf.mxu1 }
 0x237   :  { %1778 = vpow2.f32 %v1160_v55  ;;  %v1087_v58 = vsub.f32 0.0, %v968_v13 }
 0x238   :  { %v1767_v59 = vpop.eup %1766  ;;  %1780 = vrcp.f32 %v1229_v56  ;;  %v970_v30 = vpop.f32.mrf.mxu1 }
 0x239   :  { %v1769_v60 = vpop.eup %1768  ;;  %1325 = vst.msk [vmem:[%s2501_s5 + $0x90] sm:$0xff] %vm1306_vm1, %v1767_v59  ;;  %v1162_v61 = vmul.f32 1.442695, %v1087_v58  ;;  %v971_v62 = vadd.f32 %v2249_v52, %v970_v30 }
 0x23a   :  { %v1230_v63 = vadd.f32 1.0, %v1769_v60  ;;  %v1540_v0 = vpop.f32.mrf.mxu1 }
 0x23b   :  { %1782 = vpow2.f32 %v1162_v61  ;;  %v1088_v1 = vsub.f32 0.0, %v971_v62 }
 0x23c   :  { %v1771_v2 = vpop.eup %1770  ;;  %1784 = vrcp.f32 %v1230_v63  ;;  %v975_v3 = vpop.f32.mrf.mxu1 }
 0x23d   :  { %v1773_v4 = vpop.eup %1772  ;;  %1326 = vst.msk [vmem:[%s2501_s5 + $0x98] sm:$0xff] %vm1306_vm1, %v1771_v2  ;;  %v1164_v5 = vmul.f32 1.442695, %v1088_v1  ;;  %v976_v6 = vadd.f32 %v2249_v52, %v975_v3 }
 0x23e   :  { %v1231_v7 = vadd.f32 1.0, %v1773_v4  ;;  %v1543_v8 = vpop.f32.mrf.mxu1 }
 0x23f   :  { %1786 = vpow2.f32 %v1164_v5  ;;  %v1089_v9 = vsub.f32 0.0, %v976_v6 }
 0x240   :  { %v1775_v10 = vpop.eup %1774  ;;  %1788 = vrcp.f32 %v1231_v7  ;;  %v978_v11 = vpop.f32.mrf.mxu1 }
 0x241   :  { %v1777_v12 = vpop.eup %1776  ;;  %v1232_v14 = vadd.f32 1.0, %v1775_v10  ;;  %v1166_v15 = vmul.f32 1.442695, %v1089_v9  ;;  %v979_v16 = vadd.f32 %v2249_v52, %v978_v11 }
 0x242   :  { %1327 = vst.msk [vmem:[%s2501_s5 + $0xa0] sm:$0xff] %vm1306_vm1, %v1777_v12  ;;  %v1544_v17 = vpop.f32.mrf.mxu1 }
 0x243   :  { %1790 = vrcp.f32 %v1232_v14  ;;  %v1090_v18 = vsub.f32 0.0, %v979_v16 }
 0x244   :  { %v1779_v19 = vpop.eup %1778  ;;  %1792 = vpow2.f32 %v1166_v15  ;;  %v983_v20 = vpop.f32.mrf.mxu1 }
 0x245   :  { %v1781_v21 = vpop.eup %1780  ;;  %v1233_v22 = vadd.f32 1.0, %v1779_v19  ;;  %v1168_v23 = vmul.f32 1.442695, %v1090_v18  ;;  %v984_v24 = vadd.f32 %v2249_v52, %v983_v20 }
 0x246   :  { %1328 = vst.msk [vmem:[%s2501_s5 + $0xa8] sm:$0xff] %vm1306_vm1, %v1781_v21  ;;  %v1547_v25 = vpop.f32.mrf.mxu1 }
 0x247   :  { %1794 = vrcp.f32 %v1233_v22  ;;  %v1091_v26 = vsub.f32 0.0, %v984_v24 }
 0x248   :  { %v1783_v27 = vpop.eup %1782  ;;  %1796 = vpow2.f32 %v1168_v23  ;;  %v986_v28 = vpop.f32.mrf.mxu1 }
 0x249   :  { %v1785_v29 = vpop.eup %1784  ;;  %v1234_v31 = vadd.f32 1.0, %v1783_v27  ;;  %v1170_v32 = vmul.f32 1.442695, %v1091_v26  ;;  %v987_v33 = vadd.f32 %v2249_v52, %v986_v28 }
 0x24a   :  { %1329 = vst.msk [vmem:[%s2501_s5 + $0xb0] sm:$0xff] %vm1306_vm1, %v1785_v29  ;;  %v1548_v34 = vpop.f32.mrf.mxu1 }
 0x24b   :  { %1798 = vrcp.f32 %v1234_v31  ;;  %v1092_v35 = vsub.f32 0.0, %v987_v33 }
 0x24c   :  { %v1787_v36 = vpop.eup %1786  ;;  %1800 = vpow2.f32 %v1170_v32  ;;  %v991_v37 = vpop.f32.mrf.mxu1 }
 0x24d   :  { %v1789_v38 = vpop.eup %1788  ;;  %v1235_v39 = vadd.f32 1.0, %v1787_v36  ;;  %v1172_v40 = vmul.f32 1.442695, %v1092_v35  ;;  %v992_v41 = vadd.f32 %v2249_v52, %v991_v37 }
 0x24e   :  { %1330 = vst.msk [vmem:[%s2501_s5 + $0xb8] sm:$0xff] %vm1306_vm1, %v1789_v38  ;;  %v1551_v42 = vpop.f32.mrf.mxu1 }
 0x24f   :  { %1802 = vrcp.f32 %v1235_v39  ;;  %v1093_v43 = vsub.f32 0.0, %v992_v41 }
 0x250   :  { %v1791_v44 = vpop.eup %1790  ;;  %1804 = vpow2.f32 %v1172_v40  ;;  %v994_v45 = vpop.f32.mrf.mxu1 }
 0x251   :  { %v1793_v46 = vpop.eup %1792  ;;  %1331 = vst.msk [vmem:[%s2501_s5 + $0xc0] sm:$0xff] %vm1306_vm1, %v1791_v44  ;;  %v1174_v47 = vmul.f32 1.442695, %v1093_v43  ;;  %v995_v48 = vadd.f32 %v2249_v52, %v994_v45 }
 0x252   :  { %v1236_v49 = vadd.f32 1.0, %v1793_v46  ;;  %v1552_v50 = vpop.f32.mrf.mxu1 }
 0x253   :  { %1806 = vpow2.f32 %v1174_v47  ;;  %v1094_v51 = vsub.f32 0.0, %v995_v48 }
 0x254   :  { %v1795_v53 = vpop.eup %1794  ;;  %1808 = vrcp.f32 %v1236_v49  ;;  %v999_v54 = vpop.f32.mrf.mxu1 }
 0x255   :  { %v1797_v55 = vpop.eup %1796  ;;  %1332 = vst.msk [vmem:[%s2501_s5 + $0xc8] sm:$0xff] %vm1306_vm1, %v1795_v53  ;;  %v1176_v13 = vmul.f32 1.442695, %v1094_v51  ;;  %v1000_v56 = vadd.f32 %v2249_v52, %v999_v54 }
 0x256   :  { %v1237_v57 = vadd.f32 1.0, %v1797_v55  ;;  %v1555_v58 = vpop.f32.mrf.mxu1 }
 0x257   :  { %1810 = vpow2.f32 %v1176_v13  ;;  %v1095_v59 = vsub.f32 0.0, %v1000_v56 }
 0x258   :  { %v1799_v30 = vpop.eup %1798  ;;  %1812 = vrcp.f32 %v1237_v57  ;;  %v1002_v60 = vpop.f32.mrf.mxu1 }
 0x259   :  { %v1801_v61 = vpop.eup %1800  ;;  %1333 = vst.msk [vmem:[%s2501_s5 + $0xd0] sm:$0xff] %vm1306_vm1, %v1799_v30  ;;  %v1178_v62 = vmul.f32 1.442695, %v1095_v59  ;;  %v1003_v63 = vadd.f32 %v2249_v52, %v1002_v60 }
 0x25a   :  { %v1238_v0 = vadd.f32 1.0, %v1801_v61  ;;  %v1556_v1 = vpop.f32.mrf.mxu1 }
 0x25b   :  { %1814 = vpow2.f32 %v1178_v62  ;;  %v1096_v2 = vsub.f32 0.0, %v1003_v63 }
 0x25c   :  { %v1803_v3 = vpop.eup %1802  ;;  %1816 = vrcp.f32 %v1238_v0  ;;  %v1007_v4 = vpop.f32.mrf.mxu1 }
 0x25d   :  { %v1805_v5 = vpop.eup %1804  ;;  %1334 = vst.msk [vmem:[%s2501_s5 + $0xd8] sm:$0xff] %vm1306_vm1, %v1803_v3  ;;  %v1180_v6 = vmul.f32 1.442695, %v1096_v2  ;;  %v1008_v7 = vadd.f32 %v2249_v52, %v1007_v4 }
 0x25e   :  { %v1239_v8 = vadd.f32 1.0, %v1805_v5  ;;  %v1559_v9 = vpop.f32.mrf.mxu1 }
 0x25f   :  { %1818 = vpow2.f32 %v1180_v6  ;;  %v1097_v10 = vsub.f32 0.0, %v1008_v7 }
 0x260   :  { %v1807_v11 = vpop.eup %1806  ;;  %1820 = vrcp.f32 %v1239_v8  ;;  %v1010_v12 = vpop.f32.mrf.mxu1 }
 0x261   :  { %v1809_v14 = vpop.eup %1808  ;;  %v1240_v15 = vadd.f32 1.0, %v1807_v11  ;;  %v1182_v16 = vmul.f32 1.442695, %v1097_v10  ;;  %v1011_v17 = vadd.f32 %v2249_v52, %v1010_v12 }
 0x262   :  { %1335 = vst.msk [vmem:[%s2501_s5 + $0xe0] sm:$0xff] %vm1306_vm1, %v1809_v14  ;;  %v1560_v18 = vpop.f32.mrf.mxu1 }
 0x263   :  { %1822 = vrcp.f32 %v1240_v15  ;;  %v1098_v19 = vsub.f32 0.0, %v1011_v17 }
 0x264   :  { %v1811_v20 = vpop.eup %1810  ;;  %1824 = vpow2.f32 %v1182_v16  ;;  %v1015_v21 = vpop.f32.mrf.mxu1 }
 0x265   :  { %v1813_v22 = vpop.eup %1812  ;;  %v1241_v23 = vadd.f32 1.0, %v1811_v20  ;;  %v1184_v24 = vmul.f32 1.442695, %v1098_v19  ;;  %v1016_v25 = vadd.f32 %v2249_v52, %v1015_v21 }
 0x266   :  { %1336 = vst.msk [vmem:[%s2501_s5 + $0xe8] sm:$0xff] %vm1306_vm1, %v1813_v22  ;;  %v1563_v26 = vpop.f32.mrf.mxu1 }
 0x267   :  { %1826 = vrcp.f32 %v1241_v23  ;;  %v1099_v27 = vsub.f32 0.0, %v1016_v25 }
 0x268   :  { %v1815_v28 = vpop.eup %1814  ;;  %1828 = vpow2.f32 %v1184_v24  ;;  %v1018_v29 = vpop.f32.mrf.mxu1 }
 0x269   :  { %v1817_v31 = vpop.eup %1816  ;;  %v1242_v32 = vadd.f32 1.0, %v1815_v28  ;;  %v1186_v33 = vmul.f32 1.442695, %v1099_v27  ;;  %v1019_v34 = vadd.f32 %v2249_v52, %v1018_v29 }
 0x26a   :  { %1337 = vst.msk [vmem:[%s2501_s5 + $0xf0] sm:$0xff] %vm1306_vm1, %v1817_v31  ;;  %v1564_v35 = vpop.f32.mrf.mxu1 }
 0x26b   :  { %1830 = vrcp.f32 %v1242_v32  ;;  %v1100_v36 = vsub.f32 0.0, %v1019_v34 }
 0x26c   :  { %v1819_v37 = vpop.eup %1818  ;;  %1832 = vpow2.f32 %v1186_v33  ;;  %v1023_v38 = vpop.f32.mrf.mxu1 }
 0x26d   :  { %v1821_v39 = vpop.eup %1820  ;;  %v1243_v40 = vadd.f32 1.0, %v1819_v37  ;;  %v1188_v41 = vmul.f32 1.442695, %v1100_v36  ;;  %v1024_v42 = vadd.f32 %v2249_v52, %v1023_v38 }
 0x26e   :  { %1338 = vst.msk [vmem:[%s2501_s5 + $0xf8] sm:$0xff] %vm1306_vm1, %v1821_v39  ;;  %v1567_v43 = vpop.f32.mrf.mxu1 }
 0x26f   :  { %1834 = vrcp.f32 %v1243_v40  ;;  %v1101_v44 = vsub.f32 0.0, %v1024_v42 }
 0x270   :  { %v1823_v45 = vpop.eup %1822  ;;  %1836 = vpow2.f32 %v1188_v41  ;;  %v1026_v46 = vpop.f32.mrf.mxu1 }
 0x271   :  { %v1825_v47 = vpop.eup %1824  ;;  %1339 = vst.msk [vmem:[%s2501_s5 + $0x100] sm:$0xff] %vm1306_vm1, %v1823_v45  ;;  %v1190_v48 = vmul.f32 1.442695, %v1101_v44  ;;  %v1027_v49 = vadd.f32 %v2249_v52, %v1026_v46 }
 0x272   :  { %v1244_v50 = vadd.f32 1.0, %v1825_v47  ;;  %v1568_v51 = vpop.f32.mrf.mxu1 }
 0x273   :  { %1838 = vpow2.f32 %v1190_v48  ;;  %v1102_v53 = vsub.f32 0.0, %v1027_v49 }
 0x274   :  { %v1827_v54 = vpop.eup %1826  ;;  %1840 = vrcp.f32 %v1244_v50  ;;  %v1031_v55 = vpop.f32.mrf.mxu1 }
 0x275   :  { %v1829_v13 = vpop.eup %1828  ;;  %1340 = vst.msk [vmem:[%s2501_s5 + $0x108] sm:$0xff] %vm1306_vm1, %v1827_v54  ;;  %v1192_v56 = vmul.f32 1.442695, %v1102_v53  ;;  %v1032_v57 = vadd.f32 %v2249_v52, %v1031_v55 }
 0x276   :  { %v1245_v58 = vadd.f32 1.0, %v1829_v13  ;;  %v1571_v59 = vpop.f32.mrf.mxu1 }
 0x277   :  { %1842 = vpow2.f32 %v1192_v56  ;;  %v1103_v30 = vsub.f32 0.0, %v1032_v57 }
 0x278   :  { %v1831_v60 = vpop.eup %1830  ;;  %1844 = vrcp.f32 %v1245_v58  ;;  %v1034_v61 = vpop.f32.mrf.mxu1 }
 0x279   :  { %v1833_v62 = vpop.eup %1832  ;;  %1341 = vst.msk [vmem:[%s2501_s5 + $0x110] sm:$0xff] %vm1306_vm1, %v1831_v60  ;;  %v1194_v63 = vmul.f32 1.442695, %v1103_v30  ;;  %v1035_v0 = vadd.f32 %v2249_v52, %v1034_v61 }
 0x27a   :  { %v1246_v1 = vadd.f32 1.0, %v1833_v62  ;;  %v1572_v2 = vpop.f32.mrf.mxu1 }
 0x27b   :  { %1846 = vpow2.f32 %v1194_v63  ;;  %v1104_v3 = vsub.f32 0.0, %v1035_v0 }
 0x27c   :  { %v1835_v4 = vpop.eup %1834  ;;  %1848 = vrcp.f32 %v1246_v1  ;;  %v1039_v5 = vpop.f32.mrf.mxu1 }
 0x27d   :  { %v1837_v6 = vpop.eup %1836  ;;  %1342 = vst.msk [vmem:[%s2501_s5 + $0x118] sm:$0xff] %vm1306_vm1, %v1835_v4  ;;  %v1196_v7 = vmul.f32 1.442695, %v1104_v3  ;;  %v1040_v8 = vadd.f32 %v2249_v52, %v1039_v5 }
 0x27e   :  { %v1247_v9 = vadd.f32 1.0, %v1837_v6  ;;  %v1575_v10 = vpop.f32.mrf.mxu1 }
 0x27f   :  { %1850 = vpow2.f32 %v1196_v7  ;;  %v1105_v11 = vsub.f32 0.0, %v1040_v8 }
 0x280   :  { %v1839_v12 = vpop.eup %1838  ;;  %1852 = vrcp.f32 %v1247_v9  ;;  %v1042_v14 = vpop.f32.mrf.mxu1 }
 0x281   :  { %v1841_v15 = vpop.eup %1840  ;;  %v1248_v16 = vadd.f32 1.0, %v1839_v12  ;;  %v1198_v17 = vmul.f32 1.442695, %v1105_v11  ;;  %v1043_v18 = vadd.f32 %v2249_v52, %v1042_v14 }
 0x282   :  { %1343 = vst.msk [vmem:[%s2501_s5 + $0x120] sm:$0xff] %vm1306_vm1, %v1841_v15  ;;  %v1576_v19 = vpop.f32.mrf.mxu1 }
 0x283   :  { %1854 = vrcp.f32 %v1248_v16  ;;  %v1106_v20 = vsub.f32 0.0, %v1043_v18 }
 0x284   :  { %v1843_v21 = vpop.eup %1842  ;;  %1856 = vpow2.f32 %v1198_v17  ;;  %v1047_v22 = vpop.f32.mrf.mxu1 }
 0x285   :  { %v1845_v23 = vpop.eup %1844  ;;  %v1249_v24 = vadd.f32 1.0, %v1843_v21  ;;  %v1200_v25 = vmul.f32 1.442695, %v1106_v20  ;;  %v1048_v26 = vadd.f32 %v2249_v52, %v1047_v22 }
 0x286   :  { %1344 = vst.msk [vmem:[%s2501_s5 + $0x128] sm:$0xff] %vm1306_vm1, %v1845_v23  ;;  %v1579_v27 = vpop.f32.mrf.mxu1 }
 0x287   :  { %1858 = vrcp.f32 %v1249_v24  ;;  %v1107_v28 = vsub.f32 0.0, %v1048_v26 }
 0x288   :  { %v1847_v29 = vpop.eup %1846  ;;  %1860 = vpow2.f32 %v1200_v25  ;;  %v1050_v31 = vpop.f32.mrf.mxu1 }
 0x289   :  { %v1849_v32 = vpop.eup %1848  ;;  %v1250_v33 = vadd.f32 1.0, %v1847_v29  ;;  %v1202_v34 = vmul.f32 1.442695, %v1107_v28  ;;  %v1051_v35 = vadd.f32 %v2249_v52, %v1050_v31 }
 0x28a   :  { %1345 = vst.msk [vmem:[%s2501_s5 + $0x130] sm:$0xff] %vm1306_vm1, %v1849_v32  ;;  %v1580_v36 = vpop.f32.mrf.mxu1 }
 0x28b   :  { %1862 = vrcp.f32 %v1250_v33  ;;  %v1108_v37 = vsub.f32 0.0, %v1051_v35 }
 0x28c   :  { %v1851_v38 = vpop.eup %1850  ;;  %1864 = vpow2.f32 %v1202_v34  ;;  %v1055_v39 = vpop.f32.mrf.mxu1 }
 0x28d   :  { %v1853_v40 = vpop.eup %1852  ;;  %v1251_v41 = vadd.f32 1.0, %v1851_v38  ;;  %v1204_v42 = vmul.f32 1.442695, %v1108_v37  ;;  %v1056_v43 = vadd.f32 %v2249_v52, %v1055_v39 }
 0x28e   :  { %1346 = vst.msk [vmem:[%s2501_s5 + $0x138] sm:$0xff] %vm1306_vm1, %v1853_v40  ;;  %v1583_v44 = vpop.f32.mrf.mxu1 }
 0x28f   :  { %1866 = vrcp.f32 %v1251_v41  ;;  %v1109_v45 = vsub.f32 0.0, %v1056_v43 }
 0x290   :  { %v1855_v46 = vpop.eup %1854  ;;  %1868 = vpow2.f32 %v1204_v42  ;;  %v1058_v47 = vpop.f32.mrf.mxu1 }
 0x291   :  { %v1857_v48 = vpop.eup %1856  ;;  %1347 = vst.msk [vmem:[%s2501_s5 + $0x140] sm:$0xff] %vm1306_vm1, %v1855_v46  ;;  %v1206_v49 = vmul.f32 1.442695, %v1109_v45 }
 0x292   :  { %v1252_v50 = vadd.f32 1.0, %v1857_v48  ;;  %v1584_v52 = vpop.f32.mrf.mxu1 }
 0x293   :  { %1870 = vpow2.f32 %v1206_v49 }
 0x294   :  { %v1859_v51 = vpop.eup %1858  ;;  %1872 = vrcp.f32 %v1252_v50 }
 0x295   :  { %v1861_v53 = vpop.eup %1860  ;;  %1348 = vst.msk [vmem:[%s2501_s5 + $0x148] sm:$0xff] %vm1306_vm1, %v1859_v51 }
 0x296   :  { %v1253_v54 = vadd.f32 1.0, %v1861_v53 }
 0x298   :  { %v1863_v55 = vpop.eup %1862  ;;  %1874 = vrcp.f32 %v1253_v54 }
 0x299   :  { %v1865_v13 = vpop.eup %1864  ;;  %1349 = vst.msk [vmem:[%s2501_s5 + $0x150] sm:$0xff] %vm1306_vm1, %v1863_v55 }
 0x29a   :  { %v1254_v56 = vadd.f32 1.0, %v1865_v13 }
 0x29c   :  { %v1867_v57 = vpop.eup %1866  ;;  %1876 = vrcp.f32 %v1254_v56 }
 0x29d   :  { %v1869_v58 = vpop.eup %1868  ;;  %1350 = vst.msk [vmem:[%s2501_s5 + $0x158] sm:$0xff] %vm1306_vm1, %v1867_v57 }
 0x29e   :  { %v1255_v59 = vadd.f32 1.0, %v1869_v58 }
 0x2a0   :  { %v1871_v30 = vpop.eup %1870  ;;  %1878 = vrcp.f32 %v1255_v59 }
 0x2a1   :  { %v1873_v60 = vpop.eup %1872  ;;  %v1256_v61 = vadd.f32 1.0, %v1871_v30 }
 0x2a2   :  { %1351 = vst.msk [vmem:[%s2501_s5 + $0x160] sm:$0xff] %vm1306_vm1, %v1873_v60 }
 0x2a3   :  { %1880 = vrcp.f32 %v1256_v61 }
 0x2a5   :  { %v1875_v62 = vpop.eup %1874 }
 0x2a6   :  { %1352 = vst.msk [vmem:[%s2501_s5 + $0x168] sm:$0xff] %vm1306_vm1, %v1875_v62 }
 0x2a9   :  { %v1877_v63 = vpop.eup %1876 }
 0x2aa   :  { %1353 = vst.msk [vmem:[%s2501_s5 + $0x170] sm:$0xff] %vm1306_vm1, %v1877_v63 }
 0x2ad   :  { %v1879_v0 = vpop.eup %1878 }
 0x2ae   :  { %1354 = vst.msk [vmem:[%s2501_s5 + $0x178] sm:$0xff] %vm1306_vm1, %v1879_v0 }
 0x2b0   :  { %v1881_v1 = vpop.eup %1880 }
 0x2b1   :  { %1355 = vst.msk [vmem:[%s2501_s5 + $0x180] sm:$0xff] %vm1306_vm1, %v1881_v1 }

</bundles_post_ra>
